<compile_context>
chip_gen: v7x
topology: tpu7x:2x2x1
jax: 0.10.0
libtpu: 0.0.40
codegen_flags: <defaults>
</compile_context>

<pallas_src>
import functools

import jax
import jax.numpy as jnp
from jax import lax
from jax.experimental import pallas as pl
from jax.experimental.pallas import tpu as pltpu

EPS = 1e-5
LANE = 128                 # pad all channel axes to a multiple of the lane width
_MM_TILE_ROWS = 512        # M-tile target (multiple of 16; fits v5e/v6e/v7x VMEM)
_VMEM_LIMIT = 32 << 20     # explicit scoped-VMEM budget (fits v5e/v6e/v7x)


# ---------------------------------------------------------------------------
# small helpers
# ---------------------------------------------------------------------------
def _round_up(v, k):
    return (v + k - 1) // k * k


def _pick_tile(m, target=_MM_TILE_ROWS):
    # largest divisor of m that is <= target and a multiple of 16
    # (bf16 sublane packing), falling back to m itself.
    for t in range(min(target, m), 0, -1):
        if m % t == 0 and (t % 16 == 0 or t == m):
            return t
    return m


def _pad1(v, c):
    return jnp.pad(v.astype(jnp.float32), (0, c - v.shape[0]))


def _pad2(w, ci, co):
    return jnp.pad(w.astype(jnp.float32),
                   ((0, ci - w.shape[0]), (0, co - w.shape[1])))


def _affine_from_stats(stats, gamma, beta, count):
    # training-mode BN: biased variance over the full reduction set, folded
    # into one per-channel scale/bias so the apply pass is a single mul+add.
    mean = stats[0] / count
    var = jnp.maximum(stats[1] / count - mean * mean, 0.0)
    scale = gamma * lax.rsqrt(var + EPS)
    bias = beta - mean * scale
    return scale.reshape(1, -1), bias.reshape(1, -1)


def _compiler_params(semantics):
    return pltpu.CompilerParams(dimension_semantics=semantics,
                                vmem_limit_bytes=_VMEM_LIMIT)


def _accum_stats(stats_ref, y_f32):
    @pl.when(pl.program_id(0) == 0)
    def _():
        stats_ref[...] = jnp.zeros_like(stats_ref)

    stats_ref[...] += jnp.concatenate(
        [jnp.sum(y_f32, axis=0, keepdims=True),
         jnp.sum(y_f32 * y_f32, axis=0, keepdims=True)], axis=0)


# ---------------------------------------------------------------------------
# kernels
# ---------------------------------------------------------------------------
def _mm_stats_kernel(x_ref, sa_ref, sb_ref, w_ref, y_ref, stats_ref, *,
                     fuse_in_bn_relu):
    """(optional BN-apply + ReLU on the input tile) -> 1x1-conv matmul ->
    per-channel sum / sum-of-squares accumulated across the M grid axis."""
    x = x_ref[...]
    if fuse_in_bn_relu:
        x = jnp.maximum(x * sa_ref[...] + sb_ref[...], 0.0)
    y = jnp.dot(x.astype(jnp.bfloat16), w_ref[...],
                preferred_element_type=jnp.float32)
    y_ref[...] = y.astype(y_ref.dtype)
    _accum_stats(stats_ref, y)


def _mm_dual_stats_kernel(x_ref, w_ref, ya_ref, yb_ref, stats_ref, *, split):
    """conv1 and the (stride=1) projection shortcut fused: one matmul over the
    concatenated weight, x read from HBM once; joint sum/sumsq accumulator."""
    y = jnp.dot(x_ref[...].astype(jnp.bfloat16), w_ref[...],
                preferred_element_type=jnp.float32)
    ya_ref[...] = y[:, :split].astype(ya_ref.dtype)
    yb_ref[...] = y[:, split:].astype(yb_ref.dtype)
    _accum_stats(stats_ref, y)


def _conv3x3_stats_kernel(y1_ref, sa_ref, sb_ref, w_ref, y2_ref, stats_ref,
                          xp_scr, *, stride):
    """BN1-apply + ReLU fused into the read; 3x3 conv (pad=1, stride) as one
    im2col matmul with K = 9*C; BN2 sum/sumsq accumulated across images."""
    _, h, w, c = y1_ref.shape
    ho = (h - 1) // stride + 1
    wo = (w - 1) // stride + 1

    @pl.when(pl.program_id(0) == 0)
    def _():
        xp_scr[...] = jnp.zeros_like(xp_scr)      # zero the halo once
        stats_ref[...] = jnp.zeros_like(stats_ref)

    a1 = jnp.maximum(y1_ref[0] * sa_ref[...] + sb_ref[...], 0.0)   # (h, w, c) f32
    # Interior stored at sublane-ALIGNED column offset 8 (aligned stores);
    # the zero halo lives at columns 7 / w+8 and rows 0 / h+1 of the scratch.
    xp_scr[pl.ds(1, h), pl.ds(8, w), :] = a1

    patches = []
    for di in range(3):
        for dj in range(3):
            if stride == 1:
                p = xp_scr[di:di + ho, 7 + dj:7 + dj + wo, :]
            else:
                p = xp_scr[pl.ds(di, ho, stride=stride),
                           pl.ds(7 + dj, wo, stride=stride), :]
            patches.append(p.astype(jnp.bfloat16))
    # one lane-axis concat + one reshape -> a single K = 9*C MXU matmul
    im2col = jnp.concatenate(patches, axis=-1).reshape(ho * wo, 9 * c)
    y2 = jnp.dot(im2col, w_ref[...], preferred_element_type=jnp.float32)

    y2_ref[...] = y2.reshape(1, ho, wo, c).astype(y2_ref.dtype)

    @pl.when(pl.program_id(0) == 0)
    def _():
        stats_ref[...] = jnp.zeros_like(stats_ref)

    stats_ref[...] += jnp.concatenate(
        [jnp.sum(y2, axis=0, keepdims=True),
         jnp.sum(y2 * y2, axis=0, keepdims=True)], axis=0)


def _strided_shortcut_kernel(x_ref, w_ref, y_ref, stats_ref, *, stride):
    """Shortcut 1x1 conv with spatial stride: the subsample is a strided read
    inside the kernel, so skipped pixels never make an extra HBM copy."""
    _, h, w, c = x_ref.shape
    cout = w_ref.shape[1]
    ho = (h - 1) // stride + 1
    wo = (w - 1) // stride + 1
    xs = x_ref[0, pl.ds(0, ho, stride=stride), pl.ds(0, wo, stride=stride), :]
    y = jnp.dot(xs.reshape(ho * wo, c).astype(jnp.bfloat16), w_ref[...],
                preferred_element_type=jnp.float32)
    y_ref[...] = y.reshape(1, ho, wo, cout).astype(y_ref.dtype)
    _accum_stats(stats_ref, y)


def _apply_bn_add_relu_kernel(y_ref, s_ref, b_ref, r_ref, sr_ref, br_ref,
                              o_ref):
    """Fused epilogue: bn3-apply + bn_sc-apply(residual) + add + ReLU."""
    o_ref[...] = jnp.maximum(
        y_ref[...] * s_ref[...] + b_ref[...]
        + r_ref[...] * sr_ref[...] + br_ref[...], 0.0).astype(o_ref.dtype)


# ---------------------------------------------------------------------------
# pallas_call wrappers
# ---------------------------------------------------------------------------
def _mm_stats(x2d, w_bf16, sa, sb, *, fuse_in_bn_relu, tm):
    m, cin = x2d.shape
    cout = w_bf16.shape[1]
    return pl.pallas_call(
        functools.partial(_mm_stats_kernel, fuse_in_bn_relu=fuse_in_bn_relu),
        grid=(m // tm,),
        in_specs=[
            pl.BlockSpec((tm, cin), lambda i: (i, 0)),
            pl.BlockSpec((1, cin), lambda i: (0, 0)),
            pl.BlockSpec((1, cin), lambda i: (0, 0)),
            pl.BlockSpec((cin, cout), lambda i: (0, 0)),
        ],
        out_specs=[
            pl.BlockSpec((tm, cout), lambda i: (i, 0)),
            pl.BlockSpec((2, cout), lambda i: (0, 0)),   # resident accumulator
        ],
        out_shape=[
            jax.ShapeDtypeStruct((m, cout), jnp.bfloat16),
            jax.ShapeDtypeStruct((2, cout), jnp.float32),
        ],
        # M axis is a reduction axis for the stats accumulator -> "arbitrary"
        compiler_params=_compiler_params(("arbitrary",)),
    )(x2d, sa, sb, w_bf16)


def _mm_dual_stats(x2d, w_cat_bf16, split, *, tm):
    m, cin = x2d.shape
    ctot = w_cat_bf16.shape[1]
    return pl.pallas_call(
        functools.partial(_mm_dual_stats_kernel, split=split),
        grid=(m // tm,),
        in_specs=[
            pl.BlockSpec((tm, cin), lambda i: (i, 0)),
            pl.BlockSpec((cin, ctot), lambda i: (0, 0)),
        ],
        out_specs=[
            pl.BlockSpec((tm, split), lambda i: (i, 0)),
            pl.BlockSpec((tm, ctot - split), lambda i: (i, 0)),
            pl.BlockSpec((2, ctot), lambda i: (0, 0)),
        ],
        out_shape=[
            jax.ShapeDtypeStruct((m, split), jnp.bfloat16),
            jax.ShapeDtypeStruct((m, ctot - split), jnp.bfloat16),
            jax.ShapeDtypeStruct((2, ctot), jnp.float32),
        ],
        compiler_params=_compiler_params(("arbitrary",)),
    )(x2d, w_cat_bf16)


def _conv3x3_stats(y1_4d, sa, sb, w2_bf16, *, stride):
    n, h, w, c = y1_4d.shape
    ho = (h - 1) // stride + 1
    wo = (w - 1) // stride + 1
    return pl.pallas_call(
        functools.partial(_conv3x3_stats_kernel, stride=stride),
        grid=(n,),
        in_specs=[
            pl.BlockSpec((1, h, w, c), lambda i: (i, 0, 0, 0)),
            pl.BlockSpec((1, c), lambda i: (0, 0)),
            pl.BlockSpec((1, c), lambda i: (0, 0)),
            pl.BlockSpec((9 * c, c), lambda i: (0, 0)),
        ],
        out_specs=[
            pl.BlockSpec((1, ho, wo, c), lambda i: (i, 0, 0, 0)),
            pl.BlockSpec((2, c), lambda i: (0, 0)),
        ],
        out_shape=[
            jax.ShapeDtypeStruct((n, ho, wo, c), jnp.bfloat16),
            jax.ShapeDtypeStruct((2, c), jnp.float32),
        ],
        scratch_shapes=[pltpu.VMEM((h + 2, w + 16, c), jnp.float32)],
        compiler_params=_compiler_params(("arbitrary",)),
    )(y1_4d, sa, sb, w2_bf16)


def _strided_shortcut(x_4d, w_bf16, *, stride):
    n, h, w, c = x_4d.shape
    cout = w_bf16.shape[1]
    ho = (h - 1) // stride + 1
    wo = (w - 1) // stride + 1
    return pl.pallas_call(
        functools.partial(_strided_shortcut_kernel, stride=stride),
        grid=(n,),
        in_specs=[
            pl.BlockSpec((1, h, w, c), lambda i: (i, 0, 0, 0)),
            pl.BlockSpec((c, cout), lambda i: (0, 0)),
        ],
        out_specs=[
            pl.BlockSpec((1, ho, wo, cout), lambda i: (i, 0, 0, 0)),
            pl.BlockSpec((2, cout), lambda i: (0, 0)),
        ],
        out_shape=[
            jax.ShapeDtypeStruct((n, ho, wo, cout), jnp.bfloat16),
            jax.ShapeDtypeStruct((2, cout), jnp.float32),
        ],
        compiler_params=_compiler_params(("arbitrary",)),
    )(x_4d, w_bf16)


def _apply_bn_add_relu(y, s, b, res, sr, br, *, tm):
    m, c = y.shape
    return pl.pallas_call(
        _apply_bn_add_relu_kernel,
        grid=(m // tm,),
        in_specs=[
            pl.BlockSpec((tm, c), lambda i: (i, 0)),
            pl.BlockSpec((1, c), lambda i: (0, 0)),
            pl.BlockSpec((1, c), lambda i: (0, 0)),
            pl.BlockSpec((tm, c), lambda i: (i, 0)),
            pl.BlockSpec((1, c), lambda i: (0, 0)),
            pl.BlockSpec((1, c), lambda i: (0, 0)),
        ],
        out_specs=pl.BlockSpec((tm, c), lambda i: (i, 0)),
        out_shape=jax.ShapeDtypeStruct((m, c), jnp.float32),
        # pure elementwise apply: M axis is parallel (megacore on v7x)
        compiler_params=_compiler_params(("parallel",)),
    )(y, s, b, res, sr, br)


# ---------------------------------------------------------------------------
# Bottleneck forward (NCHW in / NCHW out, like the PyTorch module)
# ---------------------------------------------------------------------------
def bottleneck_forward(x_nchw, params, *, stride=1):
    n, cin, h, w = x_nchw.shape
    planes = params["w1"].shape[1]
    out_planes = 4 * planes
    ho = (h - 1) // stride + 1
    wo = (w - 1) // stride + 1

    cp = _round_up(cin, LANE)
    pp = _round_up(planes, LANE)
    qp = _round_up(out_planes, LANE)

    # NHWC relayout + lane-pad + bf16 in one XLA pass (halves every later
    # HBM read of x; the matmuls cast to bf16 anyway).
    x_nhwc = jnp.pad(jnp.transpose(x_nchw, (0, 2, 3, 1)).astype(jnp.bfloat16),
                     ((0, 0), (0, 0), (0, 0), (0, cp - cin)))
    x2d = x_nhwc.reshape(n * h * w, cp)

    # weights: channels-last, zero-padded to lane-dense widths, bf16 for MXU.
    # padded BN channels keep gamma=beta=0 -> stay exactly zero end-to-end.
    w1 = _pad2(params["w1"], cp, pp)
    w2 = jnp.zeros((9, pp, pp), jnp.float32)
    w2 = w2.at[:, :planes, :planes].set(params["w2"].astype(jnp.float32))
    w2 = w2.reshape(9 * pp, pp).astype(jnp.bfloat16)      # im2col layout
    w3 = _pad2(params["w3"], pp, qp).astype(jnp.bfloat16)
    g1, b1 = _pad1(params["g1"], pp), _pad1(params["b1"], pp)
    g2, b2 = _pad1(params["g2"], pp), _pad1(params["b2"], pp)
    g3, b3 = _pad1(params["g3"], qp), _pad1(params["b3"], qp)

    m, mo = n * h * w, n * ho * wo
    tm_in, tm_out = _pick_tile(m), _pick_tile(mo)
    ones = lambda c: jnp.ones((1, c), jnp.float32)
    zeros = lambda c: jnp.zeros((1, c), jnp.float32)

    has_proj = (stride != 1) or (cin != out_planes)

    # conv1 (1x1) -> y1 + bn1 sum/sumsq (pass 1 of the two-pass BN).
    # If a stride-1 projection shortcut exists, fuse it into the same kernel
    # (single matmul over the concatenated weight; x read from HBM once).
    ysc = stsc = None
    if has_proj and stride == 1:
        wsc = _pad2(params["wsc"], cp, qp)
        w1sc = jnp.concatenate([w1, wsc], axis=1).astype(jnp.bfloat16)
        y1, ysc, st = _mm_dual_stats(x2d, w1sc, pp, tm=tm_in)
        st1, stsc = st[:, :pp], st[:, pp:]
    else:
        y1, st1 = _mm_stats(x2d, w1.astype(jnp.bfloat16), ones(cp), zeros(cp),
                            fuse_in_bn_relu=False, tm=tm_in)
    s1, o1 = _affine_from_stats(st1, g1, b1, m)

    # conv2 (3x3, stride, pad=1): bn1-apply + relu fused into the read, halo
    # built in VMEM (no jnp.pad HBM round trip), single K=9*C im2col matmul.
    y2_4d, st2 = _conv3x3_stats(y1.reshape(n, h, w, pp), s1, o1, w2,
                                stride=stride)
    s2, o2 = _affine_from_stats(st2, g2, b2, mo)

    # conv3 (1x1): bn2-apply + relu fused into the read -> y3 + bn3 stats
    y3, st3 = _mm_stats(y2_4d.reshape(mo, pp), w3, s2, o2,
                        fuse_in_bn_relu=True, tm=tm_out)
    s3, o3 = _affine_from_stats(st3, g3, b3, mo)

    # shortcut: identity, or conv1x1(stride) + BN
    if has_proj:
        gsc, bsc = _pad1(params["gsc"], qp), _pad1(params["bsc"], qp)
        if stride != 1:
            wsc_bf = _pad2(params["wsc"], cp, qp).astype(jnp.bfloat16)
            ysc4, stsc = _strided_shortcut(x_nhwc, wsc_bf, stride=stride)
            ysc = ysc4.reshape(mo, qp)
        ssc, osc = _affine_from_stats(stsc, gsc, bsc, mo)
        res, sres, bres = ysc, ssc, osc
    else:
        res, sres, bres = x2d, ones(qp), zeros(qp)

    # bn3-apply + bn_sc-apply + residual add + relu, fused, lane-dense output
    out2d = _apply_bn_add_relu(y3, s3, o3, res, sres, bres, tm=tm_out)

    out = out2d.reshape(n, ho, wo, qp)[..., :out_planes]
    return jnp.transpose(out, (0, 3, 1, 2))


# ---------------------------------------------------------------------------
# Pure-JAX f32 reference (sanity check)
# ---------------------------------------------------------------------------
def _bn_ref(y, gamma, beta):
    mean = jnp.mean(y, axis=(0, 1, 2), keepdims=True)
    var = jnp.mean((y - mean) ** 2, axis=(0, 1, 2), keepdims=True)
    return (y - mean) / jnp.sqrt(var + EPS) * gamma + beta


def _conv_ref(x, w_hwio, stride, pad):
    return lax.conv_general_dilated(
        x, w_hwio, window_strides=(stride, stride),
        padding=[(pad, pad), (pad, pad)],
        dimension_numbers=("NHWC", "HWIO", "NHWC"))


def bottleneck_ref(x_nchw, params, *, stride=1):
    x = jnp.transpose(x_nchw, (0, 2, 3, 1)).astype(jnp.float32)
    cin = x.shape[-1]
    planes = params["w1"].shape[1]
    out_planes = 4 * planes
    o = jax.nn.relu(_bn_ref(
        _conv_ref(x, params["w1"].reshape(1, 1, cin, planes), 1, 0),
        params["g1"], params["b1"]))
    o = jax.nn.relu(_bn_ref(
        _conv_ref(o, params["w2"].reshape(3, 3, planes, planes), stride, 1),
        params["g2"], params["b2"]))
    o = _bn_ref(
        _conv_ref(o, params["w3"].reshape(1, 1, planes, out_planes), 1, 0),
        params["g3"], params["b3"])
    if stride != 1 or cin != out_planes:
        s = _bn_ref(
            _conv_ref(x, params["wsc"].reshape(1, 1, cin, out_planes), stride, 0),
            params["gsc"], params["bsc"])
    else:
        s = x
    return jnp.transpose(jax.nn.relu(o + s), (0, 3, 1, 2))


# ---------------------------------------------------------------------------
if __name__ == "__main__":
    # small shapes consistent with Bottleneck(in_planes=4, planes=4, stride=1)
    N, Cin, H, W = 2, 4, 16, 16
    planes, stride = 4, 1
    out_planes = 4 * planes

    key = jax.random.PRNGKey(0)
    ks = jax.random.split(key, 13)
    params = {
        # conv weights stored channels-last: (Cin, Cout) / (9 taps, Cin, Cout)
        "w1": 0.3 * jax.random.normal(ks[0], (Cin, planes), jnp.float32),
        "g1": 1.0 + 0.1 * jax.random.normal(ks[1], (planes,), jnp.float32),
        "b1": 0.1 * jax.random.normal(ks[2], (planes,), jnp.float32),
        "w2": 0.3 * jax.random.normal(ks[3], (9, planes, planes), jnp.float32),
        "g2": 1.0 + 0.1 * jax.random.normal(ks[4], (planes,), jnp.float32),
        "b2": 0.1 * jax.random.normal(ks[5], (planes,), jnp.float32),
        "w3": 0.3 * jax.random.normal(ks[6], (planes, out_planes), jnp.float32),
        "g3": 1.0 + 0.1 * jax.random.normal(ks[7], (out_planes,), jnp.float32),
        "b3": 0.1 * jax.random.normal(ks[8], (out_planes,), jnp.float32),
        "wsc": 0.3 * jax.random.normal(ks[9], (Cin, out_planes), jnp.float32),
        "gsc": 1.0 + 0.1 * jax.random.normal(ks[10], (out_planes,), jnp.float32),
        "bsc": 0.1 * jax.random.normal(ks[11], (out_planes,), jnp.float32),
    }
    x = jax.random.normal(ks[12], (N, Cin, H, W), jnp.float32)

    fwd = jax.jit(lambda xx, pp: bottleneck_forward(xx, pp, stride=stride))
    out = jax.block_until_ready(fwd(x, params))
    assert out.shape == (N, out_planes, H, W), out.shape

    ref = jax.block_until_ready(bottleneck_ref(x, params, stride=stride))
    # kernel uses bf16 MXU operands + bf16 intermediate storage vs the
    # pure-f32 reference -> loose absolute bound on O(1) BN-normalized output
    max_err = float(jnp.max(jnp.abs(out - ref)))
    assert max_err < 1.5e-1, f"mismatch vs reference: max_err={max_err}"

    print("KERNEL_OK")
</pallas_src>

<mosaic_0001>
module attributes {stable_mosaic.version = 11 : i64} {
  func.func @_mm_dual_stats_kernel(%arg0: i32, %arg1: memref<512x128xbf16, #tpu.memory_space<vmem>>, %arg2: memref<128x256xbf16, #tpu.memory_space<vmem>>, %arg3: memref<512x128xbf16, #tpu.memory_space<vmem>>, %arg4: memref<512x128xbf16, #tpu.memory_space<vmem>>, %arg5: memref<2x256xf32, #tpu.memory_space<vmem>>) attributes {dimension_semantics = [#tpu.dimension_semantics<arbitrary>], iteration_bounds = array<i64: 1>, scalar_prefetch = 0 : i64, scratch_operands = 0 : i64, tpu.core_type = #tpu.core_type<tc>, window_params = [{transform_indices = @transform_0, window_bounds = array<i64: 512, 128>}, {pipeline_mode = #tpu.pipeline_mode<synchronous>, transform_indices = @transform_1, window_bounds = array<i64: 128, 256>}, {transform_indices = @transform_2, window_bounds = array<i64: 512, 128>}, {transform_indices = @transform_3, window_bounds = array<i64: 512, 128>}, {pipeline_mode = #tpu.pipeline_mode<synchronous>, transform_indices = @transform_4, window_bounds = array<i64: 2, 256>}]} {
    %c0 = arith.constant 0 : index
    %c0_0 = arith.constant 0 : index
    %0 = vector.load %arg1[%c0, %c0_0] : memref<512x128xbf16, #tpu.memory_space<vmem>>, vector<512x128xbf16>
    %c0_1 = arith.constant 0 : index
    %c0_2 = arith.constant 0 : index
    %1 = vector.load %arg2[%c0_1, %c0_2] : memref<128x256xbf16, #tpu.memory_space<vmem>>, vector<128x256xbf16>
    %cst = arith.constant dense<0.000000e+00> : vector<512x256xf32>
    %2 = tpu.matmul %0, %1, %cst {dimension_numbers = #tpu.dot_dimension_numbers<[1], [0], [0], [1], [0, 0, 1, 1], [], []>} : vector<512x128xbf16>, vector<128x256xbf16>, vector<512x256xf32> -> vector<512x256xf32>
    %3 = vector.extract_strided_slice %2 {offsets = [0, 0], sizes = [512, 128], strides = [1, 1]} : vector<512x256xf32> to vector<512x128xf32>
    %4 = arith.truncf %3 : vector<512x128xf32> to vector<512x128xbf16>
    %c0_3 = arith.constant 0 : index
    %c0_4 = arith.constant 0 : index
    %5 = vector.load %arg3[%c0_3, %c0_4] : memref<512x128xbf16, #tpu.memory_space<vmem>>, vector<512x128xbf16>
    tpu.vector_store %arg3[%c0_3, %c0_4], %4 {strides = array<i32>} : memref<512x128xbf16, #tpu.memory_space<vmem>>, vector<512x128xbf16>,
    %6 = vector.extract_strided_slice %2 {offsets = [0, 128], sizes = [512, 128], strides = [1, 1]} : vector<512x256xf32> to vector<512x128xf32>
    %7 = arith.truncf %6 : vector<512x128xf32> to vector<512x128xbf16>
    %c0_5 = arith.constant 0 : index
    %c0_6 = arith.constant 0 : index
    %8 = vector.load %arg4[%c0_5, %c0_6] : memref<512x128xbf16, #tpu.memory_space<vmem>>, vector<512x128xbf16>
    tpu.vector_store %arg4[%c0_5, %c0_6], %7 {strides = array<i32>} : memref<512x128xbf16, #tpu.memory_space<vmem>>, vector<512x128xbf16>,
    %c0_i32 = arith.constant 0 : i32
    %9 = arith.cmpi eq, %arg0, %c0_i32 : i32
    %10 = arith.extui %9 : i1 to i32
    %c0_i32_7 = arith.constant 0 : i32
    %11 = arith.cmpi ne, %10, %c0_i32_7 : i32
    scf.if %11 {
      %cst_14 = arith.constant 0.000000e+00 : f32
      %21 = vector.broadcast %cst_14 : f32 to vector<2x256xf32>
      %c0_15 = arith.constant 0 : index
      %c0_16 = arith.constant 0 : index
      %22 = vector.load %arg5[%c0_15, %c0_16] : memref<2x256xf32, #tpu.memory_space<vmem>>, vector<2x256xf32>
      tpu.vector_store %arg5[%c0_15, %c0_16], %21 {strides = array<i32>} : memref<2x256xf32, #tpu.memory_space<vmem>>, vector<2x256xf32>,
    } else {
    }
    %c0_8 = arith.constant 0 : index
    %c0_9 = arith.constant 0 : index
    %12 = vector.load %arg5[%c0_8, %c0_9] : memref<2x256xf32, #tpu.memory_space<vmem>>, vector<2x256xf32>
    %cst_10 = arith.constant dense<0.000000e+00> : vector<256xf32>
    %13 = vector.multi_reduction <add>, %2, %cst_10 [0] : vector<512x256xf32> to vector<256xf32>
    %14 = vector.shape_cast %13 : vector<256xf32> to vector<1x256xf32>
    %15 = arith.mulf %2, %2 : vector<512x256xf32>
    %cst_11 = arith.constant dense<0.000000e+00> : vector<256xf32>
    %16 = vector.multi_reduction <add>, %15, %cst_11 [0] : vector<512x256xf32> to vector<256xf32>
    %17 = vector.shape_cast %16 : vector<256xf32> to vector<1x256xf32>
    %18 = tpu.concatenate %14, %17 in 0 : vector<1x256xf32>, vector<1x256xf32> -> vector<2x256xf32>
    %19 = arith.addf %12, %18 : vector<2x256xf32>
    %c0_12 = arith.constant 0 : index
    %c0_13 = arith.constant 0 : index
    %20 = vector.load %arg5[%c0_12, %c0_13] : memref<2x256xf32, #tpu.memory_space<vmem>>, vector<2x256xf32>
    tpu.vector_store %arg5[%c0_12, %c0_13], %19 {strides = array<i32>} : memref<2x256xf32, #tpu.memory_space<vmem>>, vector<2x256xf32>,
    return
  }
  func.func @transform_0(%arg0: i32) -> (i32, i32) {
    %c0_i32 = arith.constant 0 : i32
    %c0_i32_0 = arith.constant 0 : i32
    return %arg0, %c0_i32 : i32, i32
  }
  func.func @transform_1(%arg0: i32) -> (i32, i32) {
    %c0_i32 = arith.constant 0 : i32
    %c0_i32_0 = arith.constant 0 : i32
    %c0_i32_1 = arith.constant 0 : i32
    return %c0_i32, %c0_i32_0 : i32, i32
  }
  func.func @transform_2(%arg0: i32) -> (i32, i32) {
    %c0_i32 = arith.constant 0 : i32
    %c0_i32_0 = arith.constant 0 : i32
    return %arg0, %c0_i32 : i32, i32
  }
  func.func @transform_3(%arg0: i32) -> (i32, i32) {
    %c0_i32 = arith.constant 0 : i32
    %c0_i32_0 = arith.constant 0 : i32
    return %arg0, %c0_i32 : i32, i32
  }
  func.func @transform_4(%arg0: i32) -> (i32, i32) {
    %c0_i32 = arith.constant 0 : i32
    %c0_i32_0 = arith.constant 0 : i32
    %c0_i32_1 = arith.constant 0 : i32
    return %c0_i32, %c0_i32_0 : i32, i32
  }
}

module attributes {stable_mosaic.version = 11 : i64} {
  func.func @_conv3x3_stats_kernel(%arg0: i32, %arg1: memref<1x16x16x128xbf16, #tpu.memory_space<vmem>>, %arg2: memref<1x128xf32, #tpu.memory_space<vmem>>, %arg3: memref<1x128xf32, #tpu.memory_space<vmem>>, %arg4: memref<1152x128xbf16, #tpu.memory_space<vmem>>, %arg5: memref<1x16x16x128xbf16, #tpu.memory_space<vmem>>, %arg6: memref<2x128xf32, #tpu.memory_space<vmem>>, %arg7: memref<18x32x128xf32, #tpu.memory_space<vmem>>) attributes {dimension_semantics = [#tpu.dimension_semantics<arbitrary>], iteration_bounds = array<i64: 2>, scalar_prefetch = 0 : i64, scratch_operands = 1 : i64, tpu.core_type = #tpu.core_type<tc>, window_params = [{transform_indices = @transform_0, window_bounds = array<i64: 1, 16, 16, 128>}, {pipeline_mode = #tpu.pipeline_mode<synchronous>, transform_indices = @transform_1, window_bounds = array<i64: 1, 128>}, {pipeline_mode = #tpu.pipeline_mode<synchronous>, transform_indices = @transform_2, window_bounds = array<i64: 1, 128>}, {pipeline_mode = #tpu.pipeline_mode<synchronous>, transform_indices = @transform_3, window_bounds = array<i64: 1152, 128>}, {transform_indices = @transform_4, window_bounds = array<i64: 1, 16, 16, 128>}, {pipeline_mode = #tpu.pipeline_mode<synchronous>, transform_indices = @transform_5, window_bounds = array<i64: 2, 128>}]} {
    %c0_i32 = arith.constant 0 : i32
    %0 = arith.cmpi eq, %arg0, %c0_i32 : i32
    %1 = arith.extui %0 : i1 to i32
    %c0_i32_0 = arith.constant 0 : i32
    %2 = arith.cmpi ne, %1, %c0_i32_0 : i32
    scf.if %2 {
      %cst_48 = arith.constant 0.000000e+00 : f32
      %54 = vector.broadcast %cst_48 : f32 to vector<18x32x128xf32>
      %c0_49 = arith.constant 0 : index
      %c0_50 = arith.constant 0 : index
      %c0_51 = arith.constant 0 : index
      %55 = vector.load %arg7[%c0_49, %c0_50, %c0_51] : memref<18x32x128xf32, #tpu.memory_space<vmem>>, vector<18x32x128xf32>
      tpu.vector_store %arg7[%c0_49, %c0_50, %c0_51], %54 {strides = array<i32>} : memref<18x32x128xf32, #tpu.memory_space<vmem>>, vector<18x32x128xf32>,
      %cst_52 = arith.constant 0.000000e+00 : f32
      %56 = vector.broadcast %cst_52 : f32 to vector<2x128xf32>
      %c0_53 = arith.constant 0 : index
      %c0_54 = arith.constant 0 : index
      %57 = vector.load %arg6[%c0_53, %c0_54] : memref<2x128xf32, #tpu.memory_space<vmem>>, vector<2x128xf32>
      tpu.vector_store %arg6[%c0_53, %c0_54], %56 {strides = array<i32>} : memref<2x128xf32, #tpu.memory_space<vmem>>, vector<2x128xf32>,
    } else {
    }
    %c0 = arith.constant 0 : index
    %c0_1 = arith.constant 0 : index
    %c0_2 = arith.constant 0 : index
    %c0_3 = arith.constant 0 : index
    %3 = vector.load %arg1[%c0, %c0_1, %c0_2, %c0_3] : memref<1x16x16x128xbf16, #tpu.memory_space<vmem>>, vector<1x16x16x128xbf16>
    %4 = vector.shape_cast %3 : vector<1x16x16x128xbf16> to vector<16x16x128xbf16>
    %c0_4 = arith.constant 0 : index
    %c0_5 = arith.constant 0 : index
    %5 = vector.load %arg2[%c0_4, %c0_5] : memref<1x128xf32, #tpu.memory_space<vmem>>, vector<1x128xf32>
    %6 = arith.extf %4 : vector<16x16x128xbf16> to vector<16x16x128xf32>
    %7 = vector.shape_cast %5 : vector<1x128xf32> to vector<1x1x128xf32>
    %8 = vector.broadcast %7 : vector<1x1x128xf32> to vector<16x16x128xf32>
    %9 = arith.mulf %6, %8 : vector<16x16x128xf32>
    %c0_6 = arith.constant 0 : index
    %c0_7 = arith.constant 0 : index
    %10 = vector.load %arg3[%c0_6, %c0_7] : memref<1x128xf32, #tpu.memory_space<vmem>>, vector<1x128xf32>
    %11 = vector.shape_cast %10 : vector<1x128xf32> to vector<1x1x128xf32>
    %12 = vector.broadcast %11 : vector<1x1x128xf32> to vector<16x16x128xf32>
    %13 = arith.addf %9, %12 : vector<16x16x128xf32>
    %cst = arith.constant 0.000000e+00 : f32
    %14 = vector.broadcast %cst : f32 to vector<16x16x128xf32>
    %15 = arith.maximumf %13, %14 : vector<16x16x128xf32>
    %c1 = arith.constant 1 : index
    %c8 = arith.constant 8 : index
    %c0_8 = arith.constant 0 : index
    %16 = vector.load %arg7[%c1, %c8, %c0_8] : memref<18x32x128xf32, #tpu.memory_space<vmem>>, vector<16x16x128xf32>
    tpu.vector_store %arg7[%c1, %c8, %c0_8], %15 {strides = array<i32>} : memref<18x32x128xf32, #tpu.memory_space<vmem>>, vector<16x16x128xf32>,
    %c0_9 = arith.constant 0 : index
    %c7 = arith.constant 7 : index
    %c0_10 = arith.constant 0 : index
    %17 = vector.load %arg7[%c0_9, %c7, %c0_10] : memref<18x32x128xf32, #tpu.memory_space<vmem>>, vector<16x16x128xf32>
    %18 = arith.truncf %17 : vector<16x16x128xf32> to vector<16x16x128xbf16>
    %c0_11 = arith.constant 0 : index
    %c8_12 = arith.constant 8 : index
    %c0_13 = arith.constant 0 : index
    %19 = vector.load %arg7[%c0_11, %c8_12, %c0_13] : memref<18x32x128xf32, #tpu.memory_space<vmem>>, vector<16x16x128xf32>
    %20 = arith.truncf %19 : vector<16x16x128xf32> to vector<16x16x128xbf16>
    %c0_14 = arith.constant 0 : index
    %c9 = arith.constant 9 : index
    %c0_15 = arith.constant 0 : index
    %21 = vector.load %arg7[%c0_14, %c9, %c0_15] : memref<18x32x128xf32, #tpu.memory_space<vmem>>, vector<16x16x128xf32>
    %22 = arith.truncf %21 : vector<16x16x128xf32> to vector<16x16x128xbf16>
    %c1_16 = arith.constant 1 : index
    %c7_17 = arith.constant 7 : index
    %c0_18 = arith.constant 0 : index
    %23 = vector.load %arg7[%c1_16, %c7_17, %c0_18] : memref<18x32x128xf32, #tpu.memory_space<vmem>>, vector<16x16x128xf32>
    %24 = arith.truncf %23 : vector<16x16x128xf32> to vector<16x16x128xbf16>
    %c1_19 = arith.constant 1 : index
    %c8_20 = arith.constant 8 : index
    %c0_21 = arith.constant 0 : index
    %25 = vector.load %arg7[%c1_19, %c8_20, %c0_21] : memref<18x32x128xf32, #tpu.memory_space<vmem>>, vector<16x16x128xf32>
    %26 = arith.truncf %25 : vector<16x16x128xf32> to vector<16x16x128xbf16>
    %c1_22 = arith.constant 1 : index
    %c9_23 = arith.constant 9 : index
    %c0_24 = arith.constant 0 : index
    %27 = vector.load %arg7[%c1_22, %c9_23, %c0_24] : memref<18x32x128xf32, #tpu.memory_space<vmem>>, vector<16x16x128xf32>
    %28 = arith.truncf %27 : vector<16x16x128xf32> to vector<16x16x128xbf16>
    %c2 = arith.constant 2 : index
    %c7_25 = arith.constant 7 : index
    %c0_26 = arith.constant 0 : index
    %29 = vector.load %arg7[%c2, %c7_25, %c0_26] : memref<18x32x128xf32, #tpu.memory_space<vmem>>, vector<16x16x128xf32>
    %30 = arith.truncf %29 : vector<16x16x128xf32> to vector<16x16x128xbf16>
    %c2_27 = arith.constant 2 : index
    %c8_28 = arith.constant 8 : index
    %c0_29 = arith.constant 0 : index
    %31 = vector.load %arg7[%c2_27, %c8_28, %c0_29] : memref<18x32x128xf32, #tpu.memory_space<vmem>>, vector<16x16x128xf32>
    %32 = arith.truncf %31 : vector<16x16x128xf32> to vector<16x16x128xbf16>
    %c2_30 = arith.constant 2 : index
    %c9_31 = arith.constant 9 : index
    %c0_32 = arith.constant 0 : index
    %33 = vector.load %arg7[%c2_30, %c9_31, %c0_32] : memref<18x32x128xf32, #tpu.memory_space<vmem>>, vector<16x16x128xf32>
    %34 = arith.truncf %33 : vector<16x16x128xf32> to vector<16x16x128xbf16>
    %35 = tpu.concatenate %18, %20, %22, %24, %26, %28, %30, %32, %34 in 2 : vector<16x16x128xbf16>, vector<16x16x128xbf16>, vector<16x16x128xbf16>, vector<16x16x128xbf16>, vector<16x16x128xbf16>, vector<16x16x128xbf16>, vector<16x16x128xbf16>, vector<16x16x128xbf16>, vector<16x16x128xbf16> -> vector<16x16x1152xbf16>
    %36 = vector.shape_cast %35 : vector<16x16x1152xbf16> to vector<256x1152xbf16>
    %c0_33 = arith.constant 0 : index
    %c0_34 = arith.constant 0 : index
    %37 = vector.load %arg4[%c0_33, %c0_34] : memref<1152x128xbf16, #tpu.memory_space<vmem>>, vector<1152x128xbf16>
    %cst_35 = arith.constant dense<0.000000e+00> : vector<256x128xf32>
    %38 = tpu.matmul %36, %37, %cst_35 {dimension_numbers = #tpu.dot_dimension_numbers<[1], [0], [0], [1], [0, 0, 1, 1], [], []>} : vector<256x1152xbf16>, vector<1152x128xbf16>, vector<256x128xf32> -> vector<256x128xf32>
    %39 = vector.shape_cast %38 : vector<256x128xf32> to vector<1x16x16x128xf32>
    %40 = arith.truncf %39 : vector<1x16x16x128xf32> to vector<1x16x16x128xbf16>
    %c0_36 = arith.constant 0 : index
    %c0_37 = arith.constant 0 : index
    %c0_38 = arith.constant 0 : index
    %c0_39 = arith.constant 0 : index
    %41 = vector.load %arg5[%c0_36, %c0_37, %c0_38, %c0_39] : memref<1x16x16x128xbf16, #tpu.memory_space<vmem>>, vector<1x16x16x128xbf16>
    tpu.vector_store %arg5[%c0_36, %c0_37, %c0_38, %c0_39], %40 {strides = array<i32>} : memref<1x16x16x128xbf16, #tpu.memory_space<vmem>>, vector<1x16x16x128xbf16>,
    %c0_i32_40 = arith.constant 0 : i32
    %42 = arith.cmpi eq, %arg0, %c0_i32_40 : i32
    %43 = arith.extui %42 : i1 to i32
    %c0_i32_41 = arith.constant 0 : i32
    %44 = arith.cmpi ne, %43, %c0_i32_41 : i32
    scf.if %44 {
      %cst_48 = arith.constant 0.000000e+00 : f32
      %54 = vector.broadcast %cst_48 : f32 to vector<2x128xf32>
      %c0_49 = arith.constant 0 : index
      %c0_50 = arith.constant 0 : index
      %55 = vector.load %arg6[%c0_49, %c0_50] : memref<2x128xf32, #tpu.memory_space<vmem>>, vector<2x128xf32>
      tpu.vector_store %arg6[%c0_49, %c0_50], %54 {strides = array<i32>} : memref<2x128xf32, #tpu.memory_space<vmem>>, vector<2x128xf32>,
    } else {
    }
    %c0_42 = arith.constant 0 : index
    %c0_43 = arith.constant 0 : index
    %45 = vector.load %arg6[%c0_42, %c0_43] : memref<2x128xf32, #tpu.memory_space<vmem>>, vector<2x128xf32>
    %cst_44 = arith.constant dense<0.000000e+00> : vector<128xf32>
    %46 = vector.multi_reduction <add>, %38, %cst_44 [0] : vector<256x128xf32> to vector<128xf32>
    %47 = vector.shape_cast %46 : vector<128xf32> to vector<1x128xf32>
    %48 = arith.mulf %38, %38 : vector<256x128xf32>
    %cst_45 = arith.constant dense<0.000000e+00> : vector<128xf32>
    %49 = vector.multi_reduction <add>, %48, %cst_45 [0] : vector<256x128xf32> to vector<128xf32>
    %50 = vector.shape_cast %49 : vector<128xf32> to vector<1x128xf32>
    %51 = tpu.concatenate %47, %50 in 0 : vector<1x128xf32>, vector<1x128xf32> -> vector<2x128xf32>
    %52 = arith.addf %45, %51 : vector<2x128xf32>
    %c0_46 = arith.constant 0 : index
    %c0_47 = arith.constant 0 : index
    %53 = vector.load %arg6[%c0_46, %c0_47] : memref<2x128xf32, #tpu.memory_space<vmem>>, vector<2x128xf32>
    tpu.vector_store %arg6[%c0_46, %c0_47], %52 {strides = array<i32>} : memref<2x128xf32, #tpu.memory_space<vmem>>, vector<2x128xf32>,
    return
  }
  func.func @transform_0(%arg0: i32) -> (i32, i32, i32, i32) {
    %c0_i32 = arith.constant 0 : i32
    %c0_i32_0 = arith.constant 0 : i32
    %c0_i32_1 = arith.constant 0 : i32
    %c0_i32_2 = arith.constant 0 : i32
    return %arg0, %c0_i32, %c0_i32_0, %c0_i32_1 : i32, i32, i32, i32
  }
  func.func @transform_1(%arg0: i32) -> (i32, i32) {
    %c0_i32 = arith.constant 0 : i32
    %c0_i32_0 = arith.constant 0 : i32
    %c0_i32_1 = arith.constant 0 : i32
    return %c0_i32, %c0_i32_0 : i32, i32
  }
  func.func @transform_2(%arg0: i32) -> (i32, i32) {
    %c0_i32 = arith.constant 0 : i32
    %c0_i32_0 = arith.constant 0 : i32
    %c0_i32_1 = arith.constant 0 : i32
    return %c0_i32, %c0_i32_0 : i32, i32
  }
  func.func @transform_3(%arg0: i32) -> (i32, i32) {
    %c0_i32 = arith.constant 0 : i32
    %c0_i32_0 = arith.constant 0 : i32
    %c0_i32_1 = arith.constant 0 : i32
    return %c0_i32, %c0_i32_0 : i32, i32
  }
  func.func @transform_4(%arg0: i32) -> (i32, i32, i32, i32) {
    %c0_i32 = arith.constant 0 : i32
    %c0_i32_0 = arith.constant 0 : i32
    %c0_i32_1 = arith.constant 0 : i32
    %c0_i32_2 = arith.constant 0 : i32
    return %arg0, %c0_i32, %c0_i32_0, %c0_i32_1 : i32, i32, i32, i32
  }
  func.func @transform_5(%arg0: i32) -> (i32, i32) {
    %c0_i32 = arith.constant 0 : i32
    %c0_i32_0 = arith.constant 0 : i32
    %c0_i32_1 = arith.constant 0 : i32
    return %c0_i32, %c0_i32_0 : i32, i32
  }
}

module attributes {stable_mosaic.version = 11 : i64} {
  func.func @_apply_bn_add_relu_kernel(%arg0: i32, %arg1: memref<512x128xbf16, #tpu.memory_space<vmem>>, %arg2: memref<1x128xf32, #tpu.memory_space<vmem>>, %arg3: memref<1x128xf32, #tpu.memory_space<vmem>>, %arg4: memref<512x128xbf16, #tpu.memory_space<vmem>>, %arg5: memref<1x128xf32, #tpu.memory_space<vmem>>, %arg6: memref<1x128xf32, #tpu.memory_space<vmem>>, %arg7: memref<512x128xf32, #tpu.memory_space<vmem>>) attributes {dimension_semantics = [#tpu.dimension_semantics<parallel>], iteration_bounds = array<i64: 1>, scalar_prefetch = 0 : i64, scratch_operands = 0 : i64, tpu.core_type = #tpu.core_type<tc>, window_params = [{transform_indices = @transform_0, window_bounds = array<i64: 512, 128>}, {pipeline_mode = #tpu.pipeline_mode<synchronous>, transform_indices = @transform_1, window_bounds = array<i64: 1, 128>}, {pipeline_mode = #tpu.pipeline_mode<synchronous>, transform_indices = @transform_2, window_bounds = array<i64: 1, 128>}, {transform_indices = @transform_3, window_bounds = array<i64: 512, 128>}, {pipeline_mode = #tpu.pipeline_mode<synchronous>, transform_indices = @transform_4, window_bounds = array<i64: 1, 128>}, {pipeline_mode = #tpu.pipeline_mode<synchronous>, transform_indices = @transform_5, window_bounds = array<i64: 1, 128>}, {transform_indices = @transform_6, window_bounds = array<i64: 512, 128>}]} {
    %c0 = arith.constant 0 : index
    %c0_0 = arith.constant 0 : index
    %0 = vector.load %arg1[%c0, %c0_0] : memref<512x128xbf16, #tpu.memory_space<vmem>>, vector<512x128xbf16>
    %c0_1 = arith.constant 0 : index
    %c0_2 = arith.constant 0 : index
    %1 = vector.load %arg2[%c0_1, %c0_2] : memref<1x128xf32, #tpu.memory_space<vmem>>, vector<1x128xf32>
    %2 = arith.extf %0 : vector<512x128xbf16> to vector<512x128xf32>
    %3 = vector.broadcast %1 : vector<1x128xf32> to vector<512x128xf32>
    %4 = arith.mulf %2, %3 : vector<512x128xf32>
    %c0_3 = arith.constant 0 : index
    %c0_4 = arith.constant 0 : index
    %5 = vector.load %arg3[%c0_3, %c0_4] : memref<1x128xf32, #tpu.memory_space<vmem>>, vector<1x128xf32>
    %6 = vector.broadcast %5 : vector<1x128xf32> to vector<512x128xf32>
    %7 = arith.addf %4, %6 : vector<512x128xf32>
    %c0_5 = arith.constant 0 : index
    %c0_6 = arith.constant 0 : index
    %8 = vector.load %arg4[%c0_5, %c0_6] : memref<512x128xbf16, #tpu.memory_space<vmem>>, vector<512x128xbf16>
    %c0_7 = arith.constant 0 : index
    %c0_8 = arith.constant 0 : index
    %9 = vector.load %arg5[%c0_7, %c0_8] : memref<1x128xf32, #tpu.memory_space<vmem>>, vector<1x128xf32>
    %10 = arith.extf %8 : vector<512x128xbf16> to vector<512x128xf32>
    %11 = vector.broadcast %9 : vector<1x128xf32> to vector<512x128xf32>
    %12 = arith.mulf %10, %11 : vector<512x128xf32>
    %13 = arith.addf %7, %12 : vector<512x128xf32>
    %c0_9 = arith.constant 0 : index
    %c0_10 = arith.constant 0 : index
    %14 = vector.load %arg6[%c0_9, %c0_10] : memref<1x128xf32, #tpu.memory_space<vmem>>, vector<1x128xf32>
    %15 = vector.broadcast %14 : vector<1x128xf32> to vector<512x128xf32>
    %16 = arith.addf %13, %15 : vector<512x128xf32>
    %cst = arith.constant 0.000000e+00 : f32
    %17 = vector.broadcast %cst : f32 to vector<512x128xf32>
    %18 = arith.maximumf %16, %17 : vector<512x128xf32>
    %c0_11 = arith.constant 0 : index
    %c0_12 = arith.constant 0 : index
    %19 = vector.load %arg7[%c0_11, %c0_12] : memref<512x128xf32, #tpu.memory_space<vmem>>, vector<512x128xf32>
    tpu.vector_store %arg7[%c0_11, %c0_12], %18 {strides = array<i32>} : memref<512x128xf32, #tpu.memory_space<vmem>>, vector<512x128xf32>,
    return
  }
  func.func @transform_0(%arg0: i32) -> (i32, i32) {
    %c0_i32 = arith.constant 0 : i32
    %c0_i32_0 = arith.constant 0 : i32
    return %arg0, %c0_i32 : i32, i32
  }
  func.func @transform_1(%arg0: i32) -> (i32, i32) {
    %c0_i32 = arith.constant 0 : i32
    %c0_i32_0 = arith.constant 0 : i32
    %c0_i32_1 = arith.constant 0 : i32
    return %c0_i32, %c0_i32_0 : i32, i32
  }
  func.func @transform_2(%arg0: i32) -> (i32, i32) {
    %c0_i32 = arith.constant 0 : i32
    %c0_i32_0 = arith.constant 0 : i32
    %c0_i32_1 = arith.constant 0 : i32
    return %c0_i32, %c0_i32_0 : i32, i32
  }
  func.func @transform_3(%arg0: i32) -> (i32, i32) {
    %c0_i32 = arith.constant 0 : i32
    %c0_i32_0 = arith.constant 0 : i32
    return %arg0, %c0_i32 : i32, i32
  }
  func.func @transform_4(%arg0: i32) -> (i32, i32) {
    %c0_i32 = arith.constant 0 : i32
    %c0_i32_0 = arith.constant 0 : i32
    %c0_i32_1 = arith.constant 0 : i32
    return %c0_i32, %c0_i32_0 : i32, i32
  }
  func.func @transform_5(%arg0: i32) -> (i32, i32) {
    %c0_i32 = arith.constant 0 : i32
    %c0_i32_0 = arith.constant 0 : i32
    %c0_i32_1 = arith.constant 0 : i32
    return %c0_i32, %c0_i32_0 : i32, i32
  }
  func.func @transform_6(%arg0: i32) -> (i32, i32) {
    %c0_i32 = arith.constant 0 : i32
    %c0_i32_0 = arith.constant 0 : i32
    return %arg0, %c0_i32 : i32, i32
  }
}

module attributes {stable_mosaic.version = 11 : i64} {
  func.func @_mm_stats_kernel(%arg0: i32, %arg1: memref<512x128xbf16, #tpu.memory_space<vmem>>, %arg2: memref<1x128xf32, #tpu.memory_space<vmem>>, %arg3: memref<1x128xf32, #tpu.memory_space<vmem>>, %arg4: memref<128x128xbf16, #tpu.memory_space<vmem>>, %arg5: memref<512x128xbf16, #tpu.memory_space<vmem>>, %arg6: memref<2x128xf32, #tpu.memory_space<vmem>>) attributes {dimension_semantics = [#tpu.dimension_semantics<arbitrary>], iteration_bounds = array<i64: 1>, scalar_prefetch = 0 : i64, scratch_operands = 0 : i64, tpu.core_type = #tpu.core_type<tc>, window_params = [{transform_indices = @transform_0, window_bounds = array<i64: 512, 128>}, {pipeline_mode = #tpu.pipeline_mode<synchronous>, transform_indices = @transform_1, window_bounds = array<i64: 1, 128>}, {pipeline_mode = #tpu.pipeline_mode<synchronous>, transform_indices = @transform_2, window_bounds = array<i64: 1, 128>}, {pipeline_mode = #tpu.pipeline_mode<synchronous>, transform_indices = @transform_3, window_bounds = array<i64: 128, 128>}, {transform_indices = @transform_4, window_bounds = array<i64: 512, 128>}, {pipeline_mode = #tpu.pipeline_mode<synchronous>, transform_indices = @transform_5, window_bounds = array<i64: 2, 128>}]} {
    %c0 = arith.constant 0 : index
    %c0_0 = arith.constant 0 : index
    %0 = vector.load %arg1[%c0, %c0_0] : memref<512x128xbf16, #tpu.memory_space<vmem>>, vector<512x128xbf16>
    %c0_1 = arith.constant 0 : index
    %c0_2 = arith.constant 0 : index
    %1 = vector.load %arg2[%c0_1, %c0_2] : memref<1x128xf32, #tpu.memory_space<vmem>>, vector<1x128xf32>
    %2 = arith.extf %0 : vector<512x128xbf16> to vector<512x128xf32>
    %3 = vector.broadcast %1 : vector<1x128xf32> to vector<512x128xf32>
    %4 = arith.mulf %2, %3 : vector<512x128xf32>
    %c0_3 = arith.constant 0 : index
    %c0_4 = arith.constant 0 : index
    %5 = vector.load %arg3[%c0_3, %c0_4] : memref<1x128xf32, #tpu.memory_space<vmem>>, vector<1x128xf32>
    %6 = vector.broadcast %5 : vector<1x128xf32> to vector<512x128xf32>
    %7 = arith.addf %4, %6 : vector<512x128xf32>
    %cst = arith.constant 0.000000e+00 : f32
    %8 = vector.broadcast %cst : f32 to vector<512x128xf32>
    %9 = arith.maximumf %7, %8 : vector<512x128xf32>
    %10 = arith.truncf %9 : vector<512x128xf32> to vector<512x128xbf16>
    %c0_5 = arith.constant 0 : index
    %c0_6 = arith.constant 0 : index
    %11 = vector.load %arg4[%c0_5, %c0_6] : memref<128x128xbf16, #tpu.memory_space<vmem>>, vector<128x128xbf16>
    %cst_7 = arith.constant dense<0.000000e+00> : vector<512x128xf32>
    %12 = tpu.matmul %10, %11, %cst_7 {dimension_numbers = #tpu.dot_dimension_numbers<[1], [0], [0], [1], [0, 0, 1, 1], [], []>} : vector<512x128xbf16>, vector<128x128xbf16>, vector<512x128xf32> -> vector<512x128xf32>
    %13 = arith.truncf %12 : vector<512x128xf32> to vector<512x128xbf16>
    %c0_8 = arith.constant 0 : index
    %c0_9 = arith.constant 0 : index
    %14 = vector.load %arg5[%c0_8, %c0_9] : memref<512x128xbf16, #tpu.memory_space<vmem>>, vector<512x128xbf16>
    tpu.vector_store %arg5[%c0_8, %c0_9], %13 {strides = array<i32>} : memref<512x128xbf16, #tpu.memory_space<vmem>>, vector<512x128xbf16>,
    %c0_i32 = arith.constant 0 : i32
    %15 = arith.cmpi eq, %arg0, %c0_i32 : i32
    %16 = arith.extui %15 : i1 to i32
    %c0_i32_10 = arith.constant 0 : i32
    %17 = arith.cmpi ne, %16, %c0_i32_10 : i32
    scf.if %17 {
      %cst_17 = arith.constant 0.000000e+00 : f32
      %27 = vector.broadcast %cst_17 : f32 to vector<2x128xf32>
      %c0_18 = arith.constant 0 : index
      %c0_19 = arith.constant 0 : index
      %28 = vector.load %arg6[%c0_18, %c0_19] : memref<2x128xf32, #tpu.memory_space<vmem>>, vector<2x128xf32>
      tpu.vector_store %arg6[%c0_18, %c0_19], %27 {strides = array<i32>} : memref<2x128xf32, #tpu.memory_space<vmem>>, vector<2x128xf32>,
    } else {
    }
    %c0_11 = arith.constant 0 : index
    %c0_12 = arith.constant 0 : index
    %18 = vector.load %arg6[%c0_11, %c0_12] : memref<2x128xf32, #tpu.memory_space<vmem>>, vector<2x128xf32>
    %cst_13 = arith.constant dense<0.000000e+00> : vector<128xf32>
    %19 = vector.multi_reduction <add>, %12, %cst_13 [0] : vector<512x128xf32> to vector<128xf32>
    %20 = vector.shape_cast %19 : vector<128xf32> to vector<1x128xf32>
    %21 = arith.mulf %12, %12 : vector<512x128xf32>
    %cst_14 = arith.constant dense<0.000000e+00> : vector<128xf32>
    %22 = vector.multi_reduction <add>, %21, %cst_14 [0] : vector<512x128xf32> to vector<128xf32>
    %23 = vector.shape_cast %22 : vector<128xf32> to vector<1x128xf32>
    %24 = tpu.concatenate %20, %23 in 0 : vector<1x128xf32>, vector<1x128xf32> -> vector<2x128xf32>
    %25 = arith.addf %18, %24 : vector<2x128xf32>
    %c0_15 = arith.constant 0 : index
    %c0_16 = arith.constant 0 : index
    %26 = vector.load %arg6[%c0_15, %c0_16] : memref<2x128xf32, #tpu.memory_space<vmem>>, vector<2x128xf32>
    tpu.vector_store %arg6[%c0_15, %c0_16], %25 {strides = array<i32>} : memref<2x128xf32, #tpu.memory_space<vmem>>, vector<2x128xf32>,
    return
  }
  func.func @transform_0(%arg0: i32) -> (i32, i32) {
    %c0_i32 = arith.constant 0 : i32
    %c0_i32_0 = arith.constant 0 : i32
    return %arg0, %c0_i32 : i32, i32
  }
  func.func @transform_1(%arg0: i32) -> (i32, i32) {
    %c0_i32 = arith.constant 0 : i32
    %c0_i32_0 = arith.constant 0 : i32
    %c0_i32_1 = arith.constant 0 : i32
    return %c0_i32, %c0_i32_0 : i32, i32
  }
  func.func @transform_2(%arg0: i32) -> (i32, i32) {
    %c0_i32 = arith.constant 0 : i32
    %c0_i32_0 = arith.constant 0 : i32
    %c0_i32_1 = arith.constant 0 : i32
    return %c0_i32, %c0_i32_0 : i32, i32
  }
  func.func @transform_3(%arg0: i32) -> (i32, i32) {
    %c0_i32 = arith.constant 0 : i32
    %c0_i32_0 = arith.constant 0 : i32
    %c0_i32_1 = arith.constant 0 : i32
    return %c0_i32, %c0_i32_0 : i32, i32
  }
  func.func @transform_4(%arg0: i32) -> (i32, i32) {
    %c0_i32 = arith.constant 0 : i32
    %c0_i32_0 = arith.constant 0 : i32
    return %arg0, %c0_i32 : i32, i32
  }
  func.func @transform_5(%arg0: i32) -> (i32, i32) {
    %c0_i32 = arith.constant 0 : i32
    %c0_i32_0 = arith.constant 0 : i32
    %c0_i32_1 = arith.constant 0 : i32
    return %c0_i32, %c0_i32_0 : i32, i32
  }
}

</mosaic_0001>

<bundles_post_ra>
// kernel: _lambda_.4
= control target key start
LH: loop header
LB: loop body
LE: loop exit
PB: predicated region body
PF: predicated region fallthrough
CT: control target
= control target key end

     0   :  { %v2559_v1 = vmov 0   ;;  %vm1770_vm0 = vcmask 1040384   ;;  %s3348_s1 = inlined_call_operand.vmem [shape: bf16[128,256], index: 1, kind: input, shape index: {}]   ;;  %s3349_s0 = inlined_call_operand.vmem [shape: bf16[512,128], index: 0, kind: input, shape index: {}]   ;;  %s3350_s2 = inlined_call_operand.vmem [shape: bf16[512,128], index: 2, kind: output, shape index: {0}]   ;;  %s3351_s3 = inlined_call_operand.vmem [shape: bf16[512,128], index: 3, kind: output, shape index: {1}]   ;;  %s3352_s4 = inlined_call_operand.vmem [shape: f32[2,256], index: 4, kind: output, shape index: {2}]  }
   0x1   :  { %v2503_v0 = vld [vmem:[%s3348_s1 + $0x4] ss:$8 sps:$4 sm:$0xff]   ;;  %399 = vmatprep.mubr.bf16.mxu0 %v2559_v1  ;;  %559 = vmatprep.mubr.bf16.mxu1 %v2559_v1  ;;  %v2505_v2 = vld [vmem:[%s3348_s1] ss:$8 sps:$4 sm:$0xff]   ;;  %v2506_v3 = vld [vmem:[%s3348_s1 + $0x14] ss:$8 sps:$4 sm:$0xff]  }
   0x2   :  { %367 = vmatprep.subr.bf16.mxu0 %v2503_v0  ;;  %2484 = vmatprep.subr.bf16.mxu1 %v2503_v0  ;;  %v2508_v4 = vld [vmem:[%s3348_s1 + $0x10] ss:$8 sps:$4 sm:$0xff]   ;;  %v2509_v5 = vld [vmem:[%s3348_s1 + $0x24] ss:$8 sps:$4 sm:$0xff]   ;;  %v2511_v6 = vld [vmem:[%s3348_s1 + $0x20] ss:$8 sps:$4 sm:$0xff]  }
   0x3   :  { %368 = vmatpush1.bf16.msra.mxu0 %v2505_v2  ;;  %2492 = vmatpush1.bf16.msra.mxu1 %v2505_v2  ;;  %v2512_v7 = vld [vmem:[%s3348_s1 + $0x34] ss:$8 sps:$4 sm:$0xff]   ;;  %v2514_v8 = vld [vmem:[%s3348_s1 + $0x30] ss:$8 sps:$4 sm:$0xff]   ;;  %v2515_v9 = vld [vmem:[%s3348_s1 + $0x44] ss:$8 sps:$4 sm:$0xff]  }
   0x4   :  { %369 = vmatprep.subr.bf16.mxu0 %v2506_v3  ;;  %2485 = vmatprep.subr.bf16.mxu1 %v2506_v3  ;;  %v2517_v10 = vld [vmem:[%s3348_s1 + $0x40] ss:$8 sps:$4 sm:$0xff]   ;;  %v2518_v11 = vld [vmem:[%s3348_s1 + $0x54] ss:$8 sps:$4 sm:$0xff]   ;;  %v2520_v12 = vld [vmem:[%s3348_s1 + $0x50] ss:$8 sps:$4 sm:$0xff]  }
   0x5   :  { %v2521_v13 = vld [vmem:[%s3348_s1 + $0x64] ss:$8 sps:$4 sm:$0xff]   ;;  %v2523_v14 = vld [vmem:[%s3348_s1 + $0x60] ss:$8 sps:$4 sm:$0xff]   ;;  %v2524_v15 = vld [vmem:[%s3348_s1 + $0x74] ss:$8 sps:$4 sm:$0xff]  }
   0x6   :  { %v2526_v16 = vld [vmem:[%s3348_s1 + $0x70] ss:$8 sps:$4 sm:$0xff]   ;;  %v2527_v17 = vld [vmem:[%s3349_s0] sm:$0xff]   ;;  %v2528_v19 = vld [vmem:[%s3349_s0 + $0x8] sm:$0xff]  }
   0x7   :  { %370 = vmatpush1.bf16.msra.mxu0 %v2508_v4  ;;  %2493 = vmatpush1.bf16.msra.mxu1 %v2508_v4  ;;  %v2535_v18 = vld [vmem:[%s3349_s0 + $0x80] sm:$0xff]   ;;  %v2537_v20 = vld [vmem:[%s3349_s0 + $0x88] sm:$0xff]   ;;  %v2529_v21 = vld [vmem:[%s3349_s0 + $0x10] sm:$0xff]  }
   0x8   :  { %371 = vmatprep.subr.bf16.mxu0 %v2509_v5  ;;  %2486 = vmatprep.subr.bf16.mxu1 %v2509_v5  ;;  %v2539_v22 = vld [vmem:[%s3349_s0 + $0x90] sm:$0xff]   ;;  %v2530_v23 = vld [vmem:[%s3349_s0 + $0x18] sm:$0xff]   ;;  %v2531_v25 = vld [vmem:[%s3349_s0 + $0x20] sm:$0xff]  }
   0x9   :  { %v2541_v24 = vld [vmem:[%s3349_s0 + $0x98] sm:$0xff]   ;;  %v2543_v26 = vld [vmem:[%s3349_s0 + $0xa0] sm:$0xff]   ;;  %v2532_v27 = vld [vmem:[%s3349_s0 + $0x28] sm:$0xff]  }
   0xa   :  { %v2545_v28 = vld [vmem:[%s3349_s0 + $0xa8] sm:$0xff]   ;;  %v2533_v29 = vld [vmem:[%s3349_s0 + $0x30] sm:$0xff]   ;;  %v2534_v31 = vld [vmem:[%s3349_s0 + $0x38] sm:$0xff]  }
   0xb   :  { %372 = vmatpush1.bf16.msra.mxu0 %v2511_v6  ;;  %2494 = vmatpush1.bf16.msra.mxu1 %v2511_v6  ;;  %v2547_v30 = vld [vmem:[%s3349_s0 + $0xb0] sm:$0xff]   ;;  %v2549_v32 = vld [vmem:[%s3349_s0 + $0xb8] sm:$0xff]   ;;  %v2536_v33 = vld [vmem:[%s3349_s0 + $0x40] sm:$0xff]  }
   0xc   :  { %373 = vmatprep.subr.bf16.mxu0 %v2512_v7  ;;  %2487 = vmatprep.subr.bf16.mxu1 %v2512_v7  ;;  %v2551_v34 = vld [vmem:[%s3349_s0 + $0xc0] sm:$0xff]   ;;  %v2538_v35 = vld [vmem:[%s3349_s0 + $0x48] sm:$0xff]   ;;  %v2540_v37 = vld [vmem:[%s3349_s0 + $0x50] sm:$0xff]  }
   0xd   :  { %v2552_v36 = vld [vmem:[%s3349_s0 + $0xc8] sm:$0xff]   ;;  %v2553_v38 = vld [vmem:[%s3349_s0 + $0xd0] sm:$0xff]   ;;  %v2542_v39 = vld [vmem:[%s3349_s0 + $0x58] sm:$0xff]  }
   0xe   :  { %v2554_v40 = vld [vmem:[%s3349_s0 + $0xd8] sm:$0xff]   ;;  %v2544_v41 = vld [vmem:[%s3349_s0 + $0x60] sm:$0xff]   ;;  %v2546_v43 = vld [vmem:[%s3349_s0 + $0x68] sm:$0xff]  }
   0xf   :  { %374 = vmatpush1.bf16.msra.mxu0 %v2514_v8  ;;  %2495 = vmatpush1.bf16.msra.mxu1 %v2514_v8  ;;  %v2555_v42 = vld [vmem:[%s3349_s0 + $0xe0] sm:$0xff]   ;;  %v2556_v44 = vld [vmem:[%s3349_s0 + $0xe8] sm:$0xff]   ;;  %v2548_v45 = vld [vmem:[%s3349_s0 + $0x70] sm:$0xff]  }
  0x10   :  { %375 = vmatprep.subr.bf16.mxu0 %v2515_v9  ;;  %2488 = vmatprep.subr.bf16.mxu1 %v2515_v9  ;;  %v2557_v46 = vld [vmem:[%s3349_s0 + $0xf0] sm:$0xff]   ;;  %v2550_v47 = vld [vmem:[%s3349_s0 + $0x78] sm:$0xff]  }
  0x11   :  { %v2558_v48 = vld [vmem:[%s3349_s0 + $0xf8] sm:$0xff]  }
  0x13   :  { %376 = vmatpush1.bf16.msra.mxu0 %v2517_v10  ;;  %2496 = vmatpush1.bf16.msra.mxu1 %v2517_v10 }
  0x14   :  { %377 = vmatprep.subr.bf16.mxu0 %v2518_v11  ;;  %2489 = vmatprep.subr.bf16.mxu1 %v2518_v11 }
  0x17   :  { %378 = vmatpush1.bf16.msra.mxu0 %v2520_v12  ;;  %2497 = vmatpush1.bf16.msra.mxu1 %v2520_v12 }
  0x18   :  { %379 = vmatprep.subr.bf16.mxu0 %v2521_v13  ;;  %2490 = vmatprep.subr.bf16.mxu1 %v2521_v13 }
  0x1b   :  { %380 = vmatpush1.bf16.msra.mxu0 %v2523_v14  ;;  %2498 = vmatpush1.bf16.msra.mxu1 %v2523_v14 }
  0x1c   :  { %381 = vmatprep.subr.bf16.mxu0 %v2524_v15  ;;  %2491 = vmatprep.subr.bf16.mxu1 %v2524_v15 }
  0x1f   :  { %382 = vmatpush1.bf16.msra.mxu0 %v2526_v16  ;;  %2499 = vmatpush1.bf16.msra.mxu1 %v2526_v16 }
  0x22   :  { %400 = vmatmul.mubr.bf16.vlgmr.msra.gmra.mrb[0].mxu0 %v2527_v17  ;;  %560 = vmatmul.mubr.bf16.vlgmr.msra.gmra.mrb[0].mxu1 %v2535_v18 }
  0x23   :  { %409 = vmatprep.mubr.bf16.mxu0 %v2559_v1  ;;  %569 = vmatprep.mubr.bf16.mxu1 %v2559_v1 }
  0x2a   :  { %410 = vmatmul.mubr.bf16.gmra.mrb[4].mxu0 %v2528_v19  ;;  %570 = vmatmul.mubr.bf16.gmra.mrb[4].mxu1 %v2537_v20 }
  0x2b   :  { %419 = vmatprep.mubr.bf16.mxu0 %v2559_v1  ;;  %579 = vmatprep.mubr.bf16.mxu1 %v2559_v1 }
  0x32   :  { %420 = vmatmul.mubr.bf16.gmra.mrb[8].mxu0 %v2529_v21  ;;  %580 = vmatmul.mubr.bf16.gmra.mrb[8].mxu1 %v2539_v22 }
  0x33   :  { %429 = vmatprep.mubr.bf16.mxu0 %v2559_v1  ;;  %589 = vmatprep.mubr.bf16.mxu1 %v2559_v1 }
  0x3a   :  { %430 = vmatmul.mubr.bf16.gmra.mrb[12].mxu0 %v2530_v23  ;;  %590 = vmatmul.mubr.bf16.gmra.mrb[12].mxu1 %v2541_v24 }
  0x3b   :  { %439 = vmatprep.mubr.bf16.mxu0 %v2559_v1  ;;  %599 = vmatprep.mubr.bf16.mxu1 %v2559_v1 }
  0x42   :  { %440 = vmatmul.mubr.bf16.gmra.mrb[16].mxu0 %v2531_v25  ;;  %600 = vmatmul.mubr.bf16.gmra.mrb[16].mxu1 %v2543_v26 }
  0x43   :  { %449 = vmatprep.mubr.bf16.mxu0 %v2559_v1  ;;  %609 = vmatprep.mubr.bf16.mxu1 %v2559_v1 }
  0x4a   :  { %450 = vmatmul.mubr.bf16.gmra.mrb[20].mxu0 %v2532_v27  ;;  %610 = vmatmul.mubr.bf16.gmra.mrb[20].mxu1 %v2545_v28 }
  0x4b   :  { %459 = vmatprep.mubr.bf16.mxu0 %v2559_v1  ;;  %619 = vmatprep.mubr.bf16.mxu1 %v2559_v1 }
  0x52   :  { %460 = vmatmul.mubr.bf16.gmra.mrb[24].mxu0 %v2533_v29  ;;  %620 = vmatmul.mubr.bf16.gmra.mrb[24].mxu1 %v2547_v30 }
  0x53   :  { %469 = vmatprep.mubr.bf16.mxu0 %v2559_v1  ;;  %629 = vmatprep.mubr.bf16.mxu1 %v2559_v1 }
  0x5a   :  { %470 = vmatmul.mubr.bf16.gmra.mrb[28].mxu0 %v2534_v31  ;;  %630 = vmatmul.mubr.bf16.gmra.mrb[28].mxu1 %v2549_v32 }
  0x5b   :  { %479 = vmatprep.mubr.bf16.mxu0 %v2559_v1  ;;  %639 = vmatprep.mubr.bf16.mxu1 %v2559_v1 }
  0x62   :  { %480 = vmatmul.mubr.bf16.gmra.mrb[32].mxu0 %v2536_v33  ;;  %640 = vmatmul.mubr.bf16.gmra.mrb[32].mxu1 %v2551_v34 }
  0x63   :  { %489 = vmatprep.mubr.bf16.mxu0 %v2559_v1  ;;  %649 = vmatprep.mubr.bf16.mxu1 %v2559_v1 }
  0x6a   :  { %490 = vmatmul.mubr.bf16.gmra.mrb[36].mxu0 %v2538_v35  ;;  %650 = vmatmul.mubr.bf16.gmra.mrb[36].mxu1 %v2552_v36 }
  0x6b   :  { %499 = vmatprep.mubr.bf16.mxu0 %v2559_v1  ;;  %659 = vmatprep.mubr.bf16.mxu1 %v2559_v1 }
  0x72   :  { %500 = vmatmul.mubr.bf16.gmra.mrb[40].mxu0 %v2540_v37  ;;  %660 = vmatmul.mubr.bf16.gmra.mrb[40].mxu1 %v2553_v38 }
  0x73   :  { %509 = vmatprep.mubr.bf16.mxu0 %v2559_v1  ;;  %669 = vmatprep.mubr.bf16.mxu1 %v2559_v1 }
  0x7a   :  { %510 = vmatmul.mubr.bf16.gmra.mrb[44].mxu0 %v2542_v39  ;;  %670 = vmatmul.mubr.bf16.gmra.mrb[44].mxu1 %v2554_v40 }
  0x7b   :  { %519 = vmatprep.mubr.bf16.mxu0 %v2559_v1  ;;  %679 = vmatprep.mubr.bf16.mxu1 %v2559_v1 }
  0x82   :  { %520 = vmatmul.mubr.bf16.gmra.mrb[48].mxu0 %v2544_v41  ;;  %680 = vmatmul.mubr.bf16.gmra.mrb[48].mxu1 %v2555_v42 }
  0x83   :  { %529 = vmatprep.mubr.bf16.mxu0 %v2559_v1  ;;  %689 = vmatprep.mubr.bf16.mxu1 %v2559_v1 }
  0x8a   :  { %530 = vmatmul.mubr.bf16.gmra.mrb[52].mxu0 %v2546_v43  ;;  %690 = vmatmul.mubr.bf16.gmra.mrb[52].mxu1 %v2556_v44 }
  0x8b   :  { %539 = vmatprep.mubr.bf16.mxu0 %v2559_v1  ;;  %699 = vmatprep.mubr.bf16.mxu1 %v2559_v1 }
  0x92   :  { %540 = vmatmul.mubr.bf16.gmra.mrb[56].mxu0 %v2548_v45  ;;  %700 = vmatmul.mubr.bf16.gmra.mrb[56].mxu1 %v2557_v46 }
  0x93   :  { %549 = vmatprep.mubr.bf16.mxu0 %v2559_v1  ;;  %709 = vmatprep.mubr.bf16.mxu1 %v2559_v1 }
  0x9a   :  { %550 = vmatmul.mubr.bf16.gmra.mrb[60].mxu0 %v2550_v47  ;;  %710 = vmatmul.mubr.bf16.gmra.mrb[60].mxu1 %v2558_v48 }
  0xf5   :  { %v401_v49 = vpop.f32.mrb[0].mxu0  ;;  %v2763_v50 = vpop.f32.mrb[0].mxu1 }
  0xf6   :  { %v403_v51 = vpop.f32.mrb[1].mxu0  ;;  %v2765_v52 = vpop.f32.mrb[1].mxu1  ;;  %v1504_v53 = vmul.f32 %v401_v49, %v401_v49 }
  0xf7   :  { %v405_v54 = vpop.f32.mrb[2].mxu0  ;;  %v2767_v55 = vpop.f32.mrb[2].mxu1  ;;  %v1505_v62 = vmul.f32 %v403_v51, %v403_v51 }
  0xf8   :  { %v2105_v56 = vpack.c.bf16 %v405_v54, %v401_v49  ;;  %v1366_v57 = vadd.f32 %v405_v54, %v401_v49  ;;  %v1506_v58 = vmul.f32 %v405_v54, %v405_v54  ;;  %v407_v59 = vpop.f32.mrb[3].mxu0  ;;  %v2185_v60 = vpack.c.bf16 %v2767_v55, %v2763_v50  ;;  %v2771_v61 = vpop.f32.mrb[3].mxu1 }
  0xf9   :  { %v2265_v63 = vpack.c.bf16 %v407_v59, %v403_v51  ;;  %v1435_v0 = vadd.f32 %v407_v59, %v403_v51  ;;  %v1507_v1 = vmul.f32 %v407_v59, %v407_v59  ;;  %v2345_v3 = vpack.c.bf16 %v2771_v61, %v2765_v52 }
  0xfa   :  { %2106 = vst [vmem:[%s3350_s2] sm:$0xff] %v2105_v56   ;;  %v1632_v2 = vadd.f32 %v1506_v58, %v1504_v53  ;;  %2437 = vst [vmem:[%s3350_s2 + $0x80] sm:$0xff] %v2185_v60  }
  0xfb   :  { %2266 = vst [vmem:[%s3351_s3] sm:$0xff] %v2265_v63   ;;  %v1701_v4 = vadd.f32 %v1507_v1, %v1505_v62  ;;  %2468 = vst [vmem:[%s3351_s3 + $0x80] sm:$0xff] %v2345_v3  }
  0xfd   :  { %v411_v5 = vpop.f32.mrb[4].mxu0  ;;  %v2787_v6 = vpop.f32.mrb[4].mxu1 }
  0xfe   :  { %v1367_v7 = vadd.f32 %v1366_v57, %v411_v5  ;;  %v1508_v8 = vmul.f32 %v411_v5, %v411_v5  ;;  %v413_v9 = vpop.f32.mrb[5].mxu0  ;;  %v2789_v10 = vpop.f32.mrb[5].mxu1 }
  0xff   :  { %v1436_v11 = vadd.f32 %v1435_v0, %v413_v9  ;;  %v1509_v12 = vmul.f32 %v413_v9, %v413_v9  ;;  %v415_v13 = vpop.f32.mrb[6].mxu0  ;;  %v2791_v14 = vpop.f32.mrb[6].mxu1 }
 0x100   :  { %v1633_v15 = vadd.f32 %v1632_v2, %v1508_v8  ;;  %v2110_v16 = vpack.c.bf16 %v415_v13, %v411_v5  ;;  %v1368_v17 = vadd.f32 %v1367_v7, %v415_v13  ;;  %v1510_v18 = vmul.f32 %v415_v13, %v415_v13  ;;  %v417_v19 = vpop.f32.mrb[7].mxu0  ;;  %v2793_v20 = vpop.f32.mrb[7].mxu1 }
 0x101   :  { %v1702_v21 = vadd.f32 %v1701_v4, %v1509_v12  ;;  %v2270_v22 = vpack.c.bf16 %v417_v19, %v413_v9  ;;  %v1437_v23 = vadd.f32 %v1436_v11, %v417_v19  ;;  %v1511_v24 = vmul.f32 %v417_v19, %v417_v19 }
 0x102   :  { %2422 = vst [vmem:[%s3350_s2 + $0x8] sm:$0xff] %v2110_v16   ;;  %v1634_v25 = vadd.f32 %v1633_v15, %v1510_v18  ;;  %v2190_v26 = vpack.c.bf16 %v2791_v14, %v2787_v6  ;;  %v2350_v27 = vpack.c.bf16 %v2793_v20, %v2789_v10 }
 0x103   :  { %2453 = vst [vmem:[%s3351_s3 + $0x8] sm:$0xff] %v2270_v22   ;;  %v1703_v28 = vadd.f32 %v1702_v21, %v1511_v24 }
 0x104   :  { %2438 = vst [vmem:[%s3350_s2 + $0x88] sm:$0xff] %v2190_v26   ;;  %2469 = vst [vmem:[%s3351_s3 + $0x88] sm:$0xff] %v2350_v27  }
 0x105   :  { %v421_v29 = vpop.f32.mrb[8].mxu0  ;;  %v2811_v30 = vpop.f32.mrb[8].mxu1 }
 0x106   :  { %v1369_v31 = vadd.f32 %v1368_v17, %v421_v29  ;;  %v1512_v32 = vmul.f32 %v421_v29, %v421_v29  ;;  %v423_v33 = vpop.f32.mrb[9].mxu0  ;;  %v2813_v34 = vpop.f32.mrb[9].mxu1 }
 0x107   :  { %v1438_v35 = vadd.f32 %v1437_v23, %v423_v33  ;;  %v1513_v36 = vmul.f32 %v423_v33, %v423_v33  ;;  %v425_v37 = vpop.f32.mrb[10].mxu0  ;;  %v2815_v38 = vpop.f32.mrb[10].mxu1 }
 0x108   :  { %v1635_v39 = vadd.f32 %v1634_v25, %v1512_v32  ;;  %v2115_v40 = vpack.c.bf16 %v425_v37, %v421_v29  ;;  %v1370_v41 = vadd.f32 %v1369_v31, %v425_v37  ;;  %v1514_v42 = vmul.f32 %v425_v37, %v425_v37  ;;  %v427_v43 = vpop.f32.mrb[11].mxu0  ;;  %v2817_v44 = vpop.f32.mrb[11].mxu1 }
 0x109   :  { %v1704_v45 = vadd.f32 %v1703_v28, %v1513_v36  ;;  %v2275_v46 = vpack.c.bf16 %v427_v43, %v423_v33  ;;  %v1439_v47 = vadd.f32 %v1438_v35, %v427_v43  ;;  %v1515_v48 = vmul.f32 %v427_v43, %v427_v43 }
 0x10a   :  { %2423 = vst [vmem:[%s3350_s2 + $0x10] sm:$0xff] %v2115_v40   ;;  %v1636_v49 = vadd.f32 %v1635_v39, %v1514_v42  ;;  %v2195_v51 = vpack.c.bf16 %v2815_v38, %v2811_v30  ;;  %v2355_v53 = vpack.c.bf16 %v2817_v44, %v2813_v34 }
 0x10b   :  { %2454 = vst [vmem:[%s3351_s3 + $0x10] sm:$0xff] %v2275_v46   ;;  %v1705_v54 = vadd.f32 %v1704_v45, %v1515_v48 }
 0x10c   :  { %2439 = vst [vmem:[%s3350_s2 + $0x90] sm:$0xff] %v2195_v51   ;;  %2470 = vst [vmem:[%s3351_s3 + $0x90] sm:$0xff] %v2355_v53  }
 0x10d   :  { %v431_v56 = vpop.f32.mrb[12].mxu0  ;;  %v2835_v57 = vpop.f32.mrb[12].mxu1 }
 0x10e   :  { %v1371_v58 = vadd.f32 %v1370_v41, %v431_v56  ;;  %v1516_v59 = vmul.f32 %v431_v56, %v431_v56  ;;  %v433_v60 = vpop.f32.mrb[13].mxu0  ;;  %v2837_v62 = vpop.f32.mrb[13].mxu1 }
 0x10f   :  { %v1440_v63 = vadd.f32 %v1439_v47, %v433_v60  ;;  %v1517_v0 = vmul.f32 %v433_v60, %v433_v60  ;;  %v435_v1 = vpop.f32.mrb[14].mxu0  ;;  %v2839_v2 = vpop.f32.mrb[14].mxu1 }
 0x110   :  { %v1637_v3 = vadd.f32 %v1636_v49, %v1516_v59  ;;  %v2120_v4 = vpack.c.bf16 %v435_v1, %v431_v56  ;;  %v1372_v5 = vadd.f32 %v1371_v58, %v435_v1  ;;  %v1518_v7 = vmul.f32 %v435_v1, %v435_v1  ;;  %v437_v8 = vpop.f32.mrb[15].mxu0  ;;  %v2841_v9 = vpop.f32.mrb[15].mxu1 }
 0x111   :  { %v1706_v11 = vadd.f32 %v1705_v54, %v1517_v0  ;;  %v2280_v12 = vpack.c.bf16 %v437_v8, %v433_v60  ;;  %v1441_v13 = vadd.f32 %v1440_v63, %v437_v8  ;;  %v1519_v15 = vmul.f32 %v437_v8, %v437_v8 }
 0x112   :  { %2424 = vst [vmem:[%s3350_s2 + $0x18] sm:$0xff] %v2120_v4   ;;  %v1638_v16 = vadd.f32 %v1637_v3, %v1518_v7  ;;  %v2200_v17 = vpack.c.bf16 %v2839_v2, %v2835_v57  ;;  %v2360_v18 = vpack.c.bf16 %v2841_v9, %v2837_v62 }
 0x113   :  { %2455 = vst [vmem:[%s3351_s3 + $0x18] sm:$0xff] %v2280_v12   ;;  %v1707_v19 = vadd.f32 %v1706_v11, %v1519_v15 }
 0x114   :  { %2440 = vst [vmem:[%s3350_s2 + $0x98] sm:$0xff] %v2200_v17   ;;  %2471 = vst [vmem:[%s3351_s3 + $0x98] sm:$0xff] %v2360_v18  }
 0x115   :  { %v441_v21 = vpop.f32.mrb[16].mxu0  ;;  %v2859_v22 = vpop.f32.mrb[16].mxu1 }
 0x116   :  { %v1373_v23 = vadd.f32 %v1372_v5, %v441_v21  ;;  %v1520_v24 = vmul.f32 %v441_v21, %v441_v21  ;;  %v443_v25 = vpop.f32.mrb[17].mxu0  ;;  %v2861_v26 = vpop.f32.mrb[17].mxu1 }
 0x117   :  { %v1442_v27 = vadd.f32 %v1441_v13, %v443_v25  ;;  %v1521_v28 = vmul.f32 %v443_v25, %v443_v25  ;;  %v445_v29 = vpop.f32.mrb[18].mxu0  ;;  %v2863_v31 = vpop.f32.mrb[18].mxu1 }
 0x118   :  { %v1639_v32 = vadd.f32 %v1638_v16, %v1520_v24  ;;  %v2125_v33 = vpack.c.bf16 %v445_v29, %v441_v21  ;;  %v1374_v35 = vadd.f32 %v1373_v23, %v445_v29  ;;  %v1522_v36 = vmul.f32 %v445_v29, %v445_v29  ;;  %v447_v37 = vpop.f32.mrb[19].mxu0  ;;  %v2865_v39 = vpop.f32.mrb[19].mxu1 }
 0x119   :  { %v1708_v40 = vadd.f32 %v1707_v19, %v1521_v28  ;;  %v2285_v41 = vpack.c.bf16 %v447_v37, %v443_v25  ;;  %v1443_v42 = vadd.f32 %v1442_v27, %v447_v37  ;;  %v1523_v43 = vmul.f32 %v447_v37, %v447_v37 }
 0x11a   :  { %2425 = vst [vmem:[%s3350_s2 + $0x20] sm:$0xff] %v2125_v33   ;;  %v1640_v45 = vadd.f32 %v1639_v32, %v1522_v36  ;;  %v2205_v46 = vpack.c.bf16 %v2863_v31, %v2859_v22  ;;  %v2365_v47 = vpack.c.bf16 %v2865_v39, %v2861_v26 }
 0x11b   :  { %2456 = vst [vmem:[%s3351_s3 + $0x20] sm:$0xff] %v2285_v41   ;;  %v1709_v48 = vadd.f32 %v1708_v40, %v1523_v43 }
 0x11c   :  { %2441 = vst [vmem:[%s3350_s2 + $0xa0] sm:$0xff] %v2205_v46   ;;  %2472 = vst [vmem:[%s3351_s3 + $0xa0] sm:$0xff] %v2365_v47  }
 0x11d   :  { %v451_v49 = vpop.f32.mrb[20].mxu0  ;;  %v2883_v51 = vpop.f32.mrb[20].mxu1 }
 0x11e   :  { %v1375_v53 = vadd.f32 %v1374_v35, %v451_v49  ;;  %v1524_v54 = vmul.f32 %v451_v49, %v451_v49  ;;  %v453_v56 = vpop.f32.mrb[21].mxu0  ;;  %v2885_v58 = vpop.f32.mrb[21].mxu1 }
 0x11f   :  { %v1444_v59 = vadd.f32 %v1443_v42, %v453_v56  ;;  %v1525_v60 = vmul.f32 %v453_v56, %v453_v56  ;;  %v455_v63 = vpop.f32.mrb[22].mxu0  ;;  %v2887_v0 = vpop.f32.mrb[22].mxu1 }
 0x120   :  { %v1641_v1 = vadd.f32 %v1640_v45, %v1524_v54  ;;  %v2130_v3 = vpack.c.bf16 %v455_v63, %v451_v49  ;;  %v1376_v4 = vadd.f32 %v1375_v53, %v455_v63  ;;  %v1526_v5 = vmul.f32 %v455_v63, %v455_v63  ;;  %v457_v7 = vpop.f32.mrb[23].mxu0  ;;  %v2889_v8 = vpop.f32.mrb[23].mxu1 }
 0x121   :  { %v1710_v11 = vadd.f32 %v1709_v48, %v1525_v60  ;;  %v2290_v12 = vpack.c.bf16 %v457_v7, %v453_v56  ;;  %v1445_v13 = vadd.f32 %v1444_v59, %v457_v7  ;;  %v1527_v15 = vmul.f32 %v457_v7, %v457_v7 }
 0x122   :  { %2426 = vst [vmem:[%s3350_s2 + $0x28] sm:$0xff] %v2130_v3   ;;  %v1642_v16 = vadd.f32 %v1641_v1, %v1526_v5  ;;  %v2210_v17 = vpack.c.bf16 %v2887_v0, %v2883_v51  ;;  %v2370_v18 = vpack.c.bf16 %v2889_v8, %v2885_v58 }
 0x123   :  { %2457 = vst [vmem:[%s3351_s3 + $0x28] sm:$0xff] %v2290_v12   ;;  %v1711_v19 = vadd.f32 %v1710_v11, %v1527_v15 }
 0x124   :  { %2442 = vst [vmem:[%s3350_s2 + $0xa8] sm:$0xff] %v2210_v17   ;;  %2473 = vst [vmem:[%s3351_s3 + $0xa8] sm:$0xff] %v2370_v18  }
 0x125   :  { %v461_v21 = vpop.f32.mrb[24].mxu0  ;;  %v2907_v23 = vpop.f32.mrb[24].mxu1 }
 0x126   :  { %v1377_v24 = vadd.f32 %v1376_v4, %v461_v21  ;;  %v1528_v25 = vmul.f32 %v461_v21, %v461_v21  ;;  %v463_v27 = vpop.f32.mrb[25].mxu0  ;;  %v2909_v28 = vpop.f32.mrb[25].mxu1 }
 0x127   :  { %v1446_v29 = vadd.f32 %v1445_v13, %v463_v27  ;;  %v1529_v32 = vmul.f32 %v463_v27, %v463_v27  ;;  %v465_v33 = vpop.f32.mrb[26].mxu0  ;;  %v2911_v35 = vpop.f32.mrb[26].mxu1 }
 0x128   :  { %v1643_v36 = vadd.f32 %v1642_v16, %v1528_v25  ;;  %v2135_v37 = vpack.c.bf16 %v465_v33, %v461_v21  ;;  %v1378_v40 = vadd.f32 %v1377_v24, %v465_v33  ;;  %v1530_v41 = vmul.f32 %v465_v33, %v465_v33  ;;  %v467_v42 = vpop.f32.mrb[27].mxu0  ;;  %v2913_v43 = vpop.f32.mrb[27].mxu1 }
 0x129   :  { %v1712_v45 = vadd.f32 %v1711_v19, %v1529_v32  ;;  %v2295_v46 = vpack.c.bf16 %v467_v42, %v463_v27  ;;  %v1447_v47 = vadd.f32 %v1446_v29, %v467_v42  ;;  %v1531_v48 = vmul.f32 %v467_v42, %v467_v42 }
 0x12a   :  { %2427 = vst [vmem:[%s3350_s2 + $0x30] sm:$0xff] %v2135_v37   ;;  %v1644_v49 = vadd.f32 %v1643_v36, %v1530_v41  ;;  %v2215_v53 = vpack.c.bf16 %v2911_v35, %v2907_v23  ;;  %v2375_v54 = vpack.c.bf16 %v2913_v43, %v2909_v28 }
 0x12b   :  { %2458 = vst [vmem:[%s3351_s3 + $0x30] sm:$0xff] %v2295_v46   ;;  %v1713_v56 = vadd.f32 %v1712_v45, %v1531_v48 }
 0x12c   :  { %2443 = vst [vmem:[%s3350_s2 + $0xb0] sm:$0xff] %v2215_v53   ;;  %2474 = vst [vmem:[%s3351_s3 + $0xb0] sm:$0xff] %v2375_v54  }
 0x12d   :  { %v471_v59 = vpop.f32.mrb[28].mxu0  ;;  %v2931_v60 = vpop.f32.mrb[28].mxu1 }
 0x12e   :  { %v1379_v63 = vadd.f32 %v1378_v40, %v471_v59  ;;  %v1532_v1 = vmul.f32 %v471_v59, %v471_v59  ;;  %v473_v3 = vpop.f32.mrb[29].mxu0  ;;  %v2933_v4 = vpop.f32.mrb[29].mxu1 }
 0x12f   :  { %v1448_v5 = vadd.f32 %v1447_v47, %v473_v3  ;;  %v1533_v7 = vmul.f32 %v473_v3, %v473_v3  ;;  %v475_v11 = vpop.f32.mrb[30].mxu0  ;;  %v2935_v12 = vpop.f32.mrb[30].mxu1 }
 0x130   :  { %v1645_v13 = vadd.f32 %v1644_v49, %v1532_v1  ;;  %v2140_v15 = vpack.c.bf16 %v475_v11, %v471_v59  ;;  %v1380_v16 = vadd.f32 %v1379_v63, %v475_v11  ;;  %v1534_v17 = vmul.f32 %v475_v11, %v475_v11  ;;  %v477_v18 = vpop.f32.mrb[31].mxu0  ;;  %v2937_v19 = vpop.f32.mrb[31].mxu1 }
 0x131   :  { %v1714_v21 = vadd.f32 %v1713_v56, %v1533_v7  ;;  %v2300_v24 = vpack.c.bf16 %v477_v18, %v473_v3  ;;  %v1449_v25 = vadd.f32 %v1448_v5, %v477_v18  ;;  %v1535_v27 = vmul.f32 %v477_v18, %v477_v18 }
 0x132   :  { %2428 = vst [vmem:[%s3350_s2 + $0x38] sm:$0xff] %v2140_v15   ;;  %v1646_v29 = vadd.f32 %v1645_v13, %v1534_v17  ;;  %v2220_v32 = vpack.c.bf16 %v2935_v12, %v2931_v60  ;;  %v2380_v33 = vpack.c.bf16 %v2937_v19, %v2933_v4 }
 0x133   :  { %2459 = vst [vmem:[%s3351_s3 + $0x38] sm:$0xff] %v2300_v24   ;;  %v1715_v36 = vadd.f32 %v1714_v21, %v1535_v27 }
 0x134   :  { %2444 = vst [vmem:[%s3350_s2 + $0xb8] sm:$0xff] %v2220_v32   ;;  %2475 = vst [vmem:[%s3351_s3 + $0xb8] sm:$0xff] %v2380_v33   ;;  %v2560_v33 = vmov 0.0  }
 0x135   :  { %v481_v37 = vpop.f32.mrb[32].mxu0  ;;  %v2955_v40 = vpop.f32.mrb[32].mxu1  ;;  %1364 = vst [vmem:[%s3352_s4] sm:$0xf] %v2560_v33 }
 0x136   :  { %v1381_v41 = vadd.f32 %v1380_v16, %v481_v37  ;;  %v1536_v42 = vmul.f32 %v481_v37, %v481_v37  ;;  %v483_v45 = vpop.f32.mrb[33].mxu0  ;;  %v2957_v46 = vpop.f32.mrb[33].mxu1 }
 0x137   :  { %v1450_v47 = vadd.f32 %v1449_v25, %v483_v45  ;;  %v1537_v48 = vmul.f32 %v483_v45, %v483_v45  ;;  %v485_v49 = vpop.f32.mrb[34].mxu0  ;;  %v2959_v53 = vpop.f32.mrb[34].mxu1 }
 0x138   :  { %v1647_v54 = vadd.f32 %v1646_v29, %v1536_v42  ;;  %v2145_v56 = vpack.c.bf16 %v485_v49, %v481_v37  ;;  %v1382_v59 = vadd.f32 %v1381_v41, %v485_v49  ;;  %v1538_v63 = vmul.f32 %v485_v49, %v485_v49  ;;  %v487_v1 = vpop.f32.mrb[35].mxu0  ;;  %v2961_v3 = vpop.f32.mrb[35].mxu1 }
 0x139   :  { %v1716_v5 = vadd.f32 %v1715_v36, %v1537_v48  ;;  %v2305_v7 = vpack.c.bf16 %v487_v1, %v483_v45  ;;  %v1451_v11 = vadd.f32 %v1450_v47, %v487_v1  ;;  %v1539_v13 = vmul.f32 %v487_v1, %v487_v1 }
 0x13a   :  { %2429 = vst [vmem:[%s3350_s2 + $0x40] sm:$0xff] %v2145_v56   ;;  %v1648_v15 = vadd.f32 %v1647_v54, %v1538_v63  ;;  %v2225_v16 = vpack.c.bf16 %v2959_v53, %v2955_v40  ;;  %v2385_v17 = vpack.c.bf16 %v2961_v3, %v2957_v46 }
 0x13b   :  { %2460 = vst [vmem:[%s3351_s3 + $0x40] sm:$0xff] %v2305_v7   ;;  %v1717_v18 = vadd.f32 %v1716_v5, %v1539_v13 }
 0x13c   :  { %2445 = vst [vmem:[%s3350_s2 + $0xc0] sm:$0xff] %v2225_v16   ;;  %2476 = vst [vmem:[%s3351_s3 + $0xc0] sm:$0xff] %v2385_v17  }
 0x13d   :  { %v491_v21 = vpop.f32.mrb[36].mxu0  ;;  %v2979_v24 = vpop.f32.mrb[36].mxu1 }
 0x13e   :  { %v1383_v25 = vadd.f32 %v1382_v59, %v491_v21  ;;  %v1540_v27 = vmul.f32 %v491_v21, %v491_v21  ;;  %v493_v29 = vpop.f32.mrb[37].mxu0  ;;  %v2981_v32 = vpop.f32.mrb[37].mxu1 }
 0x13f   :  { %v1452_v36 = vadd.f32 %v1451_v11, %v493_v29  ;;  %v1541_v37 = vmul.f32 %v493_v29, %v493_v29  ;;  %v495_v41 = vpop.f32.mrb[38].mxu0  ;;  %v2986_v42 = vpop.f32.mrb[38].mxu1 }
 0x140   :  { %v1649_v45 = vadd.f32 %v1648_v15, %v1540_v27  ;;  %v2150_v47 = vpack.c.bf16 %v495_v41, %v491_v21  ;;  %v1384_v48 = vadd.f32 %v1383_v25, %v495_v41  ;;  %v1542_v49 = vmul.f32 %v495_v41, %v495_v41  ;;  %v497_v54 = vpop.f32.mrb[39].mxu0  ;;  %v2988_v56 = vpop.f32.mrb[39].mxu1 }
 0x141   :  { %v1718_v59 = vadd.f32 %v1717_v18, %v1541_v37  ;;  %v2310_v63 = vpack.c.bf16 %v497_v54, %v493_v29  ;;  %v1453_v1 = vadd.f32 %v1452_v36, %v497_v54  ;;  %v1543_v5 = vmul.f32 %v497_v54, %v497_v54 }
 0x142   :  { %2430 = vst [vmem:[%s3350_s2 + $0x48] sm:$0xff] %v2150_v47   ;;  %v1650_v7 = vadd.f32 %v1649_v45, %v1542_v49  ;;  %v2230_v11 = vpack.c.bf16 %v2986_v42, %v2979_v24  ;;  %v2390_v13 = vpack.c.bf16 %v2988_v56, %v2981_v32 }
 0x143   :  { %2461 = vst [vmem:[%s3351_s3 + $0x48] sm:$0xff] %v2310_v63   ;;  %v1719_v15 = vadd.f32 %v1718_v59, %v1543_v5 }
 0x144   :  { %2446 = vst [vmem:[%s3350_s2 + $0xc8] sm:$0xff] %v2230_v11   ;;  %2477 = vst [vmem:[%s3351_s3 + $0xc8] sm:$0xff] %v2390_v13  }
 0x145   :  { %v501_v16 = vpop.f32.mrb[40].mxu0  ;;  %v3006_v17 = vpop.f32.mrb[40].mxu1 }
 0x146   :  { %3393 = vst [vmem:[#allocation2_spill] sm:$0xff] %v3006_v17  ;;  %v1385_v18 = vadd.f32 %v1384_v48, %v501_v16  ;;  %v1544_v21 = vmul.f32 %v501_v16, %v501_v16  ;;  %v503_v25 = vpop.f32.mrb[41].mxu0  ;;  %v3008_v27 = vpop.f32.mrb[41].mxu1 }
 0x147   :  { %3394 = vst [vmem:[#allocation3_spill] sm:$0xff] %v3008_v27  ;;  %v1454_v29 = vadd.f32 %v1453_v1, %v503_v25  ;;  %v1545_v33 = vmul.f32 %v503_v25, %v503_v25  ;;  %v505_v36 = vpop.f32.mrb[42].mxu0  ;;  %v3010_v37 = vpop.f32.mrb[42].mxu1 }
 0x148   :  { %3395 = vst [vmem:[#allocation4_spill] sm:$0xff] %v3010_v37  ;;  %v1651_v41 = vadd.f32 %v1650_v7, %v1544_v21  ;;  %v2155_v45 = vpack.c.bf16 %v505_v36, %v501_v16  ;;  %v1386_v47 = vadd.f32 %v1385_v18, %v505_v36  ;;  %v1546_v49 = vmul.f32 %v505_v36, %v505_v36  ;;  %v507_v54 = vpop.f32.mrb[43].mxu0  ;;  %v3012_v59 = vpop.f32.mrb[43].mxu1 }
 0x149   :  { %3396 = vst [vmem:[#allocation5_spill] sm:$0xff] %v3012_v59  ;;  %v1720_v63 = vadd.f32 %v1719_v15, %v1545_v33  ;;  %v2315_v5 = vpack.c.bf16 %v507_v54, %v503_v25  ;;  %v1455_v11 = vadd.f32 %v1454_v29, %v507_v54  ;;  %v1547_v48 = vmul.f32 %v507_v54, %v507_v54 }
 0x14a   :  { %2431 = vst [vmem:[%s3350_s2 + $0x50] sm:$0xff] %v2155_v45   ;;  %v1652_v1 = vadd.f32 %v1651_v41, %v1546_v49  ;;  %v2235_v13 = vpack.c.bf16 %v3010_v37, %v3006_v17  ;;  %v2395_v7 = vpack.c.bf16 %v3012_v59, %v3008_v27 }
 0x14b   :  { %2462 = vst [vmem:[%s3351_s3 + $0x50] sm:$0xff] %v2315_v5   ;;  %v1721_v16 = vadd.f32 %v1720_v63, %v1547_v48 }
 0x14c   :  { %2447 = vst [vmem:[%s3350_s2 + $0xd0] sm:$0xff] %v2235_v13   ;;  %2478 = vst [vmem:[%s3351_s3 + $0xd0] sm:$0xff] %v2395_v7  }
 0x14d   :  { %v511_v15 = vpop.f32.mrb[44].mxu0  ;;  %v3030_v18 = vpop.f32.mrb[44].mxu1 }
 0x14e   :  { %3397 = vst [vmem:[#allocation6_spill] sm:$0xff] %v3030_v18  ;;  %v1387_v21 = vadd.f32 %v1386_v47, %v511_v15  ;;  %v1548_v25 = vmul.f32 %v511_v15, %v511_v15  ;;  %v513_v29 = vpop.f32.mrb[45].mxu0  ;;  %v3032_v33 = vpop.f32.mrb[45].mxu1 }
 0x14f   :  { %3398 = vst [vmem:[#allocation7_spill] sm:$0xff] %v3032_v33  ;;  %v1456_v36 = vadd.f32 %v1455_v11, %v513_v29  ;;  %v1549_v41 = vmul.f32 %v513_v29, %v513_v29  ;;  %v515_v45 = vpop.f32.mrb[46].mxu0  ;;  %v3034_v49 = vpop.f32.mrb[46].mxu1 }
 0x150   :  { %3399 = vst [vmem:[#allocation8_spill] sm:$0xff] %v3034_v49  ;;  %v1653_v54 = vadd.f32 %v1652_v1, %v1548_v25  ;;  %v2160_v63 = vpack.c.bf16 %v515_v45, %v511_v15  ;;  %v1388_v5 = vadd.f32 %v1387_v21, %v515_v45  ;;  %v1550_v48 = vmul.f32 %v515_v45, %v515_v45  ;;  %v517_v13 = vpop.f32.mrb[47].mxu0  ;;  %v3036_v59 = vpop.f32.mrb[47].mxu1 }
 0x151   :  { %3400 = vst [vmem:[#allocation9_spill] sm:$0xff] %v3036_v59  ;;  %v1722_v7 = vadd.f32 %v1721_v16, %v1549_v41  ;;  %v2320_v37 = vpack.c.bf16 %v517_v13, %v513_v29  ;;  %v1457_v27 = vadd.f32 %v1456_v36, %v517_v13  ;;  %v1551_v47 = vmul.f32 %v517_v13, %v517_v13 }
 0x152   :  { %2432 = vst [vmem:[%s3350_s2 + $0x58] sm:$0xff] %v2160_v63   ;;  %v1654_v11 = vadd.f32 %v1653_v54, %v1550_v48  ;;  %v2240_v17 = vpack.c.bf16 %v3034_v49, %v3030_v18  ;;  %v2400_v1 = vpack.c.bf16 %v3036_v59, %v3032_v33 }
 0x153   :  { %2463 = vst [vmem:[%s3351_s3 + $0x58] sm:$0xff] %v2320_v37   ;;  %v1723_v15 = vadd.f32 %v1722_v7, %v1551_v47 }
 0x154   :  { %2448 = vst [vmem:[%s3350_s2 + $0xd8] sm:$0xff] %v2240_v17   ;;  %2479 = vst [vmem:[%s3351_s3 + $0xd8] sm:$0xff] %v2400_v1  }
 0x155   :  { %v521_v16 = vpop.f32.mrb[48].mxu0  ;;  %v3054_v21 = vpop.f32.mrb[48].mxu1 }
 0x156   :  { %3401 = vst [vmem:[#allocation10_spill] sm:$0xff] %v3054_v21  ;;  %v1389_v25 = vadd.f32 %v1388_v5, %v521_v16  ;;  %v1552_v29 = vmul.f32 %v521_v16, %v521_v16  ;;  %v523_v36 = vpop.f32.mrb[49].mxu0  ;;  %v3056_v41 = vpop.f32.mrb[49].mxu1 }
 0x157   :  { %3402 = vst [vmem:[#allocation11_spill] sm:$0xff] %v3056_v41  ;;  %v1458_v45 = vadd.f32 %v1457_v27, %v523_v36  ;;  %v1553_v54 = vmul.f32 %v523_v36, %v523_v36  ;;  %v525_v37 = vpop.f32.mrb[50].mxu0  ;;  %v3058_v63 = vpop.f32.mrb[50].mxu1 }
 0x158   :  { %3403 = vst [vmem:[#allocation12_spill] sm:$0xff] %v3058_v63  ;;  %v1655_v48 = vadd.f32 %v1654_v11, %v1552_v29  ;;  %v2165_v13 = vpack.c.bf16 %v525_v37, %v521_v16  ;;  %v1390_v17 = vadd.f32 %v1389_v25, %v525_v37  ;;  %v1554_v7 = vmul.f32 %v525_v37, %v525_v37  ;;  %v527_v47 = vpop.f32.mrb[51].mxu0  ;;  %v3060_v59 = vpop.f32.mrb[51].mxu1 }
 0x159   :  { %3404 = vst [vmem:[#allocation13_spill] sm:$0xff] %v3060_v59  ;;  %v1724_v1 = vadd.f32 %v1723_v15, %v1553_v54  ;;  %v2325_v49 = vpack.c.bf16 %v527_v47, %v523_v36  ;;  %v1459_v33 = vadd.f32 %v1458_v45, %v527_v47  ;;  %v1555_v5 = vmul.f32 %v527_v47, %v527_v47 }
 0x15a   :  { %2433 = vst [vmem:[%s3350_s2 + $0x60] sm:$0xff] %v2165_v13   ;;  %v1656_v27 = vadd.f32 %v1655_v48, %v1554_v7  ;;  %v2245_v18 = vpack.c.bf16 %v3058_v63, %v3054_v21  ;;  %v2405_v11 = vpack.c.bf16 %v3060_v59, %v3056_v41 }
 0x15b   :  { %2464 = vst [vmem:[%s3351_s3 + $0x60] sm:$0xff] %v2325_v49   ;;  %v1725_v16 = vadd.f32 %v1724_v1, %v1555_v5 }
 0x15c   :  { %2449 = vst [vmem:[%s3350_s2 + $0xe0] sm:$0xff] %v2245_v18   ;;  %2480 = vst [vmem:[%s3351_s3 + $0xe0] sm:$0xff] %v2405_v11  }
 0x15d   :  { %v531_v15 = vpop.f32.mrb[52].mxu0  ;;  %v3078_v25 = vpop.f32.mrb[52].mxu1 }
 0x15e   :  { %3405 = vst [vmem:[#allocation14_spill] sm:$0xff] %v3078_v25  ;;  %v1391_v29 = vadd.f32 %v1390_v17, %v531_v15  ;;  %v1556_v36 = vmul.f32 %v531_v15, %v531_v15  ;;  %v533_v45 = vpop.f32.mrb[53].mxu0  ;;  %v3080_v54 = vpop.f32.mrb[53].mxu1 }
 0x15f   :  { %3406 = vst [vmem:[#allocation15_spill] sm:$0xff] %v3080_v54  ;;  %v1460_v37 = vadd.f32 %v1459_v33, %v533_v45  ;;  %v1557_v48 = vmul.f32 %v533_v45, %v533_v45  ;;  %v535_v49 = vpop.f32.mrb[54].mxu0  ;;  %v3082_v13 = vpop.f32.mrb[54].mxu1 }
 0x160   :  { %3407 = vst [vmem:[#allocation16_spill] sm:$0xff] %v3082_v13  ;;  %v1657_v7 = vadd.f32 %v1656_v27, %v1556_v36  ;;  %v2170_v47 = vpack.c.bf16 %v535_v49, %v531_v15  ;;  %v1392_v18 = vadd.f32 %v1391_v29, %v535_v49  ;;  %v1558_v1 = vmul.f32 %v535_v49, %v535_v49  ;;  %v537_v5 = vpop.f32.mrb[55].mxu0  ;;  %v3084_v59 = vpop.f32.mrb[55].mxu1 }
 0x161   :  { %3408 = vst [vmem:[#allocation17_spill] sm:$0xff] %v3084_v59  ;;  %v1726_v11 = vadd.f32 %v1725_v16, %v1557_v48  ;;  %v2330_v63 = vpack.c.bf16 %v537_v5, %v533_v45  ;;  %v1461_v41 = vadd.f32 %v1460_v37, %v537_v5  ;;  %v1559_v17 = vmul.f32 %v537_v5, %v537_v5 }
 0x162   :  { %2434 = vst [vmem:[%s3350_s2 + $0x68] sm:$0xff] %v2170_v47   ;;  %v1658_v33 = vadd.f32 %v1657_v7, %v1558_v1  ;;  %v2250_v21 = vpack.c.bf16 %v3082_v13, %v3078_v25  ;;  %v2410_v27 = vpack.c.bf16 %v3084_v59, %v3080_v54 }
 0x163   :  { %2465 = vst [vmem:[%s3351_s3 + $0x68] sm:$0xff] %v2330_v63   ;;  %v1727_v15 = vadd.f32 %v1726_v11, %v1559_v17 }
 0x164   :  { %2450 = vst [vmem:[%s3350_s2 + $0xe8] sm:$0xff] %v2250_v21   ;;  %2481 = vst [vmem:[%s3351_s3 + $0xe8] sm:$0xff] %v2410_v27  }
 0x165   :  { %v541_v16 = vpop.f32.mrb[56].mxu0  ;;  %v3102_v29 = vpop.f32.mrb[56].mxu1 }
 0x166   :  { %3409 = vst [vmem:[#allocation18_spill] sm:$0xff] %v3102_v29  ;;  %v1393_v36 = vadd.f32 %v1392_v18, %v541_v16  ;;  %v1560_v45 = vmul.f32 %v541_v16, %v541_v16  ;;  %v543_v37 = vpop.f32.mrb[57].mxu0  ;;  %v3104_v48 = vpop.f32.mrb[57].mxu1 }
 0x167   :  { %3410 = vst [vmem:[#allocation19_spill] sm:$0xff] %v3104_v48  ;;  %v1462_v49 = vadd.f32 %v1461_v41, %v543_v37  ;;  %v1561_v7 = vmul.f32 %v543_v37, %v543_v37  ;;  %v545_v63 = vpop.f32.mrb[58].mxu0  ;;  %v3106_v47 = vpop.f32.mrb[58].mxu1 }
 0x168   :  { %3411 = vst [vmem:[#allocation20_spill] sm:$0xff] %v3106_v47  ;;  %v1659_v1 = vadd.f32 %v1658_v33, %v1560_v45  ;;  %v2175_v5 = vpack.c.bf16 %v545_v63, %v541_v16  ;;  %v1394_v21 = vadd.f32 %v1393_v36, %v545_v63  ;;  %v1562_v11 = vmul.f32 %v545_v63, %v545_v63  ;;  %v547_v17 = vpop.f32.mrb[59].mxu0  ;;  %v3108_v59 = vpop.f32.mrb[59].mxu1 }
 0x169   :  { %3412 = vst [vmem:[#allocation21_spill] sm:$0xff] %v3108_v59  ;;  %v1728_v27 = vadd.f32 %v1727_v15, %v1561_v7  ;;  %v2335_v13 = vpack.c.bf16 %v547_v17, %v543_v37  ;;  %v1463_v54 = vadd.f32 %v1462_v49, %v547_v17  ;;  %v1563_v18 = vmul.f32 %v547_v17, %v547_v17 }
 0x16a   :  { %2435 = vst [vmem:[%s3350_s2 + $0x70] sm:$0xff] %v2175_v5   ;;  %v1660_v41 = vadd.f32 %v1659_v1, %v1562_v11  ;;  %v2255_v25 = vpack.c.bf16 %v3106_v47, %v3102_v29  ;;  %v2415_v33 = vpack.c.bf16 %v3108_v59, %v3104_v48  ;;  %v1568_v29 = vmul.f32 %v2763_v50, %v2763_v50 }
 0x16b   :  { %2466 = vst [vmem:[%s3351_s3 + $0x70] sm:$0xff] %v2335_v13   ;;  %v1729_v16 = vadd.f32 %v1728_v27, %v1563_v18 }
 0x16c   :  { %2451 = vst [vmem:[%s3350_s2 + $0xf0] sm:$0xff] %v2255_v25   ;;  %2482 = vst [vmem:[%s3351_s3 + $0xf0] sm:$0xff] %v2415_v33  }
 0x16d   :  { %v551_v15 = vpop.f32.mrb[60].mxu0  ;;  %v3126_v36 = vpop.f32.mrb[60].mxu1 }
 0x16e   :  { %v1395_v45 = vadd.f32 %v1394_v21, %v551_v15  ;;  %v1564_v37 = vmul.f32 %v551_v15, %v551_v15  ;;  %v553_v49 = vpop.f32.mrb[61].mxu0  ;;  %v3128_v7 = vpop.f32.mrb[61].mxu1 }
 0x16f   :  { %v1464_v63 = vadd.f32 %v1463_v54, %v553_v49  ;;  %v1565_v1 = vmul.f32 %v553_v49, %v553_v49  ;;  %v555_v13 = vpop.f32.mrb[62].mxu0  ;;  %v3130_v5 = vpop.f32.mrb[62].mxu1 }
 0x170   :  { %v1661_v11 = vadd.f32 %v1660_v41, %v1564_v37  ;;  %v2180_v17 = vpack.c.bf16 %v555_v13, %v551_v15  ;;  %v1396_v25 = vadd.f32 %v1395_v45, %v555_v13  ;;  %v1566_v27 = vmul.f32 %v555_v13, %v555_v13  ;;  %v557_v18 = vpop.f32.mrb[63].mxu0  ;;  %v3132_v59 = vpop.f32.mrb[63].mxu1 }
 0x171   :  { %v1730_v33 = vadd.f32 %v1729_v16, %v1565_v1  ;;  %v2340_v47 = vpack.c.bf16 %v557_v18, %v553_v49  ;;  %v1465_v48 = vadd.f32 %v1464_v63, %v557_v18  ;;  %v1567_v21 = vmul.f32 %v557_v18, %v557_v18 }
 0x172   :  { %2436 = vst [vmem:[%s3350_s2 + $0x78] sm:$0xff] %v2180_v17   ;;  %v1397_v54 = vadd.f32 %v1396_v25, %v2763_v50  ;;  %v1662_v41 = vadd.f32 %v1661_v11, %v1566_v27  ;;  %v2260_v15 = vpack.c.bf16 %v3130_v5, %v3126_v36  ;;  %v1569_v45 = vmul.f32 %v2765_v52, %v2765_v52 }
 0x173   :  { %2467 = vst [vmem:[%s3351_s3 + $0x78] sm:$0xff] %v2340_v47   ;;  %v1466_v16 = vadd.f32 %v1465_v48, %v2765_v52  ;;  %v1731_v37 = vadd.f32 %v1730_v33, %v1567_v21  ;;  %v2420_v49 = vpack.c.bf16 %v3132_v59, %v3128_v7  ;;  %v1570_v50 = vmul.f32 %v2767_v55, %v2767_v55 }
 0x174   :  { %v1398_v63 = vadd.f32 %v1397_v54, %v2767_v55  ;;  %v1663_v1 = vadd.f32 %v1662_v41, %v1568_v29  ;;  %2452 = vst [vmem:[%s3350_s2 + $0xf8] sm:$0xff] %v2260_v15   ;;  %v1571_v13 = vmul.f32 %v2771_v61, %v2771_v61  ;;  %v1572_v48 = vmul.f32 %v2787_v6, %v2787_v6 }
 0x175   :  { %v1467_v47 = vadd.f32 %v1466_v16, %v2771_v61  ;;  %v1732_v52 = vadd.f32 %v1731_v37, %v1569_v45  ;;  %2483 = vst [vmem:[%s3351_s3 + $0xf8] sm:$0xff] %v2420_v49   ;;  %v1573_v11 = vmul.f32 %v2789_v10, %v2789_v10  ;;  %v1574_v61 = vmul.f32 %v2791_v14, %v2791_v14 }
 0x176   :  { %v1399_v55 = vadd.f32 %v1398_v63, %v2787_v6  ;;  %v1664_v29 = vadd.f32 %v1663_v1, %v1570_v50  ;;  %v1575_v33 = vmul.f32 %v2793_v20, %v2793_v20  ;;  %v1576_v6 = vmul.f32 %v2811_v30, %v2811_v30 }
 0x177   :  { %v1468_v17 = vadd.f32 %v1467_v47, %v2789_v10  ;;  %v1733_v25 = vadd.f32 %v1732_v52, %v1571_v13  ;;  %v1577_v10 = vmul.f32 %v2813_v34, %v2813_v34 }
 0x178   :  { %v1400_v27 = vadd.f32 %v1399_v55, %v2791_v14  ;;  %v1665_v18 = vadd.f32 %v1664_v29, %v1572_v48  ;;  %v1578_v14 = vmul.f32 %v2815_v38, %v2815_v38 }
 0x179   :  { %v1469_v21 = vadd.f32 %v1468_v17, %v2793_v20  ;;  %v1734_v54 = vadd.f32 %v1733_v25, %v1573_v11  ;;  %v1579_v20 = vmul.f32 %v2817_v44, %v2817_v44 }
 0x17a   :  { %v1401_v41 = vadd.f32 %v1400_v27, %v2811_v30  ;;  %v1666_v15 = vadd.f32 %v1665_v18, %v1574_v61  ;;  %v1580_v30 = vmul.f32 %v2835_v57, %v2835_v57 }
 0x17b   :  { %v1470_v45 = vadd.f32 %v1469_v21, %v2813_v34  ;;  %v1735_v16 = vadd.f32 %v1734_v54, %v1575_v33  ;;  %v1581_v34 = vmul.f32 %v2837_v62, %v2837_v62 }
 0x17c   :  { %v1402_v37 = vadd.f32 %v1401_v41, %v2815_v38  ;;  %v1667_v49 = vadd.f32 %v1666_v15, %v1576_v6  ;;  %v1582_v38 = vmul.f32 %v2839_v2, %v2839_v2 }
 0x17d   :  { %v1471_v50 = vadd.f32 %v1470_v45, %v2817_v44  ;;  %v1736_v63 = vadd.f32 %v1735_v16, %v1577_v10  ;;  %v1583_v44 = vmul.f32 %v2841_v9, %v2841_v9 }
 0x17e   :  { %v1403_v1 = vadd.f32 %v1402_v37, %v2835_v57  ;;  %v1668_v13 = vadd.f32 %v1667_v49, %v1578_v14  ;;  %v1584_v57 = vmul.f32 %v2859_v22, %v2859_v22 }
 0x17f   :  { %v1472_v47 = vadd.f32 %v1471_v50, %v2837_v62  ;;  %v1737_v52 = vadd.f32 %v1736_v63, %v1579_v20  ;;  %v1585_v62 = vmul.f32 %v2861_v26, %v2861_v26 }
 0x180   :  { %v1404_v48 = vadd.f32 %v1403_v1, %v2839_v2  ;;  %v1669_v55 = vadd.f32 %v1668_v13, %v1580_v30  ;;  %v1586_v2 = vmul.f32 %v2863_v31, %v2863_v31 }
 0x181   :  { %v1473_v29 = vadd.f32 %v1472_v47, %v2841_v9  ;;  %v1738_v11 = vadd.f32 %v1737_v52, %v1581_v34  ;;  %v1587_v9 = vmul.f32 %v2865_v39, %v2865_v39 }
 0x182   :  { %v1670_v17 = vadd.f32 %v1669_v55, %v1582_v38  ;;  %v1405_v25 = vadd.f32 %v1404_v48, %v2859_v22  ;;  %v1588_v22 = vmul.f32 %v2883_v51, %v2883_v51 }
 0x183   :  { %v1739_v61 = vadd.f32 %v1738_v11, %v1583_v44  ;;  %v1474_v27 = vadd.f32 %v1473_v29, %v2861_v26  ;;  %v1589_v26 = vmul.f32 %v2885_v58, %v2885_v58 }
 0x184   :  { %v1406_v18 = vadd.f32 %v1405_v25, %v2863_v31  ;;  %v1671_v33 = vadd.f32 %v1670_v17, %v1584_v57  ;;  %v1590_v31 = vmul.f32 %v2887_v0, %v2887_v0  ;;  %v1600_v57 = vmul.f32 %v2955_v40, %v2955_v40 }
 0x185   :  { %v1475_v21 = vadd.f32 %v1474_v27, %v2865_v39  ;;  %v1740_v54 = vadd.f32 %v1739_v61, %v1585_v62  ;;  %v1591_v39 = vmul.f32 %v2889_v8, %v2889_v8  ;;  %v1601_v25 = vmul.f32 %v2957_v46, %v2957_v46 }
 0x186   :  { %v1407_v6 = vadd.f32 %v1406_v18, %v2883_v51  ;;  %v1672_v41 = vadd.f32 %v1671_v33, %v1586_v2  ;;  %v1592_v51 = vmul.f32 %v2907_v23, %v2907_v23  ;;  %v1602_v27 = vmul.f32 %v2959_v53, %v2959_v53 }
 0x187   :  { %v1476_v15 = vadd.f32 %v1475_v21, %v2885_v58  ;;  %v1741_v10 = vadd.f32 %v1740_v54, %v1587_v9  ;;  %v1593_v58 = vmul.f32 %v2909_v28, %v2909_v28  ;;  %v1603_v18 = vmul.f32 %v2961_v3, %v2961_v3 }
 0x188   :  { %v1408_v45 = vadd.f32 %v1407_v6, %v2887_v0  ;;  %v1673_v16 = vadd.f32 %v1672_v41, %v1588_v22  ;;  %v1594_v0 = vmul.f32 %v2911_v35, %v2911_v35  ;;  %v1604_v9 = vmul.f32 %v2979_v24, %v2979_v24 }
 0x189   :  { %v1477_v14 = vadd.f32 %v1476_v15, %v2889_v8  ;;  %v1742_v37 = vadd.f32 %v1741_v10, %v1589_v26  ;;  %v1595_v8 = vmul.f32 %v2913_v43, %v2913_v43  ;;  %v1605_v54 = vmul.f32 %v2981_v32, %v2981_v32 }
 0x18a   :  { %v1409_v49 = vadd.f32 %v1408_v45, %v2907_v23  ;;  %v1674_v20 = vadd.f32 %v1673_v16, %v1590_v31  ;;  %v1596_v23 = vmul.f32 %v2931_v60, %v2931_v60  ;;  %v1606_v6 = vmul.f32 %v2986_v42, %v2986_v42 }
 0x18b   :  { %v1478_v50 = vadd.f32 %v1477_v14, %v2909_v28  ;;  %v1743_v63 = vadd.f32 %v1742_v37, %v1591_v39  ;;  %v1597_v28 = vmul.f32 %v2933_v4, %v2933_v4  ;;  %v1607_v26 = vmul.f32 %v2988_v56, %v2988_v56 }
 0x18c   :  { %v1410_v30 = vadd.f32 %v1409_v49, %v2911_v35  ;;  %v1675_v1 = vadd.f32 %v1674_v20, %v1592_v51  ;;  %v1598_v35 = vmul.f32 %v2935_v12, %v2935_v12 }
 0x18d   :  { %v1479_v13 = vadd.f32 %v1478_v50, %v2913_v43  ;;  %v1744_v34 = vadd.f32 %v1743_v63, %v1593_v58  ;;  %v1599_v43 = vmul.f32 %v2937_v19, %v2937_v19  ;;  %v3417_v63 = vld [vmem:[#allocation6_spill] sm:$0xff] }
 0x18e   :  { %v1411_v47 = vadd.f32 %v1410_v30, %v2931_v60  ;;  %v1676_v52 = vadd.f32 %v1675_v1, %v1594_v0  ;;  %v1612_v30 = vmul.f32 %v3417_v63, %v3417_v63 }
 0x18f   :  { %v1480_v38 = vadd.f32 %v1479_v13, %v2933_v4  ;;  %v1745_v48 = vadd.f32 %v1744_v34, %v1595_v8  ;;  %v3418_v8 = vld [vmem:[#allocation7_spill] sm:$0xff] }
 0x190   :  { %v1412_v55 = vadd.f32 %v1411_v47, %v2935_v12  ;;  %v1677_v44 = vadd.f32 %v1676_v52, %v1596_v23  ;;  %v1613_v34 = vmul.f32 %v3418_v8, %v3418_v8  ;;  %v3419_v47 = vld [vmem:[#allocation8_spill] sm:$0xff] }
 0x191   :  { %v1481_v29 = vadd.f32 %v1480_v38, %v2937_v19  ;;  %v1746_v11 = vadd.f32 %v1745_v48, %v1597_v28  ;;  %v1614_v28 = vmul.f32 %v3419_v47, %v3419_v47  ;;  %v3420_v48 = vld [vmem:[#allocation9_spill] sm:$0xff] }
 0x192   :  { %v1413_v60 = vadd.f32 %v1412_v55, %v2955_v40  ;;  %v1678_v17 = vadd.f32 %v1677_v44, %v1598_v35  ;;  %v1615_v55 = vmul.f32 %v3420_v48, %v3420_v48 }
 0x193   :  { %v1482_v4 = vadd.f32 %v1481_v29, %v2957_v46  ;;  %v1747_v62 = vadd.f32 %v1746_v11, %v1599_v43  ;;  %v3421_v43 = vld [vmem:[#allocation10_spill] sm:$0xff] }
 0x194   :  { %v1679_v12 = vadd.f32 %v1678_v17, %v1600_v57  ;;  %v1414_v61 = vadd.f32 %v1413_v60, %v2959_v53  ;;  %v1616_v11 = vmul.f32 %v3421_v43, %v3421_v43  ;;  %v3422_v57 = vld [vmem:[#allocation11_spill] sm:$0xff] }
 0x195   :  { %v1748_v19 = vadd.f32 %v1747_v62, %v1601_v25  ;;  %v1483_v2 = vadd.f32 %v1482_v4, %v2961_v3  ;;  %v1617_v4 = vmul.f32 %v3422_v57, %v3422_v57  ;;  %v3423_v62 = vld [vmem:[#allocation12_spill] sm:$0xff] }
 0x196   :  { %v1680_v40 = vadd.f32 %v1679_v12, %v1602_v27  ;;  %v1415_v33 = vadd.f32 %v1414_v61, %v2979_v24  ;;  %v3413_v24 = vld [vmem:[#allocation2_spill] sm:$0xff]  ;;  %v1618_v61 = vmul.f32 %v3423_v62, %v3423_v62 }
 0x197   :  { %v1749_v46 = vadd.f32 %v1748_v19, %v1603_v18  ;;  %v1484_v21 = vadd.f32 %v1483_v2, %v2981_v32  ;;  %v1608_v31 = vmul.f32 %v3413_v24, %v3413_v24  ;;  %v3414_v32 = vld [vmem:[#allocation3_spill] sm:$0xff]  ;;  %v3424_v19 = vld [vmem:[#allocation13_spill] sm:$0xff] }
 0x198   :  { %v1681_v22 = vadd.f32 %v1680_v40, %v1604_v9  ;;  %v1416_v53 = vadd.f32 %v1415_v33, %v2986_v42  ;;  %v1609_v39 = vmul.f32 %v3414_v32, %v3414_v32  ;;  %v3415_v42 = vld [vmem:[#allocation4_spill] sm:$0xff]  ;;  %v1619_v18 = vmul.f32 %v3424_v19, %v3424_v19  ;;  %v3425_v33 = vld [vmem:[#allocation14_spill] sm:$0xff] }
 0x199   :  { %v1750_v41 = vadd.f32 %v1749_v46, %v1605_v54  ;;  %v1485_v3 = vadd.f32 %v1484_v21, %v2988_v56  ;;  %v1610_v51 = vmul.f32 %v3415_v42, %v3415_v42  ;;  %v3416_v56 = vld [vmem:[#allocation5_spill] sm:$0xff]  ;;  %v1620_v46 = vmul.f32 %v3425_v33, %v3425_v33  ;;  %v3426_v54 = vld [vmem:[#allocation15_spill] sm:$0xff] }
 0x19a   :  { %v1682_v15 = vadd.f32 %v1681_v22, %v1606_v6  ;;  %v1417_v10 = vadd.f32 %v1416_v53, %v3413_v24  ;;  %v1611_v58 = vmul.f32 %v3416_v56, %v3416_v56  ;;  %v1621_v53 = vmul.f32 %v3426_v54, %v3426_v54  ;;  %v3428_v24 = vld [vmem:[#allocation17_spill] sm:$0xff] }
 0x19b   :  { %v1751_v45 = vadd.f32 %v1750_v41, %v1607_v26  ;;  %v1486_v16 = vadd.f32 %v1485_v3, %v3414_v32  ;;  %v3427_v41 = vld [vmem:[#allocation16_spill] sm:$0xff]  ;;  %v3429_v32 = vld [vmem:[#allocation18_spill] sm:$0xff] }
 0x19c   :  { %v1683_v14 = vadd.f32 %v1682_v15, %v1608_v31  ;;  %v1418_v37 = vadd.f32 %v1417_v10, %v3415_v42  ;;  %v1622_v26 = vmul.f32 %v3427_v41, %v3427_v41  ;;  %v1623_v31 = vmul.f32 %v3428_v24, %v3428_v24  ;;  %v3430_v42 = vld [vmem:[#allocation19_spill] sm:$0xff] }
 0x19d   :  { %v1752_v49 = vadd.f32 %v1751_v45, %v1609_v39  ;;  %v1487_v20 = vadd.f32 %v1486_v16, %v3416_v56  ;;  %v1624_v39 = vmul.f32 %v3429_v32, %v3429_v32  ;;  %v3431_v56 = vld [vmem:[#allocation20_spill] sm:$0xff] }
 0x19e   :  { %v1684_v50 = vadd.f32 %v1683_v14, %v1610_v51  ;;  %v1419_v0 = vadd.f32 %v1418_v37, %v3417_v63  ;;  %v1625_v51 = vmul.f32 %v3430_v42, %v3430_v42 }
 0x19f   :  { %v1753_v1 = vadd.f32 %v1752_v49, %v1611_v58  ;;  %v1488_v13 = vadd.f32 %v1487_v20, %v3418_v8  ;;  %v1626_v58 = vmul.f32 %v3431_v56, %v3431_v56  ;;  %v1629_v8 = vmul.f32 %v3128_v7, %v3128_v7 }
 0x1a0   :  { %v1685_v23 = vadd.f32 %v1684_v50, %v1612_v30  ;;  %v1420_v52 = vadd.f32 %v1419_v0, %v3419_v47  ;;  %v1628_v50 = vmul.f32 %v3126_v36, %v3126_v36  ;;  %v3432_v0 = vld [vmem:[#allocation21_spill] sm:$0xff] }
 0x1a1   :  { %v1754_v38 = vadd.f32 %v1753_v1, %v1613_v34  ;;  %v1489_v35 = vadd.f32 %v1488_v13, %v3420_v48  ;;  %v1627_v1 = vmul.f32 %v3432_v0, %v3432_v0 }
 0x1a2   :  { %v1686_v44 = vadd.f32 %v1685_v23, %v1614_v28  ;;  %v1421_v29 = vadd.f32 %v1420_v52, %v3421_v43 }
 0x1a3   :  { %v1755_v60 = vadd.f32 %v1754_v38, %v1615_v55  ;;  %v1490_v17 = vadd.f32 %v1489_v35, %v3422_v57  ;;  %v1630_v38 = vmul.f32 %v3130_v5, %v3130_v5  ;;  %v1631_v55 = vmul.f32 %v3132_v59, %v3132_v59 }
 0x1a4   :  { %v1687_v25 = vadd.f32 %v1686_v44, %v1616_v11  ;;  %v1422_v12 = vadd.f32 %v1421_v29, %v3423_v62 }
 0x1a5   :  { %v1756_v27 = vadd.f32 %v1755_v60, %v1617_v4  ;;  %v1491_v2 = vadd.f32 %v1490_v17, %v3424_v19  ;;  %v1779_v19 = vlaneseq }
 0x1a6   :  { %v1688_v40 = vadd.f32 %v1687_v25, %v1618_v61  ;;  %v1423_v9 = vadd.f32 %v1422_v12, %v3425_v33  ;;  %v2561_v61 = vmov 1983009808  }
 0x1a7   :  { %v1757_v21 = vadd.f32 %v1756_v27, %v1619_v18  ;;  %v1492_v22 = vadd.f32 %v1491_v2, %v3426_v54  ;;  %v1777_v27 = vunpack.c.l.s4 %v2561_v61  ;;  %v1780_v54 = vshrl.u32 %v1779_v19, 7 }
 0x1a8   :  { %v1689_v6 = vadd.f32 %v1688_v40, %v1620_v46  ;;  %v1424_v3 = vadd.f32 %v1423_v9, %v3427_v41 }
 0x1a9   :  { %v1758_v15 = vadd.f32 %v1757_v21, %v1621_v53  ;;  %v1493_v10 = vadd.f32 %v1492_v22, %v3428_v24  ;;  %v1778_v21 = vunpack.c.0.s8 %v1777_v27 }
 0x1aa   :  { %v1690_v45 = vadd.f32 %v1689_v6, %v1622_v26  ;;  %v1425_v16 = vadd.f32 %v1424_v3, %v3429_v32 }
 0x1ab   :  { %v1759_v14 = vadd.f32 %v1758_v15, %v1623_v31  ;;  %v1494_v37 = vadd.f32 %v1493_v10, %v3430_v42  ;;  %v1781_v15 = vsub.s32 %v1778_v21, %v1780_v54  ;;  %v1365_v31 = vld [vmem:[%s3352_s4] sm:$0xf] }
 0x1ac   :  { %v1691_v49 = vadd.f32 %v1690_v45, %v1624_v39  ;;  %v1426_v20 = vadd.f32 %v1425_v16, %v3431_v56 }
 0x1ad   :  { %v1760_v63 = vadd.f32 %v1759_v14, %v1625_v51  ;;  %v1495_v30 = vadd.f32 %v1494_v37, %v3432_v0 }
 0x1ae   :  { %v1692_v13 = vadd.f32 %v1691_v49, %v1626_v58  ;;  %v1427_v34 = vadd.f32 %v1426_v20, %v3126_v36 }
 0x1af   :  { %v1761_v23 = vadd.f32 %v1760_v63, %v1627_v1  ;;  %v1496_v47 = vadd.f32 %v1495_v30, %v3128_v7 }
 0x1b0   :  { %v1693_v52 = vadd.f32 %v1692_v13, %v1628_v50  ;;  %v1428_v28 = vadd.f32 %v1427_v34, %v3130_v5 }
 0x1b1   :  { %v1762_v48 = vadd.f32 %v1761_v23, %v1629_v8  ;;  %v1497_v35 = vadd.f32 %v1496_v47, %v3132_v59 }
 0x1b2   :  { %v1429_v44 = vrot.slane %v1428_v28, 4  ;;  %v1694_v43 = vadd.f32 %v1693_v52, %v1630_v38 }
 0x1b3   :  { %v1498_v29 = vrot.slane %v1497_v35, 4  ;;  %v1763_v11 = vadd.f32 %v1762_v48, %v1631_v55 }
 0x1b4   :  { %v1430_v36 = vadd.f32 %v1429_v44, %v1428_v28  ;;  %v1695_v60 = vrot.slane %v1694_v43, 4 }
 0x1b5   :  { %v1499_v57 = vadd.f32 %v1498_v29, %v1497_v35  ;;  %v1764_v7 = vrot.slane %v1763_v11, 4 }
 0x1b6   :  { %v1431_v17 = vrot.slane %v1430_v36, 2  ;;  %v1696_v4 = vadd.f32 %v1695_v60, %v1694_v43 }
 0x1b7   :  { %v1500_v25 = vrot.slane %v1499_v57, 2  ;;  %v1765_v62 = vadd.f32 %v1764_v7, %v1763_v11 }
 0x1b8   :  { %v1432_v12 = vadd.f32 %v1431_v17, %v1430_v36  ;;  %v1697_v5 = vrot.slane %v1696_v4, 2 }
 0x1b9   :  { %v1501_v2 = vadd.f32 %v1500_v25, %v1499_v57  ;;  %v1766_v18 = vrot.slane %v1765_v62, 2 }
 0x1ba   :  { %v1433_v59 = vrot.slane %v1432_v12, 1  ;;  %v1698_v40 = vadd.f32 %v1697_v5, %v1696_v4 }
 0x1bb   :  { %v1502_v33 = vrot.slane %v1501_v2, 1  ;;  %v1767_v9 = vadd.f32 %v1766_v18, %v1765_v62 }
 0x1bc   :  { %v1699_v46 = vrot.slane %v1698_v40, 1  ;;  %v1434_v53 = vadd.f32 %v1433_v59, %v1432_v12 }
 0x1bd   :  { %v1768_v22 = vrot.slane %v1767_v9, 1  ;;  %v1503_v41 = vadd.f32 %v1502_v33, %v1501_v2 }
 0x1be   :  { %v1700_v6 = vadd.f32 %v1699_v46, %v1698_v40 }
 0x1bf   :  { %v1769_v3 = vadd.f32 %v1768_v22, %v1767_v9 }
 0x1c0   :  { %v1771_v26 = vsel %vm1770_vm0, %v1434_v53, %v1700_v6 }
 0x1c1   :  { %v1772_v24 = vsel %vm1770_vm0, %v1503_v41, %v1769_v3 }
 0x1c2   :  { %v1775_v10 = vcombine.low %v1771_v26, %v1772_v24 }
 0x1c4   :  { %v1782_v45 = vrot.slane %v1775_v10, %v1781_v15 }
 0x1c6   :  { %v1784_v32 = vadd.f32 %v1782_v45, %v1365_v31 }
 0x1c8   :  { %1785 = vst [vmem:[%s3352_s4] sm:$0xf] %v1784_v32 }

// kernel: _lambda_.7
= control target key start
LH: loop header
LB: loop body
LE: loop exit
PB: predicated region body
PF: predicated region fallthrough
CT: control target
= control target key end

     0   :  { %s1800_s0 = inlined_call_operand.vmem [shape: bf16[512,128], index: 0, kind: input, shape index: {}]   ;;  %s1801_s1 = inlined_call_operand.vmem [shape: f32[1,128], index: 1, kind: input, shape index: {}]   ;;  %s1802_s2 = inlined_call_operand.vmem [shape: f32[1,128], index: 2, kind: input, shape index: {}]   ;;  %s1803_s3 = inlined_call_operand.vmem [shape: bf16[512,128], index: 3, kind: input, shape index: {}]   ;;  %s1804_s4 = inlined_call_operand.vmem [shape: f32[1,128], index: 4, kind: input, shape index: {}]   ;;  %s1805_s5 = inlined_call_operand.vmem [shape: f32[1,128], index: 5, kind: input, shape index: {}]   ;;  %s1806_s6 = inlined_call_operand.vmem [shape: f32[512,128], index: 6, kind: output, shape index: {}]  }
   0x1   :  { %v764_v0 = vld [vmem:[%s1800_s0] sm:$0xff]   ;;  %v1019_v9 = vld [vmem:[%s1800_s0 + $0x8] sm:$0xff]   ;;  %v1020_v15 = vld [vmem:[%s1800_s0 + $0x10] sm:$0xff]  }
   0x2   :  { %v1126_v1 = vld [vmem:[%s1801_s1] ss:$0 sm:$0xff]  ;;  %v765_v2 = vunpack.c.l.bf16 %v764_v0  ;;  %v766_v5 = vunpack.c.h.bf16 %v764_v0  ;;  %v1050_v10 = vld [vmem:[%s1803_s3 + $0x8] sm:$0xff]   ;;  %v769_v13 = vunpack.c.l.bf16 %v1019_v9  ;;  %v1051_v16 = vld [vmem:[%s1803_s3 + $0x10] sm:$0xff]   ;;  %v770_v19 = vunpack.c.h.bf16 %v1019_v9 }
   0x3   :  { %v892_v3 = vld [vmem:[%s1803_s3] sm:$0xff]   ;;  %v897_v14 = vunpack.c.l.bf16 %v1050_v10  ;;  %v898_v20 = vunpack.c.h.bf16 %v1050_v10  ;;  %v773_v28 = vunpack.c.l.bf16 %v1020_v15  ;;  %v901_v29 = vunpack.c.l.bf16 %v1051_v16  ;;  %v1021_v34 = vld [vmem:[%s1800_s0 + $0x18] sm:$0xff]   ;;  %v1023_v9 = vld [vmem:[%s1800_s0 + $0x28] sm:$0xff]  }
   0x4   :  { %v1134_v4 = vld [vmem:[%s1804_s4] ss:$0 sm:$0xff]  ;;  %v893_v7 = vunpack.c.l.bf16 %v892_v3  ;;  %v894_v8 = vunpack.c.h.bf16 %v892_v3  ;;  %v158_v11 = vmul.f32 %v765_v2, %v1126_v1  ;;  %v159_v12 = vmul.f32 %v766_v5, %v1126_v1  ;;  %v1052_v43 = vld [vmem:[%s1803_s3 + $0x18] sm:$0xff]  }
   0x5   :  { %v1139_v6 = vld [vmem:[%s1802_s2] ss:$0 sm:$0xff]  ;;  %v160_v23 = vmul.f32 %v769_v13, %v1126_v1  ;;  %v430_v24 = vmul.f32 %v897_v14, %v1134_v4  ;;  %v161_v26 = vmul.f32 %v770_v19, %v1126_v1  ;;  %v431_v27 = vmul.f32 %v898_v20, %v1134_v4  ;;  %v1054_v14 = vld [vmem:[%s1803_s3 + $0x28] sm:$0xff]  }
   0x6   :  { %v428_v17 = vmul.f32 %v893_v7, %v1134_v4  ;;  %v429_v18 = vmul.f32 %v894_v8, %v1134_v4  ;;  %v229_v21 = vadd.f32 %v1139_v6, %v158_v11  ;;  %v230_v22 = vadd.f32 %v1139_v6, %v159_v12  ;;  %v1164_v25 = vld [vmem:[%s1805_s5] ss:$0 sm:$0xff] }
   0x7   :  { %v231_v32 = vadd.f32 %v1139_v6, %v160_v23  ;;  %v774_v33 = vunpack.c.h.bf16 %v1020_v15  ;;  %v232_v35 = vadd.f32 %v1139_v6, %v161_v26  ;;  %v162_v36 = vmul.f32 %v773_v28, %v1126_v1  ;;  %v1022_v56 = vld [vmem:[%s1800_s0 + $0x20] sm:$0xff]   ;;  %v1024_v28 = vld [vmem:[%s1800_s0 + $0x30] sm:$0xff]  }
   0x8   :  { %v492_v30 = vadd.f32 %v428_v17, %v229_v21  ;;  %v493_v31 = vadd.f32 %v429_v18, %v230_v22  ;;  %v432_v37 = vmul.f32 %v901_v29, %v1134_v4  ;;  %v902_v38 = vunpack.c.h.bf16 %v1051_v16  ;;  %v1053_v61 = vld [vmem:[%s1803_s3 + $0x20] sm:$0xff]  }
   0x9   :  { %v494_v41 = vadd.f32 %v430_v24, %v231_v32  ;;  %v163_v42 = vmul.f32 %v774_v33, %v1126_v1  ;;  %v495_v44 = vadd.f32 %v431_v27, %v232_v35  ;;  %v233_v45 = vadd.f32 %v1139_v6, %v162_v36  ;;  %v1055_v33 = vld [vmem:[%s1803_s3 + $0x30] sm:$0xff]  }
   0xa   :  { %v563_v39 = vadd.f32 %v1164_v25, %v492_v30  ;;  %v564_v40 = vadd.f32 %v1164_v25, %v493_v31  ;;  %v433_v46 = vmul.f32 %v902_v38, %v1134_v4  ;;  %v777_v47 = vunpack.c.l.bf16 %v1021_v34 }
   0xb   :  { %v565_v50 = vadd.f32 %v1164_v25, %v494_v41  ;;  %v234_v51 = vadd.f32 %v1139_v6, %v163_v42  ;;  %v566_v52 = vadd.f32 %v1164_v25, %v495_v44  ;;  %v496_v53 = vadd.f32 %v432_v37, %v233_v45 }
   0xc   :  { %v627_v48 = vmax.f32 %v563_v39, 0.0  ;;  %v628_v49 = vmax.f32 %v564_v40, 0.0  ;;  %v164_v54 = vmul.f32 %v777_v47, %v1126_v1  ;;  %v905_v55 = vunpack.c.l.bf16 %v1052_v43 }
   0xd   :  { %v629_v57 = vmax.f32 %v565_v50, 0.0  ;;  %v497_v58 = vadd.f32 %v433_v46, %v234_v51  ;;  %v778_v59 = vunpack.c.h.bf16 %v1021_v34  ;;  %v906_v60 = vunpack.c.h.bf16 %v1052_v43  ;;  %v1025_v50 = vld [vmem:[%s1800_s0 + $0x38] sm:$0xff]  }
   0xe   :  { %691 = vst [vmem:[%s1806_s6] sm:$0xff] %v627_v48  ;;  %692 = vst [vmem:[%s1806_s6 + $0x8] sm:$0xff] %v628_v49  ;;  %v630_v62 = vmax.f32 %v566_v52, 0.0  ;;  %v567_v63 = vadd.f32 %v1164_v25, %v496_v53  ;;  %v235_v0 = vadd.f32 %v1139_v6, %v164_v54  ;;  %v434_v2 = vmul.f32 %v905_v55, %v1134_v4  ;;  %v1056_v51 = vld [vmem:[%s1803_s3 + $0x38] sm:$0xff]  }
   0xf   :  { %693 = vst [vmem:[%s1806_s6 + $0x10] sm:$0xff] %v629_v57  ;;  %v568_v3 = vadd.f32 %v1164_v25, %v497_v58  ;;  %v165_v5 = vmul.f32 %v778_v59, %v1126_v1  ;;  %v435_v7 = vmul.f32 %v906_v60, %v1134_v4  ;;  %v781_v8 = vunpack.c.l.bf16 %v1022_v56 }
  0x10   :  { %694 = vst [vmem:[%s1806_s6 + $0x18] sm:$0xff] %v630_v62  ;;  %v631_v10 = vmax.f32 %v567_v63, 0.0  ;;  %v498_v11 = vadd.f32 %v434_v2, %v235_v0  ;;  %v909_v12 = vunpack.c.l.bf16 %v1053_v61  ;;  %v782_v13 = vunpack.c.h.bf16 %v1022_v56  ;;  %v1026_v0 = vld [vmem:[%s1800_s0 + $0x40] sm:$0xff]  }
  0x11   :  { %v632_v15 = vmax.f32 %v568_v3, 0.0  ;;  %v236_v16 = vadd.f32 %v1139_v6, %v165_v5  ;;  %v166_v17 = vmul.f32 %v781_v8, %v1126_v1  ;;  %v910_v18 = vunpack.c.h.bf16 %v1053_v61  ;;  %v1057_v8 = vld [vmem:[%s1803_s3 + $0x40] sm:$0xff]  }
  0x12   :  { %695 = vst [vmem:[%s1806_s6 + $0x20] sm:$0xff] %v631_v10  ;;  %v569_v19 = vadd.f32 %v1164_v25, %v498_v11  ;;  %v436_v20 = vmul.f32 %v909_v12, %v1134_v4  ;;  %v167_v21 = vmul.f32 %v782_v13, %v1126_v1  ;;  %v785_v22 = vunpack.c.l.bf16 %v1023_v9 }
  0x13   :  { %696 = vst [vmem:[%s1806_s6 + $0x28] sm:$0xff] %v632_v15  ;;  %v499_v23 = vadd.f32 %v435_v7, %v236_v16  ;;  %v237_v24 = vadd.f32 %v1139_v6, %v166_v17  ;;  %v437_v26 = vmul.f32 %v910_v18, %v1134_v4  ;;  %v913_v27 = vunpack.c.l.bf16 %v1054_v14 }
  0x14   :  { %v633_v29 = vmax.f32 %v569_v19, 0.0  ;;  %v238_v30 = vadd.f32 %v1139_v6, %v167_v21  ;;  %v168_v31 = vmul.f32 %v785_v22, %v1126_v1  ;;  %v786_v32 = vunpack.c.h.bf16 %v1023_v9  ;;  %v1027_v21 = vld [vmem:[%s1800_s0 + $0x48] sm:$0xff]  }
  0x15   :  { %v570_v34 = vadd.f32 %v1164_v25, %v499_v23  ;;  %v500_v35 = vadd.f32 %v436_v20, %v237_v24  ;;  %v438_v36 = vmul.f32 %v913_v27, %v1134_v4  ;;  %v914_v37 = vunpack.c.h.bf16 %v1054_v14  ;;  %v1058_v27 = vld [vmem:[%s1803_s3 + $0x48] sm:$0xff]  }
  0x16   :  { %697 = vst [vmem:[%s1806_s6 + $0x30] sm:$0xff] %v633_v29  ;;  %v501_v38 = vadd.f32 %v437_v26, %v238_v30  ;;  %v239_v39 = vadd.f32 %v1139_v6, %v168_v31  ;;  %v169_v40 = vmul.f32 %v786_v32, %v1126_v1  ;;  %v789_v41 = vunpack.c.l.bf16 %v1024_v28 }
  0x17   :  { %v634_v42 = vmax.f32 %v570_v34, 0.0  ;;  %v571_v43 = vadd.f32 %v1164_v25, %v500_v35  ;;  %v439_v44 = vmul.f32 %v914_v37, %v1134_v4  ;;  %v917_v45 = vunpack.c.l.bf16 %v1055_v33 }
  0x18   :  { %v572_v46 = vadd.f32 %v1164_v25, %v501_v38  ;;  %v502_v47 = vadd.f32 %v438_v36, %v239_v39  ;;  %v240_v48 = vadd.f32 %v1139_v6, %v169_v40  ;;  %v170_v49 = vmul.f32 %v789_v41, %v1126_v1 }
  0x19   :  { %698 = vst [vmem:[%s1806_s6 + $0x38] sm:$0xff] %v634_v42  ;;  %v635_v52 = vmax.f32 %v571_v43, 0.0  ;;  %v440_v53 = vmul.f32 %v917_v45, %v1134_v4  ;;  %v790_v54 = vunpack.c.h.bf16 %v1024_v28  ;;  %v918_v55 = vunpack.c.h.bf16 %v1055_v33  ;;  %v1059_v45 = vld [vmem:[%s1803_s3 + $0x50] sm:$0xff]  }
  0x1a   :  { %v636_v56 = vmax.f32 %v572_v46, 0.0  ;;  %v573_v57 = vadd.f32 %v1164_v25, %v502_v47  ;;  %v503_v58 = vadd.f32 %v439_v44, %v240_v48  ;;  %v241_v59 = vadd.f32 %v1139_v6, %v170_v49  ;;  %v1028_v44 = vld [vmem:[%s1800_s0 + $0x50] sm:$0xff]  }
  0x1b   :  { %699 = vst [vmem:[%s1806_s6 + $0x40] sm:$0xff] %v635_v52  ;;  %v171_v60 = vmul.f32 %v790_v54, %v1126_v1  ;;  %v441_v61 = vmul.f32 %v918_v55, %v1134_v4  ;;  %v793_v62 = vunpack.c.l.bf16 %v1025_v50  ;;  %v921_v63 = vunpack.c.l.bf16 %v1056_v51 }
  0x1c   :  { %700 = vst [vmem:[%s1806_s6 + $0x48] sm:$0xff] %v636_v56  ;;  %v637_v2 = vmax.f32 %v573_v57, 0.0  ;;  %v574_v3 = vadd.f32 %v1164_v25, %v503_v58  ;;  %v504_v5 = vadd.f32 %v440_v53, %v241_v59  ;;  %v794_v7 = vunpack.c.h.bf16 %v1025_v50  ;;  %v1029_v58 = vld [vmem:[%s1800_s0 + $0x58] sm:$0xff]  }
  0x1d   :  { %v242_v9 = vadd.f32 %v1139_v6, %v171_v60  ;;  %v172_v10 = vmul.f32 %v793_v62, %v1126_v1  ;;  %v442_v11 = vmul.f32 %v921_v63, %v1134_v4  ;;  %v922_v12 = vunpack.c.h.bf16 %v1056_v51  ;;  %v1060_v63 = vld [vmem:[%s1803_s3 + $0x58] sm:$0xff]  }
  0x1e   :  { %701 = vst [vmem:[%s1806_s6 + $0x50] sm:$0xff] %v637_v2  ;;  %v638_v13 = vmax.f32 %v574_v3, 0.0  ;;  %v575_v14 = vadd.f32 %v1164_v25, %v504_v5  ;;  %v173_v15 = vmul.f32 %v794_v7, %v1126_v1  ;;  %v797_v16 = vunpack.c.l.bf16 %v1026_v0 }
  0x1f   :  { %v505_v17 = vadd.f32 %v441_v61, %v242_v9  ;;  %v243_v18 = vadd.f32 %v1139_v6, %v172_v10  ;;  %v443_v19 = vmul.f32 %v922_v12, %v1134_v4  ;;  %v925_v20 = vunpack.c.l.bf16 %v1057_v8 }
  0x20   :  { %702 = vst [vmem:[%s1806_s6 + $0x58] sm:$0xff] %v638_v13  ;;  %v639_v22 = vmax.f32 %v575_v14, 0.0  ;;  %v244_v23 = vadd.f32 %v1139_v6, %v173_v15  ;;  %v174_v24 = vmul.f32 %v797_v16, %v1126_v1  ;;  %v798_v26 = vunpack.c.h.bf16 %v1026_v0  ;;  %v1030_v15 = vld [vmem:[%s1800_s0 + $0x60] sm:$0xff]  }
  0x21   :  { %v576_v28 = vadd.f32 %v1164_v25, %v505_v17  ;;  %v506_v29 = vadd.f32 %v442_v11, %v243_v18  ;;  %v444_v30 = vmul.f32 %v925_v20, %v1134_v4  ;;  %v926_v31 = vunpack.c.h.bf16 %v1057_v8  ;;  %v1061_v20 = vld [vmem:[%s1803_s3 + $0x60] sm:$0xff]  }
  0x22   :  { %703 = vst [vmem:[%s1806_s6 + $0x60] sm:$0xff] %v639_v22  ;;  %v507_v32 = vadd.f32 %v443_v19, %v244_v23  ;;  %v245_v33 = vadd.f32 %v1139_v6, %v174_v24  ;;  %v175_v34 = vmul.f32 %v798_v26, %v1126_v1  ;;  %v801_v35 = vunpack.c.l.bf16 %v1027_v21 }
  0x23   :  { %v640_v36 = vmax.f32 %v576_v28, 0.0  ;;  %v577_v37 = vadd.f32 %v1164_v25, %v506_v29  ;;  %v445_v38 = vmul.f32 %v926_v31, %v1134_v4  ;;  %v929_v39 = vunpack.c.l.bf16 %v1058_v27 }
  0x24   :  { %v578_v40 = vadd.f32 %v1164_v25, %v507_v32  ;;  %v508_v41 = vadd.f32 %v444_v30, %v245_v33  ;;  %v246_v42 = vadd.f32 %v1139_v6, %v175_v34  ;;  %v176_v43 = vmul.f32 %v801_v35, %v1126_v1 }
  0x25   :  { %704 = vst [vmem:[%s1806_s6 + $0x68] sm:$0xff] %v640_v36  ;;  %v641_v46 = vmax.f32 %v577_v37, 0.0  ;;  %v446_v47 = vmul.f32 %v929_v39, %v1134_v4  ;;  %v802_v48 = vunpack.c.h.bf16 %v1027_v21  ;;  %v930_v49 = vunpack.c.h.bf16 %v1058_v27  ;;  %v1062_v39 = vld [vmem:[%s1803_s3 + $0x68] sm:$0xff]  }
  0x26   :  { %v642_v50 = vmax.f32 %v578_v40, 0.0  ;;  %v579_v51 = vadd.f32 %v1164_v25, %v508_v41  ;;  %v509_v52 = vadd.f32 %v445_v38, %v246_v42  ;;  %v247_v53 = vadd.f32 %v1139_v6, %v176_v43  ;;  %v1031_v38 = vld [vmem:[%s1800_s0 + $0x68] sm:$0xff]  }
  0x27   :  { %705 = vst [vmem:[%s1806_s6 + $0x70] sm:$0xff] %v641_v46  ;;  %v177_v54 = vmul.f32 %v802_v48, %v1126_v1  ;;  %v447_v55 = vmul.f32 %v930_v49, %v1134_v4  ;;  %v805_v56 = vunpack.c.l.bf16 %v1028_v44  ;;  %v933_v57 = vunpack.c.l.bf16 %v1059_v45 }
  0x28   :  { %706 = vst [vmem:[%s1806_s6 + $0x78] sm:$0xff] %v642_v50  ;;  %v643_v59 = vmax.f32 %v579_v51, 0.0  ;;  %v580_v60 = vadd.f32 %v1164_v25, %v509_v52  ;;  %v510_v61 = vadd.f32 %v446_v47, %v247_v53  ;;  %v806_v62 = vunpack.c.h.bf16 %v1028_v44  ;;  %v1032_v52 = vld [vmem:[%s1800_s0 + $0x70] sm:$0xff]  }
  0x29   :  { %v248_v0 = vadd.f32 %v1139_v6, %v177_v54  ;;  %v178_v2 = vmul.f32 %v805_v56, %v1126_v1  ;;  %v448_v3 = vmul.f32 %v933_v57, %v1134_v4  ;;  %v934_v5 = vunpack.c.h.bf16 %v1059_v45  ;;  %v1063_v57 = vld [vmem:[%s1803_s3 + $0x70] sm:$0xff]  }
  0x2a   :  { %707 = vst [vmem:[%s1806_s6 + $0x80] sm:$0xff] %v643_v59  ;;  %v644_v7 = vmax.f32 %v580_v60, 0.0  ;;  %v581_v8 = vadd.f32 %v1164_v25, %v510_v61  ;;  %v179_v9 = vmul.f32 %v806_v62, %v1126_v1  ;;  %v809_v10 = vunpack.c.l.bf16 %v1029_v58 }
  0x2b   :  { %v511_v11 = vadd.f32 %v447_v55, %v248_v0  ;;  %v249_v12 = vadd.f32 %v1139_v6, %v178_v2  ;;  %v449_v13 = vmul.f32 %v934_v5, %v1134_v4  ;;  %v937_v14 = vunpack.c.l.bf16 %v1060_v63 }
  0x2c   :  { %708 = vst [vmem:[%s1806_s6 + $0x88] sm:$0xff] %v644_v7  ;;  %v645_v16 = vmax.f32 %v581_v8, 0.0  ;;  %v250_v17 = vadd.f32 %v1139_v6, %v179_v9  ;;  %v180_v18 = vmul.f32 %v809_v10, %v1126_v1  ;;  %v810_v19 = vunpack.c.h.bf16 %v1029_v58  ;;  %v1033_v9 = vld [vmem:[%s1800_s0 + $0x78] sm:$0xff]  }
  0x2d   :  { %v582_v21 = vadd.f32 %v1164_v25, %v511_v11  ;;  %v512_v22 = vadd.f32 %v448_v3, %v249_v12  ;;  %v450_v23 = vmul.f32 %v937_v14, %v1134_v4  ;;  %v938_v24 = vunpack.c.h.bf16 %v1060_v63  ;;  %v1064_v14 = vld [vmem:[%s1803_s3 + $0x78] sm:$0xff]  }
  0x2e   :  { %709 = vst [vmem:[%s1806_s6 + $0x90] sm:$0xff] %v645_v16  ;;  %v513_v26 = vadd.f32 %v449_v13, %v250_v17  ;;  %v251_v27 = vadd.f32 %v1139_v6, %v180_v18  ;;  %v181_v28 = vmul.f32 %v810_v19, %v1126_v1  ;;  %v813_v29 = vunpack.c.l.bf16 %v1030_v15 }
  0x2f   :  { %v646_v30 = vmax.f32 %v582_v21, 0.0  ;;  %v583_v31 = vadd.f32 %v1164_v25, %v512_v22  ;;  %v451_v32 = vmul.f32 %v938_v24, %v1134_v4  ;;  %v941_v33 = vunpack.c.l.bf16 %v1061_v20 }
  0x30   :  { %v584_v34 = vadd.f32 %v1164_v25, %v513_v26  ;;  %v514_v35 = vadd.f32 %v450_v23, %v251_v27  ;;  %v252_v36 = vadd.f32 %v1139_v6, %v181_v28  ;;  %v182_v37 = vmul.f32 %v813_v29, %v1126_v1 }
  0x31   :  { %710 = vst [vmem:[%s1806_s6 + $0x98] sm:$0xff] %v646_v30  ;;  %v647_v40 = vmax.f32 %v583_v31, 0.0  ;;  %v452_v41 = vmul.f32 %v941_v33, %v1134_v4  ;;  %v814_v42 = vunpack.c.h.bf16 %v1030_v15  ;;  %v942_v43 = vunpack.c.h.bf16 %v1061_v20  ;;  %v1065_v33 = vld [vmem:[%s1803_s3 + $0x80] sm:$0xff]  }
  0x32   :  { %v648_v44 = vmax.f32 %v584_v34, 0.0  ;;  %v585_v45 = vadd.f32 %v1164_v25, %v514_v35  ;;  %v515_v46 = vadd.f32 %v451_v32, %v252_v36  ;;  %v253_v47 = vadd.f32 %v1139_v6, %v182_v37  ;;  %v1034_v32 = vld [vmem:[%s1800_s0 + $0x80] sm:$0xff]  }
  0x33   :  { %711 = vst [vmem:[%s1806_s6 + $0xa0] sm:$0xff] %v647_v40  ;;  %v183_v48 = vmul.f32 %v814_v42, %v1126_v1  ;;  %v453_v49 = vmul.f32 %v942_v43, %v1134_v4  ;;  %v817_v50 = vunpack.c.l.bf16 %v1031_v38  ;;  %v945_v51 = vunpack.c.l.bf16 %v1062_v39 }
  0x34   :  { %712 = vst [vmem:[%s1806_s6 + $0xa8] sm:$0xff] %v648_v44  ;;  %v649_v53 = vmax.f32 %v585_v45, 0.0  ;;  %v586_v54 = vadd.f32 %v1164_v25, %v515_v46  ;;  %v516_v55 = vadd.f32 %v452_v41, %v253_v47  ;;  %v818_v56 = vunpack.c.h.bf16 %v1031_v38  ;;  %v1035_v46 = vld [vmem:[%s1800_s0 + $0x88] sm:$0xff]  }
  0x35   :  { %v254_v58 = vadd.f32 %v1139_v6, %v183_v48  ;;  %v184_v59 = vmul.f32 %v817_v50, %v1126_v1  ;;  %v454_v60 = vmul.f32 %v945_v51, %v1134_v4  ;;  %v946_v61 = vunpack.c.h.bf16 %v1062_v39  ;;  %v1066_v51 = vld [vmem:[%s1803_s3 + $0x88] sm:$0xff]  }
  0x36   :  { %713 = vst [vmem:[%s1806_s6 + $0xb0] sm:$0xff] %v649_v53  ;;  %v650_v62 = vmax.f32 %v586_v54, 0.0  ;;  %v587_v63 = vadd.f32 %v1164_v25, %v516_v55  ;;  %v185_v0 = vmul.f32 %v818_v56, %v1126_v1  ;;  %v821_v2 = vunpack.c.l.bf16 %v1032_v52 }
  0x37   :  { %v517_v3 = vadd.f32 %v453_v49, %v254_v58  ;;  %v255_v5 = vadd.f32 %v1139_v6, %v184_v59  ;;  %v455_v7 = vmul.f32 %v946_v61, %v1134_v4  ;;  %v949_v8 = vunpack.c.l.bf16 %v1063_v57 }
  0x38   :  { %714 = vst [vmem:[%s1806_s6 + $0xb8] sm:$0xff] %v650_v62  ;;  %v651_v10 = vmax.f32 %v587_v63, 0.0  ;;  %v256_v11 = vadd.f32 %v1139_v6, %v185_v0  ;;  %v186_v12 = vmul.f32 %v821_v2, %v1126_v1  ;;  %v822_v13 = vunpack.c.h.bf16 %v1032_v52  ;;  %v1036_v0 = vld [vmem:[%s1800_s0 + $0x90] sm:$0xff]  }
  0x39   :  { %v588_v15 = vadd.f32 %v1164_v25, %v517_v3  ;;  %v518_v16 = vadd.f32 %v454_v60, %v255_v5  ;;  %v456_v17 = vmul.f32 %v949_v8, %v1134_v4  ;;  %v950_v18 = vunpack.c.h.bf16 %v1063_v57  ;;  %v1067_v8 = vld [vmem:[%s1803_s3 + $0x90] sm:$0xff]  }
  0x3a   :  { %715 = vst [vmem:[%s1806_s6 + $0xc0] sm:$0xff] %v651_v10  ;;  %v519_v19 = vadd.f32 %v455_v7, %v256_v11  ;;  %v257_v20 = vadd.f32 %v1139_v6, %v186_v12  ;;  %v187_v21 = vmul.f32 %v822_v13, %v1126_v1  ;;  %v825_v22 = vunpack.c.l.bf16 %v1033_v9 }
  0x3b   :  { %v652_v23 = vmax.f32 %v588_v15, 0.0  ;;  %v589_v24 = vadd.f32 %v1164_v25, %v518_v16  ;;  %v457_v26 = vmul.f32 %v950_v18, %v1134_v4  ;;  %v953_v27 = vunpack.c.l.bf16 %v1064_v14 }
  0x3c   :  { %v590_v28 = vadd.f32 %v1164_v25, %v519_v19  ;;  %v520_v29 = vadd.f32 %v456_v17, %v257_v20  ;;  %v258_v30 = vadd.f32 %v1139_v6, %v187_v21  ;;  %v188_v31 = vmul.f32 %v825_v22, %v1126_v1 }
  0x3d   :  { %716 = vst [vmem:[%s1806_s6 + $0xc8] sm:$0xff] %v652_v23  ;;  %v653_v34 = vmax.f32 %v589_v24, 0.0  ;;  %v458_v35 = vmul.f32 %v953_v27, %v1134_v4  ;;  %v826_v36 = vunpack.c.h.bf16 %v1033_v9  ;;  %v954_v37 = vunpack.c.h.bf16 %v1064_v14  ;;  %v1068_v27 = vld [vmem:[%s1803_s3 + $0x98] sm:$0xff]  }
  0x3e   :  { %v654_v38 = vmax.f32 %v590_v28, 0.0  ;;  %v591_v39 = vadd.f32 %v1164_v25, %v520_v29  ;;  %v521_v40 = vadd.f32 %v457_v26, %v258_v30  ;;  %v259_v41 = vadd.f32 %v1139_v6, %v188_v31  ;;  %v1037_v26 = vld [vmem:[%s1800_s0 + $0x98] sm:$0xff]  }
  0x3f   :  { %717 = vst [vmem:[%s1806_s6 + $0xd0] sm:$0xff] %v653_v34  ;;  %v189_v42 = vmul.f32 %v826_v36, %v1126_v1  ;;  %v459_v43 = vmul.f32 %v954_v37, %v1134_v4  ;;  %v829_v44 = vunpack.c.l.bf16 %v1034_v32  ;;  %v957_v45 = vunpack.c.l.bf16 %v1065_v33 }
  0x40   :  { %718 = vst [vmem:[%s1806_s6 + $0xd8] sm:$0xff] %v654_v38  ;;  %v655_v47 = vmax.f32 %v591_v39, 0.0  ;;  %v592_v48 = vadd.f32 %v1164_v25, %v521_v40  ;;  %v522_v49 = vadd.f32 %v458_v35, %v259_v41  ;;  %v830_v50 = vunpack.c.h.bf16 %v1034_v32  ;;  %v1038_v40 = vld [vmem:[%s1800_s0 + $0xa0] sm:$0xff]  }
  0x41   :  { %v260_v52 = vadd.f32 %v1139_v6, %v189_v42  ;;  %v190_v53 = vmul.f32 %v829_v44, %v1126_v1  ;;  %v460_v54 = vmul.f32 %v957_v45, %v1134_v4  ;;  %v958_v55 = vunpack.c.h.bf16 %v1065_v33  ;;  %v1069_v45 = vld [vmem:[%s1803_s3 + $0xa0] sm:$0xff]  }
  0x42   :  { %719 = vst [vmem:[%s1806_s6 + $0xe0] sm:$0xff] %v655_v47  ;;  %v656_v56 = vmax.f32 %v592_v48, 0.0  ;;  %v593_v57 = vadd.f32 %v1164_v25, %v522_v49  ;;  %v191_v58 = vmul.f32 %v830_v50, %v1126_v1  ;;  %v833_v59 = vunpack.c.l.bf16 %v1035_v46 }
  0x43   :  { %v523_v60 = vadd.f32 %v459_v43, %v260_v52  ;;  %v261_v61 = vadd.f32 %v1139_v6, %v190_v53  ;;  %v461_v62 = vmul.f32 %v958_v55, %v1134_v4  ;;  %v961_v63 = vunpack.c.l.bf16 %v1066_v51 }
  0x44   :  { %720 = vst [vmem:[%s1806_s6 + $0xe8] sm:$0xff] %v656_v56  ;;  %v657_v2 = vmax.f32 %v593_v57, 0.0  ;;  %v262_v3 = vadd.f32 %v1139_v6, %v191_v58  ;;  %v192_v5 = vmul.f32 %v833_v59, %v1126_v1  ;;  %v834_v7 = vunpack.c.h.bf16 %v1035_v46  ;;  %v1039_v58 = vld [vmem:[%s1800_s0 + $0xa8] sm:$0xff]  }
  0x45   :  { %v594_v9 = vadd.f32 %v1164_v25, %v523_v60  ;;  %v524_v10 = vadd.f32 %v460_v54, %v261_v61  ;;  %v462_v11 = vmul.f32 %v961_v63, %v1134_v4  ;;  %v962_v12 = vunpack.c.h.bf16 %v1066_v51  ;;  %v1070_v63 = vld [vmem:[%s1803_s3 + $0xa8] sm:$0xff]  }
  0x46   :  { %721 = vst [vmem:[%s1806_s6 + $0xf0] sm:$0xff] %v657_v2  ;;  %v525_v13 = vadd.f32 %v461_v62, %v262_v3  ;;  %v263_v14 = vadd.f32 %v1139_v6, %v192_v5  ;;  %v193_v15 = vmul.f32 %v834_v7, %v1126_v1  ;;  %v837_v16 = vunpack.c.l.bf16 %v1036_v0 }
  0x47   :  { %v658_v17 = vmax.f32 %v594_v9, 0.0  ;;  %v595_v18 = vadd.f32 %v1164_v25, %v524_v10  ;;  %v463_v19 = vmul.f32 %v962_v12, %v1134_v4  ;;  %v965_v20 = vunpack.c.l.bf16 %v1067_v8 }
  0x48   :  { %v596_v21 = vadd.f32 %v1164_v25, %v525_v13  ;;  %v526_v22 = vadd.f32 %v462_v11, %v263_v14  ;;  %v264_v23 = vadd.f32 %v1139_v6, %v193_v15  ;;  %v194_v24 = vmul.f32 %v837_v16, %v1126_v1 }
  0x49   :  { %722 = vst [vmem:[%s1806_s6 + $0xf8] sm:$0xff] %v658_v17  ;;  %v659_v28 = vmax.f32 %v595_v18, 0.0  ;;  %v464_v29 = vmul.f32 %v965_v20, %v1134_v4  ;;  %v838_v30 = vunpack.c.h.bf16 %v1036_v0  ;;  %v966_v31 = vunpack.c.h.bf16 %v1067_v8  ;;  %v1071_v20 = vld [vmem:[%s1803_s3 + $0xb0] sm:$0xff]  }
  0x4a   :  { %v660_v32 = vmax.f32 %v596_v21, 0.0  ;;  %v597_v33 = vadd.f32 %v1164_v25, %v526_v22  ;;  %v527_v34 = vadd.f32 %v463_v19, %v264_v23  ;;  %v265_v35 = vadd.f32 %v1139_v6, %v194_v24  ;;  %v1040_v19 = vld [vmem:[%s1800_s0 + $0xb0] sm:$0xff]  }
  0x4b   :  { %723 = vst [vmem:[%s1806_s6 + $0x100] sm:$0xff] %v659_v28  ;;  %v195_v36 = vmul.f32 %v838_v30, %v1126_v1  ;;  %v465_v37 = vmul.f32 %v966_v31, %v1134_v4  ;;  %v841_v38 = vunpack.c.l.bf16 %v1037_v26  ;;  %v969_v39 = vunpack.c.l.bf16 %v1068_v27 }
  0x4c   :  { %724 = vst [vmem:[%s1806_s6 + $0x108] sm:$0xff] %v660_v32  ;;  %v661_v41 = vmax.f32 %v597_v33, 0.0  ;;  %v598_v42 = vadd.f32 %v1164_v25, %v527_v34  ;;  %v528_v43 = vadd.f32 %v464_v29, %v265_v35  ;;  %v842_v44 = vunpack.c.h.bf16 %v1037_v26  ;;  %v1041_v34 = vld [vmem:[%s1800_s0 + $0xb8] sm:$0xff]  }
  0x4d   :  { %v266_v46 = vadd.f32 %v1139_v6, %v195_v36  ;;  %v196_v47 = vmul.f32 %v841_v38, %v1126_v1  ;;  %v466_v48 = vmul.f32 %v969_v39, %v1134_v4  ;;  %v970_v49 = vunpack.c.h.bf16 %v1068_v27  ;;  %v1072_v39 = vld [vmem:[%s1803_s3 + $0xb8] sm:$0xff]  }
  0x4e   :  { %725 = vst [vmem:[%s1806_s6 + $0x110] sm:$0xff] %v661_v41  ;;  %v662_v50 = vmax.f32 %v598_v42, 0.0  ;;  %v599_v51 = vadd.f32 %v1164_v25, %v528_v43  ;;  %v197_v52 = vmul.f32 %v842_v44, %v1126_v1  ;;  %v845_v53 = vunpack.c.l.bf16 %v1038_v40 }
  0x4f   :  { %v529_v54 = vadd.f32 %v465_v37, %v266_v46  ;;  %v267_v55 = vadd.f32 %v1139_v6, %v196_v47  ;;  %v467_v56 = vmul.f32 %v970_v49, %v1134_v4  ;;  %v973_v57 = vunpack.c.l.bf16 %v1069_v45 }
  0x50   :  { %726 = vst [vmem:[%s1806_s6 + $0x118] sm:$0xff] %v662_v50  ;;  %v663_v59 = vmax.f32 %v599_v51, 0.0  ;;  %v268_v60 = vadd.f32 %v1139_v6, %v197_v52  ;;  %v198_v61 = vmul.f32 %v845_v53, %v1126_v1  ;;  %v846_v62 = vunpack.c.h.bf16 %v1038_v40  ;;  %v1042_v52 = vld [vmem:[%s1800_s0 + $0xc0] sm:$0xff]  }
  0x51   :  { %v600_v0 = vadd.f32 %v1164_v25, %v529_v54  ;;  %v530_v2 = vadd.f32 %v466_v48, %v267_v55  ;;  %v468_v3 = vmul.f32 %v973_v57, %v1134_v4  ;;  %v974_v5 = vunpack.c.h.bf16 %v1069_v45  ;;  %v1073_v57 = vld [vmem:[%s1803_s3 + $0xc0] sm:$0xff]  }
  0x52   :  { %727 = vst [vmem:[%s1806_s6 + $0x120] sm:$0xff] %v663_v59  ;;  %v531_v7 = vadd.f32 %v467_v56, %v268_v60  ;;  %v269_v8 = vadd.f32 %v1139_v6, %v198_v61  ;;  %v199_v9 = vmul.f32 %v846_v62, %v1126_v1  ;;  %v849_v10 = vunpack.c.l.bf16 %v1039_v58 }
  0x53   :  { %v664_v11 = vmax.f32 %v600_v0, 0.0  ;;  %v601_v12 = vadd.f32 %v1164_v25, %v530_v2  ;;  %v469_v13 = vmul.f32 %v974_v5, %v1134_v4  ;;  %v977_v14 = vunpack.c.l.bf16 %v1070_v63 }
  0x54   :  { %v602_v15 = vadd.f32 %v1164_v25, %v531_v7  ;;  %v532_v16 = vadd.f32 %v468_v3, %v269_v8  ;;  %v270_v17 = vadd.f32 %v1139_v6, %v199_v9  ;;  %v200_v18 = vmul.f32 %v849_v10, %v1126_v1 }
  0x55   :  { %728 = vst [vmem:[%s1806_s6 + $0x128] sm:$0xff] %v664_v11  ;;  %v665_v21 = vmax.f32 %v601_v12, 0.0  ;;  %v470_v22 = vmul.f32 %v977_v14, %v1134_v4  ;;  %v850_v23 = vunpack.c.h.bf16 %v1039_v58  ;;  %v978_v24 = vunpack.c.h.bf16 %v1070_v63  ;;  %v1074_v14 = vld [vmem:[%s1803_s3 + $0xc8] sm:$0xff]  }
  0x56   :  { %v666_v26 = vmax.f32 %v602_v15, 0.0  ;;  %v603_v27 = vadd.f32 %v1164_v25, %v532_v16  ;;  %v533_v28 = vadd.f32 %v469_v13, %v270_v17  ;;  %v271_v29 = vadd.f32 %v1139_v6, %v200_v18  ;;  %v1043_v13 = vld [vmem:[%s1800_s0 + $0xc8] sm:$0xff]  }
  0x57   :  { %729 = vst [vmem:[%s1806_s6 + $0x130] sm:$0xff] %v665_v21  ;;  %v201_v30 = vmul.f32 %v850_v23, %v1126_v1  ;;  %v471_v31 = vmul.f32 %v978_v24, %v1134_v4  ;;  %v853_v32 = vunpack.c.l.bf16 %v1040_v19  ;;  %v981_v33 = vunpack.c.l.bf16 %v1071_v20 }
  0x58   :  { %730 = vst [vmem:[%s1806_s6 + $0x138] sm:$0xff] %v666_v26  ;;  %v667_v35 = vmax.f32 %v603_v27, 0.0  ;;  %v604_v36 = vadd.f32 %v1164_v25, %v533_v28  ;;  %v534_v37 = vadd.f32 %v470_v22, %v271_v29  ;;  %v854_v38 = vunpack.c.h.bf16 %v1040_v19  ;;  %v1044_v28 = vld [vmem:[%s1800_s0 + $0xd0] sm:$0xff]  }
  0x59   :  { %v272_v40 = vadd.f32 %v1139_v6, %v201_v30  ;;  %v202_v41 = vmul.f32 %v853_v32, %v1126_v1  ;;  %v472_v42 = vmul.f32 %v981_v33, %v1134_v4  ;;  %v982_v43 = vunpack.c.h.bf16 %v1071_v20  ;;  %v1075_v33 = vld [vmem:[%s1803_s3 + $0xd0] sm:$0xff]  }
  0x5a   :  { %731 = vst [vmem:[%s1806_s6 + $0x140] sm:$0xff] %v667_v35  ;;  %v668_v44 = vmax.f32 %v604_v36, 0.0  ;;  %v605_v45 = vadd.f32 %v1164_v25, %v534_v37  ;;  %v203_v46 = vmul.f32 %v854_v38, %v1126_v1  ;;  %v857_v47 = vunpack.c.l.bf16 %v1041_v34 }
  0x5b   :  { %v535_v48 = vadd.f32 %v471_v31, %v272_v40  ;;  %v273_v49 = vadd.f32 %v1139_v6, %v202_v41  ;;  %v473_v50 = vmul.f32 %v982_v43, %v1134_v4  ;;  %v985_v51 = vunpack.c.l.bf16 %v1072_v39 }
  0x5c   :  { %732 = vst [vmem:[%s1806_s6 + $0x148] sm:$0xff] %v668_v44  ;;  %v669_v53 = vmax.f32 %v605_v45, 0.0  ;;  %v274_v54 = vadd.f32 %v1139_v6, %v203_v46  ;;  %v204_v55 = vmul.f32 %v857_v47, %v1126_v1  ;;  %v858_v56 = vunpack.c.h.bf16 %v1041_v34  ;;  %v1045_v46 = vld [vmem:[%s1800_s0 + $0xd8] sm:$0xff]  }
  0x5d   :  { %v606_v58 = vadd.f32 %v1164_v25, %v535_v48  ;;  %v536_v59 = vadd.f32 %v472_v42, %v273_v49  ;;  %v474_v60 = vmul.f32 %v985_v51, %v1134_v4  ;;  %v986_v61 = vunpack.c.h.bf16 %v1072_v39 }
  0x5e   :  { %733 = vst [vmem:[%s1806_s6 + $0x150] sm:$0xff] %v669_v53  ;;  %v537_v62 = vadd.f32 %v473_v50, %v274_v54  ;;  %v275_v63 = vadd.f32 %v1139_v6, %v204_v55  ;;  %v205_v0 = vmul.f32 %v858_v56, %v1126_v1  ;;  %v861_v2 = vunpack.c.l.bf16 %v1042_v52  ;;  %v1076_v50 = vld [vmem:[%s1803_s3 + $0xd8] sm:$0xff]   ;;  %v1672_v53 = vld [vmem:[%s1804_s4] ss:$0 sm:$0xff] }
  0x5f   :  { %v670_v3 = vmax.f32 %v606_v58, 0.0  ;;  %v607_v5 = vadd.f32 %v1164_v25, %v536_v59  ;;  %v475_v7 = vmul.f32 %v986_v61, %v1134_v4  ;;  %v989_v8 = vunpack.c.l.bf16 %v1073_v57 }
  0x60   :  { %v608_v9 = vadd.f32 %v1164_v25, %v537_v62  ;;  %v538_v10 = vadd.f32 %v474_v60, %v275_v63  ;;  %v276_v11 = vadd.f32 %v1139_v6, %v205_v0  ;;  %v206_v12 = vmul.f32 %v861_v2, %v1126_v1 }
  0x61   :  { %734 = vst [vmem:[%s1806_s6 + $0x158] sm:$0xff] %v670_v3  ;;  %v671_v15 = vmax.f32 %v607_v5, 0.0  ;;  %v476_v16 = vmul.f32 %v989_v8, %v1134_v4  ;;  %v862_v17 = vunpack.c.h.bf16 %v1042_v52  ;;  %v990_v18 = vunpack.c.h.bf16 %v1073_v57  ;;  %v1077_v8 = vld [vmem:[%s1803_s3 + $0xe0] sm:$0xff]  }
  0x62   :  { %v672_v19 = vmax.f32 %v608_v9, 0.0  ;;  %v609_v20 = vadd.f32 %v1164_v25, %v538_v10  ;;  %v539_v21 = vadd.f32 %v475_v7, %v276_v11  ;;  %v277_v22 = vadd.f32 %v1139_v6, %v206_v12  ;;  %v1046_v7 = vld [vmem:[%s1800_s0 + $0xe0] sm:$0xff]  }
  0x63   :  { %735 = vst [vmem:[%s1806_s6 + $0x160] sm:$0xff] %v671_v15  ;;  %v207_v23 = vmul.f32 %v862_v17, %v1126_v1  ;;  %v477_v24 = vmul.f32 %v990_v18, %v1134_v4  ;;  %v865_v26 = vunpack.c.l.bf16 %v1043_v13  ;;  %v993_v27 = vunpack.c.l.bf16 %v1074_v14 }
  0x64   :  { %736 = vst [vmem:[%s1806_s6 + $0x168] sm:$0xff] %v672_v19  ;;  %v673_v29 = vmax.f32 %v609_v20, 0.0  ;;  %v610_v30 = vadd.f32 %v1164_v25, %v539_v21  ;;  %v540_v31 = vadd.f32 %v476_v16, %v277_v22  ;;  %v866_v32 = vunpack.c.h.bf16 %v1043_v13  ;;  %v1698_v13 = vld [vmem:[%s1805_s5] ss:$0 sm:$0xff]  ;;  %v1047_v21 = vld [vmem:[%s1800_s0 + $0xe8] sm:$0xff]  }
  0x65   :  { %v278_v34 = vadd.f32 %v1139_v6, %v207_v23  ;;  %v208_v35 = vmul.f32 %v865_v26, %v1126_v1  ;;  %v478_v36 = vmul.f32 %v993_v27, %v1134_v4  ;;  %v994_v37 = vunpack.c.h.bf16 %v1074_v14  ;;  %v1078_v27 = vld [vmem:[%s1803_s3 + $0xe8] sm:$0xff]  }
  0x66   :  { %737 = vst [vmem:[%s1806_s6 + $0x170] sm:$0xff] %v673_v29  ;;  %v674_v38 = vmax.f32 %v610_v30, 0.0  ;;  %v611_v39 = vadd.f32 %v1164_v25, %v540_v31  ;;  %v209_v40 = vmul.f32 %v866_v32, %v1126_v1  ;;  %v869_v41 = vunpack.c.l.bf16 %v1044_v28  ;;  %v1656_v1 = vld [vmem:[%s1802_s2] ss:$0 sm:$0xff] }
  0x67   :  { %v541_v42 = vadd.f32 %v477_v24, %v278_v34  ;;  %v279_v43 = vadd.f32 %v1139_v6, %v208_v35  ;;  %v479_v44 = vmul.f32 %v994_v37, %v1134_v4  ;;  %v997_v45 = vunpack.c.l.bf16 %v1075_v33  ;;  %v1662_v4 = vld [vmem:[%s1801_s1] ss:$0 sm:$0xff] }
  0x68   :  { %738 = vst [vmem:[%s1806_s6 + $0x178] sm:$0xff] %v674_v38  ;;  %v675_v47 = vmax.f32 %v611_v39, 0.0  ;;  %v280_v48 = vadd.f32 %v1656_v1, %v209_v40  ;;  %v210_v6 = vmul.f32 %v1662_v4, %v869_v41  ;;  %v870_v49 = vunpack.c.h.bf16 %v1044_v28  ;;  %v1048_v40 = vld [vmem:[%s1800_s0 + $0xf0] sm:$0xff]  }
  0x69   :  { %v612_v51 = vadd.f32 %v1164_v25, %v541_v42  ;;  %v542_v52 = vadd.f32 %v478_v36, %v279_v43  ;;  %v480_v54 = vmul.f32 %v1672_v53, %v997_v45  ;;  %v998_v55 = vunpack.c.h.bf16 %v1075_v33  ;;  %v1079_v45 = vld [vmem:[%s1803_s3 + $0xf0] sm:$0xff]  }
  0x6a   :  { %739 = vst [vmem:[%s1806_s6 + $0x180] sm:$0xff] %v675_v47  ;;  %v543_v56 = vadd.f32 %v479_v44, %v280_v48  ;;  %v281_v57 = vadd.f32 %v1656_v1, %v210_v6  ;;  %v211_v58 = vmul.f32 %v1662_v4, %v870_v49  ;;  %v873_v59 = vunpack.c.l.bf16 %v1045_v46 }
  0x6b   :  { %v676_v60 = vmax.f32 %v612_v51, 0.0  ;;  %v613_v61 = vadd.f32 %v1164_v25, %v542_v52  ;;  %v481_v62 = vmul.f32 %v1672_v53, %v998_v55  ;;  %v1001_v63 = vunpack.c.l.bf16 %v1076_v50 }
  0x6c   :  { %v614_v0 = vadd.f32 %v1164_v25, %v543_v56  ;;  %v544_v2 = vadd.f32 %v480_v54, %v281_v57  ;;  %v282_v3 = vadd.f32 %v1656_v1, %v211_v58  ;;  %v212_v5 = vmul.f32 %v1662_v4, %v873_v59 }
  0x6d   :  { %740 = vst [vmem:[%s1806_s6 + $0x188] sm:$0xff] %v676_v60  ;;  %v677_v9 = vmax.f32 %v613_v61, 0.0  ;;  %v482_v25 = vmul.f32 %v1672_v53, %v1001_v63  ;;  %v874_v10 = vunpack.c.h.bf16 %v1045_v46  ;;  %v1002_v11 = vunpack.c.h.bf16 %v1076_v50  ;;  %v1080_v63 = vld [vmem:[%s1803_s3 + $0xf8] sm:$0xff]  }
  0x6e   :  { %v678_v12 = vmax.f32 %v614_v0, 0.0  ;;  %v615_v14 = vadd.f32 %v1698_v13, %v544_v2  ;;  %v545_v15 = vadd.f32 %v481_v62, %v282_v3  ;;  %v283_v16 = vadd.f32 %v1656_v1, %v212_v5  ;;  %v1049_v62 = vld [vmem:[%s1800_s0 + $0xf8] sm:$0xff]  }
  0x6f   :  { %741 = vst [vmem:[%s1806_s6 + $0x190] sm:$0xff] %v677_v9  ;;  %v213_v17 = vmul.f32 %v1662_v4, %v874_v10  ;;  %v483_v18 = vmul.f32 %v1672_v53, %v1002_v11  ;;  %v877_v19 = vunpack.c.l.bf16 %v1046_v7  ;;  %v1005_v20 = vunpack.c.l.bf16 %v1077_v8 }
  0x70   :  { %742 = vst [vmem:[%s1806_s6 + $0x198] sm:$0xff] %v678_v12  ;;  %v679_v22 = vmax.f32 %v615_v14, 0.0  ;;  %v616_v23 = vadd.f32 %v1698_v13, %v545_v15  ;;  %v546_v24 = vadd.f32 %v482_v25, %v283_v16  ;;  %v878_v26 = vunpack.c.h.bf16 %v1046_v7 }
  0x71   :  { %v284_v28 = vadd.f32 %v1656_v1, %v213_v17  ;;  %v214_v29 = vmul.f32 %v1662_v4, %v877_v19  ;;  %v484_v30 = vmul.f32 %v1672_v53, %v1005_v20  ;;  %v1006_v31 = vunpack.c.h.bf16 %v1077_v8 }
  0x72   :  { %743 = vst [vmem:[%s1806_s6 + $0x1a0] sm:$0xff] %v679_v22  ;;  %v680_v32 = vmax.f32 %v616_v23, 0.0  ;;  %v617_v33 = vadd.f32 %v1698_v13, %v546_v24  ;;  %v215_v34 = vmul.f32 %v1662_v4, %v878_v26  ;;  %v881_v35 = vunpack.c.l.bf16 %v1047_v21 }
  0x73   :  { %v547_v36 = vadd.f32 %v483_v18, %v284_v28  ;;  %v285_v37 = vadd.f32 %v1656_v1, %v214_v29  ;;  %v485_v38 = vmul.f32 %v1672_v53, %v1006_v31  ;;  %v1009_v39 = vunpack.c.l.bf16 %v1078_v27 }
  0x74   :  { %744 = vst [vmem:[%s1806_s6 + $0x1a8] sm:$0xff] %v680_v32  ;;  %v681_v41 = vmax.f32 %v617_v33, 0.0  ;;  %v286_v42 = vadd.f32 %v1656_v1, %v215_v34  ;;  %v216_v43 = vmul.f32 %v1662_v4, %v881_v35  ;;  %v882_v44 = vunpack.c.h.bf16 %v1047_v21 }
  0x75   :  { %v618_v46 = vadd.f32 %v1698_v13, %v547_v36  ;;  %v548_v47 = vadd.f32 %v484_v30, %v285_v37  ;;  %v486_v48 = vmul.f32 %v1672_v53, %v1009_v39  ;;  %v1010_v6 = vunpack.c.h.bf16 %v1078_v27 }
  0x76   :  { %745 = vst [vmem:[%s1806_s6 + $0x1b0] sm:$0xff] %v681_v41  ;;  %v549_v49 = vadd.f32 %v485_v38, %v286_v42  ;;  %v287_v50 = vadd.f32 %v1656_v1, %v216_v43  ;;  %v217_v51 = vmul.f32 %v1662_v4, %v882_v44  ;;  %v885_v52 = vunpack.c.l.bf16 %v1048_v40 }
  0x77   :  { %v682_v54 = vmax.f32 %v618_v46, 0.0  ;;  %v619_v55 = vadd.f32 %v1698_v13, %v548_v47  ;;  %v487_v56 = vmul.f32 %v1672_v53, %v1010_v6  ;;  %v1013_v57 = vunpack.c.l.bf16 %v1079_v45 }
  0x78   :  { %v620_v58 = vadd.f32 %v1698_v13, %v549_v49  ;;  %v550_v59 = vadd.f32 %v486_v48, %v287_v50  ;;  %v288_v60 = vadd.f32 %v1656_v1, %v217_v51  ;;  %v218_v61 = vmul.f32 %v1662_v4, %v885_v52 }
  0x79   :  { %746 = vst [vmem:[%s1806_s6 + $0x1b8] sm:$0xff] %v682_v54  ;;  %v683_v0 = vmax.f32 %v619_v55, 0.0  ;;  %v488_v2 = vmul.f32 %v1672_v53, %v1013_v57  ;;  %v886_v3 = vunpack.c.h.bf16 %v1048_v40  ;;  %v1014_v5 = vunpack.c.h.bf16 %v1079_v45 }
  0x7a   :  { %v684_v7 = vmax.f32 %v620_v58, 0.0  ;;  %v621_v8 = vadd.f32 %v1698_v13, %v550_v59  ;;  %v551_v9 = vadd.f32 %v487_v56, %v288_v60  ;;  %v289_v25 = vadd.f32 %v1656_v1, %v218_v61 }
  0x7b   :  { %747 = vst [vmem:[%s1806_s6 + $0x1c0] sm:$0xff] %v683_v0  ;;  %v219_v10 = vmul.f32 %v1662_v4, %v886_v3  ;;  %v489_v11 = vmul.f32 %v1672_v53, %v1014_v5  ;;  %v889_v12 = vunpack.c.l.bf16 %v1049_v62  ;;  %v1017_v14 = vunpack.c.l.bf16 %v1080_v63 }
  0x7c   :  { %748 = vst [vmem:[%s1806_s6 + $0x1c8] sm:$0xff] %v684_v7  ;;  %v685_v15 = vmax.f32 %v621_v8, 0.0  ;;  %v622_v16 = vadd.f32 %v1698_v13, %v551_v9  ;;  %v552_v17 = vadd.f32 %v488_v2, %v289_v25  ;;  %v890_v18 = vunpack.c.h.bf16 %v1049_v62 }
  0x7d   :  { %v290_v19 = vadd.f32 %v1656_v1, %v219_v10  ;;  %v220_v20 = vmul.f32 %v1662_v4, %v889_v12  ;;  %v490_v21 = vmul.f32 %v1672_v53, %v1017_v14  ;;  %v1018_v22 = vunpack.c.h.bf16 %v1080_v63 }
  0x7e   :  { %749 = vst [vmem:[%s1806_s6 + $0x1d0] sm:$0xff] %v685_v15  ;;  %v686_v23 = vmax.f32 %v622_v16, 0.0  ;;  %v623_v24 = vadd.f32 %v1698_v13, %v552_v17  ;;  %v221_v26 = vmul.f32 %v1662_v4, %v890_v18 }
  0x7f   :  { %v553_v27 = vadd.f32 %v489_v11, %v290_v19  ;;  %v291_v28 = vadd.f32 %v1656_v1, %v220_v20  ;;  %v491_v29 = vmul.f32 %v1672_v53, %v1018_v22 }
  0x80   :  { %750 = vst [vmem:[%s1806_s6 + $0x1d8] sm:$0xff] %v686_v23  ;;  %v687_v30 = vmax.f32 %v623_v24, 0.0  ;;  %v292_v31 = vadd.f32 %v1656_v1, %v221_v26 }
  0x81   :  { %v624_v32 = vadd.f32 %v1698_v13, %v553_v27  ;;  %v554_v33 = vadd.f32 %v490_v21, %v291_v28 }
  0x82   :  { %751 = vst [vmem:[%s1806_s6 + $0x1e0] sm:$0xff] %v687_v30  ;;  %v555_v4 = vadd.f32 %v491_v29, %v292_v31 }
  0x83   :  { %v688_v34 = vmax.f32 %v624_v32, 0.0  ;;  %v625_v35 = vadd.f32 %v1698_v13, %v554_v33 }
  0x84   :  { %v626_v53 = vadd.f32 %v1698_v13, %v555_v4 }
  0x85   :  { %752 = vst [vmem:[%s1806_s6 + $0x1e8] sm:$0xff] %v688_v34  ;;  %v689_v36 = vmax.f32 %v625_v35, 0.0 }
  0x86   :  { %v690_v37 = vmax.f32 %v626_v53, 0.0 }
  0x87   :  { %753 = vst [vmem:[%s1806_s6 + $0x1f0] sm:$0xff] %v689_v36 }
  0x88   :  { %754 = vst [vmem:[%s1806_s6 + $0x1f8] sm:$0xff] %v690_v37 }

// kernel: _lambda_.6
= control target key start
LH: loop header
LB: loop body
LE: loop exit
PB: predicated region body
PF: predicated region fallthrough
CT: control target
= control target key end

     0   :  { %vm1267_vm0 = vcmask 1040384   ;;  %s2532_s3 = inlined_call_operand.vmem [shape: bf16[128,128], index: 3, kind: input, shape index: {}]   ;;  %s2533_s0 = inlined_call_operand.vmem [shape: bf16[512,128], index: 0, kind: input, shape index: {}]   ;;  %s2534_s1 = inlined_call_operand.vmem [shape: f32[1,128], index: 1, kind: input, shape index: {}]   ;;  %s2535_s2 = inlined_call_operand.vmem [shape: f32[1,128], index: 2, kind: input, shape index: {}]   ;;  %s2536_s5 = inlined_call_operand.vmem [shape: f32[2,128], index: 5, kind: output, shape index: {1}]   ;;  %s2537_s4 = inlined_call_operand.vmem [shape: bf16[512,128], index: 4, kind: output, shape index: {0}]  }
   0x1   :  { %v1904_v0 = vld [vmem:[%s2532_s3] sm:$0xff]   ;;  %v1905_v1 = vld [vmem:[%s2532_s3 + $0x8] sm:$0xff]   ;;  %v1906_v2 = vld [vmem:[%s2532_s3 + $0x10] sm:$0xff]  }
   0x2   :  { %1807 = vmatprep.subr.bf16.mxu0 %v1904_v0  ;;  %1887 = vmatprep.subr.bf16.mxu1 %v1904_v0  ;;  %v1907_v3 = vld [vmem:[%s2532_s3 + $0x18] sm:$0xff]   ;;  %v1418_v4 = vld [vmem:[%s2533_s0] sm:$0xff]   ;;  %v1705_v8 = vld [vmem:[%s2533_s0 + $0x8] sm:$0xff]  }
   0x3   :  { %1808 = vmatpush3.bf16.msra.mxu0 %v1904_v0  ;;  %1895 = vmatpush3.bf16.msra.mxu1 %v1904_v0  ;;  %v1961_v5 = vld [vmem:[%s2534_s1] ss:$0 sm:$0xff]  ;;  %v1419_v6 = vunpack.c.l.bf16 %v1418_v4  ;;  %v1420_v7 = vunpack.c.h.bf16 %v1418_v4  ;;  %v1706_v9 = vld [vmem:[%s2533_s0 + $0x10] sm:$0xff]   ;;  %v1423_v14 = vunpack.c.l.bf16 %v1705_v8  ;;  %v1424_v15 = vunpack.c.h.bf16 %v1705_v8  ;;  %v1909_v22 = vld [vmem:[%s2532_s3 + $0x28] sm:$0xff]  }
   0x4   :  { %1809 = vmatprep.subr.bf16.mxu0 %v1905_v1  ;;  %1888 = vmatprep.subr.bf16.mxu1 %v1905_v1  ;;  %v1972_v10 = vld [vmem:[%s2535_s2] ss:$0 sm:$0xff]  ;;  %v1427_v16 = vunpack.c.l.bf16 %v1706_v9  ;;  %v1428_v19 = vunpack.c.h.bf16 %v1706_v9  ;;  %v1707_v26 = vld [vmem:[%s2533_s0 + $0x18] sm:$0xff]   ;;  %v1910_v31 = vld [vmem:[%s2532_s3 + $0x30] sm:$0xff]  }
   0x5   :  { %v155_v11 = vmul.f32 %v1419_v6, %v1961_v5  ;;  %v156_v12 = vmul.f32 %v1420_v7, %v1961_v5  ;;  %v1908_v13 = vld [vmem:[%s2532_s3 + $0x20] sm:$0xff]   ;;  %v157_v23 = vmul.f32 %v1423_v14, %v1961_v5  ;;  %v158_v24 = vmul.f32 %v1424_v15, %v1961_v5  ;;  %v1709_v38 = vld [vmem:[%s2533_s0 + $0x28] sm:$0xff]   ;;  %v1710_v41 = vld [vmem:[%s2533_s0 + $0x30] sm:$0xff]  }
   0x6   :  { %v159_v25 = vmul.f32 %v1427_v16, %v1961_v5  ;;  %v160_v28 = vmul.f32 %v1428_v19, %v1961_v5  ;;  %v1708_v29 = vld [vmem:[%s2533_s0 + $0x20] sm:$0xff]   ;;  %v1431_v30 = vunpack.c.l.bf16 %v1707_v26  ;;  %v1432_v35 = vunpack.c.h.bf16 %v1707_v26  ;;  %v1711_v42 = vld [vmem:[%s2533_s0 + $0x38] sm:$0xff]   ;;  %v1713_v63 = vld [vmem:[%s2533_s0 + $0x48] sm:$0xff]  }
   0x7   :  { %1810 = vmatpush3.bf16.msra.mxu0 %v1905_v1  ;;  %1896 = vmatpush3.bf16.msra.mxu1 %v1905_v1  ;;  %v226_v17 = vadd.f32 %v1972_v10, %v155_v11  ;;  %v227_v18 = vadd.f32 %v1972_v10, %v156_v12  ;;  %v228_v32 = vadd.f32 %v1972_v10, %v157_v23  ;;  %v1435_v37 = vunpack.c.l.bf16 %v1708_v29  ;;  %v1911_v43 = vld [vmem:[%s2532_s3 + $0x38] sm:$0xff]   ;;  %v1712_v48 = vld [vmem:[%s2533_s0 + $0x40] sm:$0xff]   ;;  %v1714_v4 = vld [vmem:[%s2533_s0 + $0x50] sm:$0xff]  }
   0x8   :  { %1811 = vmatprep.subr.bf16.mxu0 %v1906_v2  ;;  %1889 = vmatprep.subr.bf16.mxu1 %v1906_v2  ;;  %v229_v33 = vadd.f32 %v1972_v10, %v158_v24  ;;  %v230_v34 = vadd.f32 %v1972_v10, %v159_v25  ;;  %v231_v36 = vadd.f32 %v1972_v10, %v160_v28  ;;  %v1436_v40 = vunpack.c.h.bf16 %v1708_v29  ;;  %v1715_v23 = vld [vmem:[%s2533_s0 + $0x58] sm:$0xff]  }
   0x9   :  { %v290_v20 = vmax.f32 %v226_v17, 0.0  ;;  %v291_v21 = vmax.f32 %v227_v18, 0.0  ;;  %v161_v39 = vmul.f32 %v1431_v30, %v1961_v5  ;;  %v292_v44 = vmax.f32 %v228_v32, 0.0 }
   0xa   :  { %v293_v45 = vmax.f32 %v229_v33, 0.0  ;;  %v294_v46 = vmax.f32 %v230_v34, 0.0  ;;  %v162_v47 = vmul.f32 %v1432_v35, %v1961_v5  ;;  %v295_v49 = vmax.f32 %v231_v36, 0.0 }
   0xb   :  { %1812 = vmatpush3.bf16.msra.mxu0 %v1906_v2  ;;  %1897 = vmatpush3.bf16.msra.mxu1 %v1906_v2  ;;  %v354_v27 = vpack.c.bf16 %v291_v21, %v290_v20  ;;  %v163_v50 = vmul.f32 %v1435_v37, %v1961_v5  ;;  %v1439_v51 = vunpack.c.l.bf16 %v1709_v38  ;;  %v1440_v52 = vunpack.c.h.bf16 %v1709_v38 }
   0xc   :  { %1813 = vmatprep.subr.bf16.mxu0 %v1907_v3  ;;  %1890 = vmatprep.subr.bf16.mxu1 %v1907_v3  ;;  %v1443_v53 = vunpack.c.l.bf16 %v1710_v41  ;;  %v1444_v54 = vunpack.c.h.bf16 %v1710_v41  ;;  %v1447_v55 = vunpack.c.l.bf16 %v1711_v42  ;;  %v1448_v56 = vunpack.c.h.bf16 %v1711_v42 }
   0xd   :  { %1823 = vmatprep.mubr.bf16.mxu0 %v354_v27  ;;  %v164_v57 = vmul.f32 %v1436_v40, %v1961_v5  ;;  %v1451_v58 = vunpack.c.l.bf16 %v1712_v48  ;;  %v1452_v59 = vunpack.c.h.bf16 %v1712_v48  ;;  %v355_v60 = vpack.c.bf16 %v293_v45, %v292_v44  ;;  %v1720_v44 = vld [vmem:[%s2533_s0 + $0x80] sm:$0xff]  }
   0xe   :  { %v232_v61 = vadd.f32 %v1972_v10, %v161_v39  ;;  %v233_v62 = vadd.f32 %v1972_v10, %v162_v47  ;;  %v356_v0 = vpack.c.bf16 %v295_v49, %v294_v46  ;;  %v234_v1 = vadd.f32 %v1972_v10, %v163_v50 }
   0xf   :  { %1814 = vmatpush3.bf16.msra.mxu0 %v1907_v3  ;;  %1898 = vmatpush3.bf16.msra.mxu1 %v1907_v3  ;;  %v165_v2 = vmul.f32 %v1439_v51, %v1961_v5  ;;  %v166_v3 = vmul.f32 %v1440_v52, %v1961_v5  ;;  %v167_v6 = vmul.f32 %v1443_v53, %v1961_v5  ;;  %v1455_v14 = vunpack.c.l.bf16 %v1713_v63  ;;  %v2065_v52 = vld [vmem:[%s2533_s0 + $0x60] sm:$0xff]  }
  0x10   :  { %1815 = vmatprep.subr.bf16.mxu0 %v1908_v13  ;;  %1891 = vmatprep.subr.bf16.mxu1 %v1908_v13  ;;  %v168_v7 = vmul.f32 %v1444_v54, %v1961_v5  ;;  %v169_v8 = vmul.f32 %v1447_v55, %v1961_v5  ;;  %v170_v9 = vmul.f32 %v1448_v56, %v1961_v5  ;;  %v296_v15 = vmax.f32 %v232_v61, 0.0 }
  0x11   :  { %v235_v11 = vadd.f32 %v1972_v10, %v164_v57  ;;  %v171_v12 = vmul.f32 %v1451_v58, %v1961_v5  ;;  %v297_v16 = vmax.f32 %v233_v62, 0.0  ;;  %v1456_v17 = vunpack.c.h.bf16 %v1713_v63 }
  0x12   :  { %v1459_v18 = vunpack.c.l.bf16 %v1714_v4  ;;  %v298_v19 = vmax.f32 %v234_v1, 0.0  ;;  %v236_v20 = vadd.f32 %v1972_v10, %v165_v2  ;;  %v237_v21 = vadd.f32 %v1972_v10, %v166_v3 }
  0x13   :  { %1816 = vmatpush3.bf16.msra.mxu0 %v1908_v13  ;;  %1899 = vmatpush3.bf16.msra.mxu1 %v1908_v13  ;;  %v172_v13 = vmul.f32 %v1452_v59, %v1961_v5  ;;  %v238_v24 = vadd.f32 %v1972_v10, %v167_v6  ;;  %v239_v25 = vadd.f32 %v1972_v10, %v168_v7  ;;  %v299_v28 = vmax.f32 %v235_v11, 0.0  ;;  %v1721_v59 = vld [vmem:[%s2533_s0 + $0x88] sm:$0xff]   ;;  %v1723_v11 = vld [vmem:[%s2533_s0 + $0x98] sm:$0xff]  }
  0x14   :  { %1817 = vmatprep.subr.bf16.mxu0 %v1909_v22  ;;  %1892 = vmatprep.subr.bf16.mxu1 %v1909_v22  ;;  %v240_v26 = vadd.f32 %v1972_v10, %v169_v8  ;;  %v241_v27 = vadd.f32 %v1972_v10, %v170_v9  ;;  %v242_v29 = vadd.f32 %v1972_v10, %v171_v12  ;;  %v1463_v35 = vunpack.c.l.bf16 %v1715_v23 }
  0x15   :  { %v243_v30 = vadd.f32 %v1972_v10, %v172_v13  ;;  %v357_v32 = vpack.c.bf16 %v297_v16, %v296_v15  ;;  %v174_v33 = vmul.f32 %v1456_v17, %v1961_v5  ;;  %v175_v34 = vmul.f32 %v1459_v18, %v1961_v5 }
  0x16   :  { %v300_v36 = vmax.f32 %v236_v20, 0.0  ;;  %v301_v37 = vmax.f32 %v237_v21, 0.0  ;;  %v1464_v39 = vunpack.c.h.bf16 %v1715_v23  ;;  %v302_v40 = vmax.f32 %v238_v24, 0.0  ;;  %v1724_v24 = vld [vmem:[%s2533_s0 + $0xa0] sm:$0xff]  }
  0x17   :  { %1818 = vmatpush3.bf16.msra.mxu0 %v1909_v22  ;;  %1900 = vmatpush3.bf16.msra.mxu1 %v1909_v22  ;;  %v1460_v22 = vunpack.c.h.bf16 %v1714_v4  ;;  %v303_v41 = vmax.f32 %v239_v25, 0.0  ;;  %v304_v42 = vmax.f32 %v240_v26, 0.0  ;;  %v358_v45 = vpack.c.bf16 %v299_v28, %v298_v19 }
  0x18   :  { %1819 = vmatprep.subr.bf16.mxu0 %v1910_v31  ;;  %1893 = vmatprep.subr.bf16.mxu1 %v1910_v31  ;;  %v306_v46 = vmax.f32 %v242_v29, 0.0  ;;  %v307_v47 = vmax.f32 %v243_v30, 0.0  ;;  %v245_v49 = vadd.f32 %v1972_v10, %v174_v33  ;;  %v2059_v50 = vadd.f32 %v1972_v10, %v175_v34  ;;  %v1725_v33 = vld [vmem:[%s2533_s0 + $0xa8] sm:$0xff]  }
  0x19   :  { %v176_v38 = vmul.f32 %v1460_v22, %v1961_v5  ;;  %v177_v51 = vmul.f32 %v1463_v35, %v1961_v5  ;;  %v178_v54 = vmul.f32 %v1464_v39, %v1961_v5  ;;  %v1483_v55 = vunpack.c.l.bf16 %v1720_v44 }
  0x1a   :  { %v359_v56 = vpack.c.bf16 %v301_v37, %v300_v36  ;;  %v360_v57 = vpack.c.bf16 %v303_v41, %v302_v40  ;;  %v1467_v62 = vunpack.c.l.bf16 %v2065_v52  ;;  %v1484_v63 = vunpack.c.h.bf16 %v1720_v44 }
  0x1b   :  { %1820 = vmatpush3.bf16.msra.mxu0 %v1910_v31  ;;  %1901 = vmatpush3.bf16.msra.mxu1 %v1910_v31  ;;  %v173_v31 = vmul.f32 %v1455_v14, %v1961_v5  ;;  %v2068_v53 = vadd.f32 %v1972_v10, %v176_v38  ;;  %v309_v1 = vmax.f32 %v245_v49, 0.0  ;;  %v310_v2 = vmax.f32 %v2059_v50, 0.0 }
  0x1c   :  { %1821 = vmatprep.subr.bf16.mxu0 %v1911_v43  ;;  %1894 = vmatprep.subr.bf16.mxu1 %v1911_v43  ;;  %v2084_v3 = vadd.f32 %v1972_v10, %v177_v51  ;;  %v187_v4 = vmul.f32 %v1483_v55, %v1961_v5  ;;  %v2089_v7 = vadd.f32 %v1972_v10, %v178_v54  ;;  %v1487_v9 = vunpack.c.l.bf16 %v1721_v59 }
  0x1d   :  { %v244_v48 = vadd.f32 %v1972_v10, %v173_v31  ;;  %v311_v6 = vmax.f32 %v2068_v53, 0.0  ;;  %v188_v8 = vmul.f32 %v1484_v63, %v1961_v5  ;;  %v1468_v12 = vunpack.c.h.bf16 %v2065_v52 }
  0x1e   :  { %v258_v13 = vadd.f32 %v1972_v10, %v187_v4  ;;  %v1488_v14 = vunpack.c.h.bf16 %v1721_v59  ;;  %v2098_v16 = vmul.f32 %v1467_v62, %v1961_v5  ;;  %v189_v18 = vmul.f32 %v1487_v9, %v1961_v5 }
  0x1f   :  { %1822 = vmatpush3.bf16.msra.mxu0 %v1911_v43  ;;  %1902 = vmatpush3.bf16.msra.mxu1 %v1911_v43  ;;  %v305_v43 = vmax.f32 %v241_v27, 0.0  ;;  %v308_v61 = vmax.f32 %v244_v48, 0.0  ;;  %v259_v17 = vadd.f32 %v1972_v10, %v188_v8  ;;  %v1495_v23 = vunpack.c.l.bf16 %v1723_v11 }
  0x20   :  { %v322_v20 = vmax.f32 %v258_v13, 0.0  ;;  %v190_v21 = vmul.f32 %v1488_v14, %v1961_v5  ;;  %v260_v27 = vadd.f32 %v1972_v10, %v189_v18  ;;  %v1496_v31 = vunpack.c.h.bf16 %v1723_v11  ;;  %v1728_v18 = vld [vmem:[%s2533_s0 + $0xc0] sm:$0xff]  }
  0x21   :  { %v2071_v58 = vpack.c.bf16 %v305_v43, %v304_v42  ;;  %v2107_v25 = vpack.c.bf16 %v309_v1, %v308_v61  ;;  %v323_v26 = vmax.f32 %v259_v17, 0.0  ;;  %v1499_v37 = vunpack.c.l.bf16 %v1724_v24  ;;  %v1727_v1 = vld [vmem:[%s2533_s0 + $0xb8] sm:$0xff]  }
  0x22   :  { %1824 = vmatmul.mubr.bf16.vlgmr.msra.gmra.mrb[0].mxu0 %v355_v60  ;;  %v2076_v60 = vpack.c.bf16 %v307_v47, %v306_v46  ;;  %v261_v29 = vadd.f32 %v1972_v10, %v190_v21  ;;  %v324_v35 = vmax.f32 %v260_v27, 0.0  ;;  %v194_v40 = vmul.f32 %v1496_v31, %v1961_v5  ;;  %v1726_v46 = vld [vmem:[%s2533_s0 + $0xb0] sm:$0xff]   ;;  %v1717_v47 = vld [vmem:[%s2533_s0 + $0x68] sm:$0xff]  }
  0x23   :  { %1827 = vmatprep.mubr.bf16.mxu0 %v356_v0  ;;  %v1722_v0 = vld [vmem:[%s2533_s0 + $0x90] sm:$0xff]   ;;  %v370_v34 = vpack.c.bf16 %v323_v26, %v322_v20  ;;  %v1500_v43 = vunpack.c.h.bf16 %v1724_v24  ;;  %v195_v44 = vmul.f32 %v1499_v37, %v1961_v5  ;;  %v1504_v54 = vunpack.c.h.bf16 %v1725_v33 }
  0x24   :  { %v1491_v15 = vunpack.c.l.bf16 %v1722_v0  ;;  %v1492_v19 = vunpack.c.h.bf16 %v1722_v0  ;;  %v325_v38 = vmax.f32 %v261_v29, 0.0  ;;  %v265_v49 = vadd.f32 %v1972_v10, %v194_v40  ;;  %v1730_v40 = vld [vmem:[%s2533_s0 + $0xd0] sm:$0xff]  }
  0x25   :  { %1855 = vmatprep.mubr.bf16.mxu1 %v370_v34  ;;  %v198_v62 = vmul.f32 %v1504_v54, %v1961_v5  ;;  %v1507_v63 = vunpack.c.l.bf16 %v1726_v46  ;;  %v1508_v0 = vunpack.c.h.bf16 %v1726_v46  ;;  %v312_v4 = vmax.f32 %v2084_v3, 0.0 }
  0x26   :  { %v191_v22 = vmul.f32 %v1491_v15, %v1961_v5  ;;  %v192_v28 = vmul.f32 %v1492_v19, %v1961_v5  ;;  %v371_v48 = vpack.c.bf16 %v325_v38, %v324_v35  ;;  %v329_v61 = vmax.f32 %v265_v49, 0.0 }
  0x27   :  { %v1471_v8 = vunpack.c.l.bf16 %v1717_v47  ;;  %v313_v13 = vmax.f32 %v2089_v7, 0.0  ;;  %v1472_v14 = vunpack.c.h.bf16 %v1717_v47  ;;  %v199_v15 = vmul.f32 %v1507_v63, %v1961_v5 }
  0x28   :  { %v262_v30 = vadd.f32 %v1972_v10, %v191_v22  ;;  %v263_v36 = vadd.f32 %v1972_v10, %v192_v28  ;;  %1856 = vmatmul.mubr.bf16.vlgmr.msra.gmra.mrb[0].mxu1 %v371_v48  ;;  %v200_v17 = vmul.f32 %v1508_v0, %v1961_v5  ;;  %v180_v3 = vmul.f32 %v1468_v12, %v1961_v5 }
  0x29   :  { %v1511_v19 = vunpack.c.l.bf16 %v1727_v1  ;;  %v1512_v20 = vunpack.c.h.bf16 %v1727_v1  ;;  %v270_v24 = vadd.f32 %v1972_v10, %v199_v15  ;;  %v1515_v27 = vunpack.c.l.bf16 %v1728_v18  ;;  %v1731_v15 = vld [vmem:[%s2533_s0 + $0xd8] sm:$0xff]  }
  0x2a   :  { %1828 = vmatmul.mubr.bf16.gmra.mrb[4].mxu0 %v357_v32  ;;  %v193_v32 = vmul.f32 %v1495_v23, %v1961_v5  ;;  %v326_v39 = vmax.f32 %v262_v30, 0.0  ;;  %v327_v42 = vmax.f32 %v263_v36, 0.0  ;;  %v269_v23 = vadd.f32 %v1972_v10, %v198_v62 }
  0x2b   :  { %1831 = vmatprep.mubr.bf16.mxu0 %v358_v45  ;;  %v1503_v45 = vunpack.c.l.bf16 %v1725_v33  ;;  %v1516_v52 = vunpack.c.h.bf16 %v1728_v18  ;;  %v364_v12 = vpack.c.bf16 %v311_v6, %v310_v2  ;;  %v250_v28 = vadd.f32 %v1972_v10, %v2098_v16  ;;  %v1719_v33 = vld [vmem:[%s2533_s0 + $0x78] sm:$0xff]   ;;  %v1729_v16 = vld [vmem:[%s2533_s0 + $0xc8] sm:$0xff]  }
  0x2c   :  { %v264_v41 = vadd.f32 %v1972_v10, %v193_v32  ;;  %v372_v55 = vpack.c.bf16 %v327_v42, %v326_v39  ;;  %v251_v31 = vadd.f32 %v1972_v10, %v180_v3  ;;  %v181_v32 = vmul.f32 %v1471_v8, %v1961_v5 }
  0x2d   :  { %v197_v59 = vmul.f32 %v1503_v45, %v1961_v5  ;;  %v201_v34 = vmul.f32 %v1511_v19, %v1961_v5  ;;  %v202_v50 = vmul.f32 %v1512_v20, %v1961_v5  ;;  %v365_v35 = vpack.c.bf16 %v313_v13, %v312_v4 }
  0x2e   :  { %v328_v51 = vmax.f32 %v264_v41, 0.0  ;;  %1859 = vmatprep.mubr.bf16.mxu1 %v372_v55  ;;  %v182_v53 = vmul.f32 %v1472_v14, %v1961_v5  ;;  %v333_v6 = vmax.f32 %v269_v23, 0.0  ;;  %v334_v36 = vmax.f32 %v270_v24, 0.0 }
  0x2f   :  { %v268_v22 = vadd.f32 %v1972_v10, %v197_v59  ;;  %v203_v38 = vmul.f32 %v1515_v27, %v1961_v5  ;;  %v204_v39 = vmul.f32 %v1516_v52, %v1961_v5  ;;  %v314_v41 = vmax.f32 %v250_v28, 0.0 }
  0x30   :  { %v373_v21 = vpack.c.bf16 %v329_v61, %v328_v51  ;;  %v315_v45 = vmax.f32 %v251_v31, 0.0  ;;  %v272_v46 = vadd.f32 %v1972_v10, %v201_v34  ;;  %v273_v47 = vadd.f32 %v1972_v10, %v202_v50 }
  0x31   :  { %v332_v2 = vmax.f32 %v268_v22, 0.0  ;;  %v1519_v48 = vunpack.c.l.bf16 %v1729_v16  ;;  %v1520_v51 = vunpack.c.h.bf16 %v1729_v16  ;;  %v1523_v54 = vunpack.c.l.bf16 %v1730_v40 }
  0x32   :  { %1832 = vmatmul.mubr.bf16.gmra.mrb[8].mxu0 %v359_v56  ;;  %v196_v56 = vmul.f32 %v1500_v43, %v1961_v5  ;;  %1860 = vmatmul.mubr.bf16.gmra.mrb[4].mxu1 %v373_v21  ;;  %v1524_v55 = vunpack.c.h.bf16 %v1730_v40  ;;  %v275_v59 = vadd.f32 %v1972_v10, %v204_v39  ;;  %v253_v61 = vadd.f32 %v1972_v10, %v182_v53  ;;  %v1732_v21 = vld [vmem:[%s2533_s0 + $0xe0] sm:$0xff]  }
  0x33   :  { %1835 = vmatprep.mubr.bf16.mxu0 %v360_v57  ;;  %v266_v57 = vadd.f32 %v1972_v10, %v195_v44  ;;  %v1479_v44 = vunpack.c.l.bf16 %v1719_v33  ;;  %v375_v49 = vpack.c.bf16 %v333_v6, %v332_v2  ;;  %v1480_v0 = vunpack.c.h.bf16 %v1719_v33 }
  0x34   :  { %v267_v9 = vadd.f32 %v1972_v10, %v196_v56  ;;  %v252_v56 = vadd.f32 %v1972_v10, %v181_v32  ;;  %v366_v1 = vpack.c.bf16 %v315_v45, %v314_v41  ;;  %v336_v4 = vmax.f32 %v272_v46, 0.0  ;;  %v1734_v41 = vld [vmem:[%s2533_s0 + $0xf0] sm:$0xff]  }
  0x35   :  { %v330_v11 = vmax.f32 %v266_v57, 0.0  ;;  %v274_v57 = vadd.f32 %v1972_v10, %v203_v38  ;;  %v337_v8 = vmax.f32 %v273_v47, 0.0  ;;  %v207_v13 = vmul.f32 %v1523_v54, %v1961_v5 }
  0x36   :  { %v331_v7 = vmax.f32 %v267_v9, 0.0  ;;  %v205_v9 = vmul.f32 %v1519_v48, %v1961_v5  ;;  %v208_v14 = vmul.f32 %v1524_v55, %v1961_v5  ;;  %v339_v3 = vmax.f32 %v275_v59, 0.0 }
  0x37   :  { %v338_v18 = vmax.f32 %v274_v57, 0.0  ;;  %v186_v20 = vmul.f32 %v1480_v0, %v1961_v5  ;;  %v377_v23 = vpack.c.bf16 %v337_v8, %v336_v4  ;;  %v278_v27 = vadd.f32 %v1972_v10, %v207_v13 }
  0x38   :  { %v374_v26 = vpack.c.bf16 %v331_v7, %v330_v11  ;;  %v206_v11 = vmul.f32 %v1520_v51, %v1961_v5  ;;  %v317_v7 = vmax.f32 %v253_v61, 0.0  ;;  %v276_v24 = vadd.f32 %v1972_v10, %v205_v9 }
  0x39   :  { %v279_v52 = vadd.f32 %v1972_v10, %v208_v14  ;;  %v378_v28 = vpack.c.bf16 %v339_v3, %v338_v18  ;;  %v257_v33 = vadd.f32 %v1972_v10, %v186_v20  ;;  %v342_v2 = vmax.f32 %v278_v27, 0.0 }
  0x3a   :  { %1836 = vmatmul.mubr.bf16.gmra.mrb[12].mxu0 %v2071_v58  ;;  %v1718_v58 = vld [vmem:[%s2533_s0 + $0x70] sm:$0xff]   ;;  %1863 = vmatprep.mubr.bf16.mxu1 %v374_v26  ;;  %v1527_v26 = vunpack.c.l.bf16 %v1731_v15  ;;  %v340_v50 = vmax.f32 %v276_v24, 0.0  ;;  %v1539_v51 = vunpack.c.l.bf16 %v1734_v41  ;;  %v1540_v54 = vunpack.c.h.bf16 %v1734_v41 }
  0x3b   :  { %1839 = vmatprep.mubr.bf16.mxu0 %v2076_v60  ;;  %v271_v60 = vadd.f32 %v1972_v10, %v200_v17  ;;  %v1475_v29 = vunpack.c.l.bf16 %v1718_v58  ;;  %v1476_v30 = vunpack.c.h.bf16 %v1718_v58  ;;  %1864 = vmatmul.mubr.bf16.gmra.mrb[8].mxu1 %v375_v49  ;;  %v185_v17 = vmul.f32 %v1479_v44, %v1961_v5 }
  0x3c   :  { %v316_v58 = vmax.f32 %v252_v56, 0.0  ;;  %v343_v6 = vmax.f32 %v279_v52, 0.0  ;;  %v321_v40 = vmax.f32 %v257_v33, 0.0  ;;  %v216_v0 = vmul.f32 %v1540_v54, %v1961_v5 }
  0x3d   :  { %v335_v37 = vmax.f32 %v271_v60, 0.0  ;;  %v183_v42 = vmul.f32 %v1475_v29, %v1961_v5  ;;  %v184_v43 = vmul.f32 %v1476_v30, %v1961_v5  ;;  %v277_v60 = vadd.f32 %v1972_v10, %v206_v11 }
  0x3e   :  { %v1531_v29 = vunpack.c.l.bf16 %v1732_v21  ;;  %v1532_v30 = vunpack.c.h.bf16 %v1732_v21  ;;  %v367_v31 = vpack.c.bf16 %v317_v7, %v316_v58  ;;  %v256_v32 = vadd.f32 %v1972_v10, %v185_v17 }
  0x3f   :  { %v254_v62 = vadd.f32 %v1972_v10, %v183_v42  ;;  %v255_v63 = vadd.f32 %v1972_v10, %v184_v43  ;;  %v341_v53 = vmax.f32 %v277_v60, 0.0  ;;  %v380_v45 = vpack.c.bf16 %v343_v6, %v342_v2 }
  0x40   :  { %v212_v38 = vmul.f32 %v1532_v30, %v1961_v5  ;;  %v320_v39 = vmax.f32 %v256_v32, 0.0  ;;  %v287_v17 = vadd.f32 %v1972_v10, %v216_v0  ;;  %v1912_v52 = vmov 0.0  }
  0x41   :  { %v318_v19 = vmax.f32 %v254_v62, 0.0  ;;  %v319_v22 = vmax.f32 %v255_v63, 0.0  ;;  %v379_v44 = vpack.c.bf16 %v341_v53, %v340_v50  ;;  %v215_v63 = vmul.f32 %v1539_v51, %v1961_v5  ;;  %1063 = vst [vmem:[%s2536_s5] sm:$0x3] %v1912_v52 }
  0x42   :  { %1840 = vmatmul.mubr.bf16.gmra.mrb[16].mxu0 %v2107_v25  ;;  %v376_v25 = vpack.c.bf16 %v335_v37, %v334_v36  ;;  %v1733_v36 = vld [vmem:[%s2533_s0 + $0xe8] sm:$0xff]   ;;  %v211_v37 = vmul.f32 %v1531_v29, %v1961_v5  ;;  %v283_v49 = vadd.f32 %v1972_v10, %v212_v38  ;;  %v369_v55 = vpack.c.bf16 %v321_v40, %v320_v39 }
  0x43   :  { %1843 = vmatprep.mubr.bf16.mxu0 %v364_v12  ;;  %v1528_v12 = vunpack.c.h.bf16 %v1731_v15  ;;  %v368_v34 = vpack.c.bf16 %v319_v22, %v318_v19  ;;  %v1535_v43 = vunpack.c.l.bf16 %v1733_v36  ;;  %v1536_v47 = vunpack.c.h.bf16 %v1733_v36 }
  0x44   :  { %1867 = vmatprep.mubr.bf16.mxu1 %v376_v25  ;;  %v282_v48 = vadd.f32 %v1972_v10, %v211_v37  ;;  %v347_v62 = vmax.f32 %v283_v49, 0.0  ;;  %v286_v15 = vadd.f32 %v1972_v10, %v215_v63  ;;  %v351_v20 = vmax.f32 %v287_v17, 0.0 }
  0x45   :  { %1868 = vmatmul.mubr.bf16.gmra.mrb[12].mxu1 %v377_v23  ;;  %v210_v16 = vmul.f32 %v1528_v12, %v1961_v5  ;;  %v213_v56 = vmul.f32 %v1535_v43, %v1961_v5  ;;  %v214_v59 = vmul.f32 %v1536_v47, %v1961_v5 }
  0x46   :  { %1871 = vmatprep.mubr.bf16.mxu1 %v378_v28  ;;  %v346_v61 = vmax.f32 %v282_v48, 0.0  ;;  %v350_v19 = vmax.f32 %v286_v15, 0.0 }
  0x47   :  { %v281_v46 = vadd.f32 %v1972_v10, %v210_v16  ;;  %v284_v4 = vadd.f32 %v1972_v10, %v213_v56  ;;  %v285_v9 = vadd.f32 %v1972_v10, %v214_v59 }
  0x48   :  { %v382_v14 = vpack.c.bf16 %v347_v62, %v346_v61  ;;  %v384_v24 = vpack.c.bf16 %v351_v20, %v350_v19 }
  0x49   :  { %v345_v57 = vmax.f32 %v281_v46, 0.0  ;;  %v348_v18 = vmax.f32 %v284_v4, 0.0  ;;  %v349_v3 = vmax.f32 %v285_v9, 0.0 }
  0x4a   :  { %1844 = vmatmul.mubr.bf16.gmra.mrb[20].mxu0 %v365_v35  ;;  %v209_v35 = vmul.f32 %v1527_v26, %v1961_v5 }
  0x4b   :  { %1847 = vmatprep.mubr.bf16.mxu0 %v366_v1  ;;  %v1735_v1 = vld [vmem:[%s2533_s0 + $0xf8] sm:$0xff]   ;;  %v383_v21 = vpack.c.bf16 %v349_v3, %v348_v18 }
  0x4c   :  { %v280_v42 = vadd.f32 %v1972_v10, %v209_v35  ;;  %v1543_v11 = vunpack.c.l.bf16 %v1735_v1  ;;  %v1544_v13 = vunpack.c.h.bf16 %v1735_v1 }
  0x4d   :  { %1872 = vmatmul.mubr.bf16.gmra.mrb[16].mxu1 %v379_v44 }
  0x4e   :  { %v344_v25 = vmax.f32 %v280_v42, 0.0  ;;  %1875 = vmatprep.mubr.bf16.mxu1 %v380_v45  ;;  %v217_v58 = vmul.f32 %v1543_v11, %v1961_v5  ;;  %v218_v7 = vmul.f32 %v1544_v13, %v1961_v5 }
  0x50   :  { %v381_v8 = vpack.c.bf16 %v345_v57, %v344_v25  ;;  %v288_v22 = vadd.f32 %v1972_v10, %v217_v58  ;;  %v289_v23 = vadd.f32 %v1972_v10, %v218_v7 }
  0x52   :  { %1848 = vmatmul.mubr.bf16.gmra.mrb[24].mxu0 %v367_v31  ;;  %v352_v26 = vmax.f32 %v288_v22, 0.0  ;;  %v353_v60 = vmax.f32 %v289_v23, 0.0 }
  0x53   :  { %1851 = vmatprep.mubr.bf16.mxu0 %v368_v34 }
  0x54   :  { %v385_v27 = vpack.c.bf16 %v353_v60, %v352_v26 }
  0x55   :  { %1876 = vmatmul.mubr.bf16.gmra.mrb[20].mxu1 %v381_v8 }
  0x56   :  { %1879 = vmatprep.mubr.bf16.mxu1 %v382_v14 }
  0x5a   :  { %1852 = vmatmul.mubr.bf16.gmra.mrb[28].mxu0 %v369_v55 }
  0x5d   :  { %1880 = vmatmul.mubr.bf16.gmra.mrb[24].mxu1 %v383_v21 }
  0x5e   :  { %1883 = vmatprep.mubr.bf16.mxu1 %v384_v24 }
  0x65   :  { %1884 = vmatmul.mubr.bf16.gmra.mrb[28].mxu1 %v385_v27 }
  0xf5   :  { %v1825_v5 = vpop.f32.mrb[0].mxu0 }
  0xf6   :  { %v484_v12 = vpop.f32.mrb[1].mxu0  ;;  %v1136_v34 = vmul.f32 %v1825_v5, %v1825_v5 }
  0xf7   :  { %v1826_v28 = vpop.f32.mrb[2].mxu0  ;;  %v1134_v31 = vmul.f32 %v484_v12, %v484_v12 }
  0xf8   :  { %v1553_v29 = vpack.c.bf16 %v1826_v28, %v1825_v5  ;;  %v487_v30 = vpop.f32.mrb[3].mxu0  ;;  %v1137_v53 = vmul.f32 %v1826_v28, %v1826_v28 }
  0xf9   :  { %v1548_v32 = vpack.c.bf16 %v487_v30, %v484_v12  ;;  %v1065_v10 = vadd.f32 %v487_v30, %v484_v12  ;;  %v1135_v33 = vmul.f32 %v487_v30, %v487_v30 }
  0xfa   :  { %1736 = vst [vmem:[%s2537_s4 + $0x8] sm:$0xff] %v1553_v29  }
  0xfb   :  { %1549 = vst [vmem:[%s2537_s4] sm:$0xff] %v1548_v32   ;;  %v1066_v50 = vadd.f32 %v1825_v5, %v1065_v10  ;;  %v1198_v35 = vadd.f32 %v1135_v33, %v1134_v31  ;;  %v2256_v15 = vpop.f32.mrb[0].mxu1 }
  0xfc   :  { %v2258_v17 = vpop.f32.mrb[1].mxu1 }
  0xfd   :  { %v1199_v2 = vadd.f32 %v1198_v35, %v1136_v34  ;;  %v1829_v6 = vpop.f32.mrb[4].mxu0  ;;  %v1067_v16 = vadd.f32 %v1826_v28, %v1066_v50  ;;  %v2260_v19 = vpop.f32.mrb[2].mxu1 }
  0xfe   :  { %v500_v36 = vpop.f32.mrb[5].mxu0  ;;  %v1140_v47 = vmul.f32 %v1829_v6, %v1829_v6  ;;  %v1633_v21 = vpack.c.bf16 %v2260_v19, %v2256_v15  ;;  %v2264_v22 = vpop.f32.mrb[3].mxu1 }
  0xff   :  { %v1068_v37 = vadd.f32 %v1067_v16, %v500_v36  ;;  %v1138_v38 = vmul.f32 %v500_v36, %v500_v36  ;;  %v1200_v39 = vadd.f32 %v1199_v2, %v1137_v53  ;;  %v1830_v40 = vpop.f32.mrb[6].mxu0  ;;  %v1628_v27 = vpack.c.bf16 %v2264_v22, %v2258_v17 }
 0x100   :  { %v1563_v41 = vpack.c.bf16 %v1830_v40, %v1829_v6  ;;  %v503_v42 = vpop.f32.mrb[7].mxu0  ;;  %v1141_v51 = vmul.f32 %v1830_v40, %v1830_v40  ;;  %1752 = vst [vmem:[%s2537_s4 + $0x88] sm:$0xff] %v1633_v21  }
 0x101   :  { %v1201_v43 = vadd.f32 %v1200_v39, %v1138_v38  ;;  %v1558_v44 = vpack.c.bf16 %v503_v42, %v500_v36  ;;  %v1069_v45 = vadd.f32 %v1068_v37, %v503_v42  ;;  %v1139_v46 = vmul.f32 %v503_v42, %v503_v42  ;;  %1751 = vst [vmem:[%s2537_s4 + $0x80] sm:$0xff] %v1628_v27  }
 0x102   :  { %1738 = vst [vmem:[%s2537_s4 + $0x18] sm:$0xff] %v1563_v41  }
 0x103   :  { %1737 = vst [vmem:[%s2537_s4 + $0x10] sm:$0xff] %v1558_v44   ;;  %v1070_v48 = vadd.f32 %v1829_v6, %v1069_v45  ;;  %v1202_v49 = vadd.f32 %v1201_v43, %v1139_v46 }
 0x105   :  { %v1203_v54 = vadd.f32 %v1202_v49, %v1140_v47  ;;  %v1833_v55 = vpop.f32.mrb[8].mxu0  ;;  %v1071_v56 = vadd.f32 %v1830_v40, %v1070_v48  ;;  %v2280_v33 = vpop.f32.mrb[4].mxu1 }
 0x106   :  { %v516_v25 = vpop.f32.mrb[9].mxu0  ;;  %v1144_v11 = vmul.f32 %v1833_v55, %v1833_v55  ;;  %v2282_v34 = vpop.f32.mrb[5].mxu1 }
 0x107   :  { %v1072_v57 = vadd.f32 %v1071_v56, %v516_v25  ;;  %v1142_v59 = vmul.f32 %v516_v25, %v516_v25  ;;  %v1204_v61 = vadd.f32 %v1203_v54, %v1141_v51  ;;  %v1834_v62 = vpop.f32.mrb[10].mxu0  ;;  %v2284_v6 = vpop.f32.mrb[6].mxu1 }
 0x108   :  { %v1573_v63 = vpack.c.bf16 %v1834_v62, %v1833_v55  ;;  %v519_v0 = vpop.f32.mrb[11].mxu0  ;;  %v1145_v18 = vmul.f32 %v1834_v62, %v1834_v62  ;;  %v1643_v36 = vpack.c.bf16 %v2284_v6, %v2280_v33  ;;  %v2288_v37 = vpop.f32.mrb[7].mxu1 }
 0x109   :  { %v1205_v1 = vadd.f32 %v1204_v61, %v1142_v59  ;;  %v1568_v4 = vpack.c.bf16 %v519_v0, %v516_v25  ;;  %v1073_v8 = vadd.f32 %v1072_v57, %v519_v0  ;;  %v1143_v9 = vmul.f32 %v519_v0, %v519_v0 }
 0x10a   :  { %1740 = vst [vmem:[%s2537_s4 + $0x28] sm:$0xff] %v1573_v63   ;;  %v1638_v42 = vpack.c.bf16 %v2288_v37, %v2282_v34  ;;  %1754 = vst [vmem:[%s2537_s4 + $0x98] sm:$0xff] %v1643_v36  }
 0x10b   :  { %1739 = vst [vmem:[%s2537_s4 + $0x20] sm:$0xff] %v1568_v4   ;;  %v1074_v13 = vadd.f32 %v1833_v55, %v1073_v8  ;;  %v1206_v14 = vadd.f32 %v1205_v1, %v1143_v9 }
 0x10c   :  { %1753 = vst [vmem:[%s2537_s4 + $0x90] sm:$0xff] %v1638_v42  }
 0x10d   :  { %v1207_v3 = vadd.f32 %v1206_v14, %v1144_v11  ;;  %v1837_v58 = vpop.f32.mrb[12].mxu0  ;;  %v1075_v7 = vadd.f32 %v1834_v62, %v1074_v13 }
 0x10e   :  { %v532_v20 = vpop.f32.mrb[13].mxu0  ;;  %v1148_v31 = vmul.f32 %v1837_v58, %v1837_v58  ;;  %v2304_v55 = vpop.f32.mrb[8].mxu1 }
 0x10f   :  { %v1076_v23 = vadd.f32 %v1075_v7, %v532_v20  ;;  %v1146_v24 = vmul.f32 %v532_v20, %v532_v20  ;;  %v1208_v26 = vadd.f32 %v1207_v3, %v1145_v18  ;;  %v1838_v60 = vpop.f32.mrb[14].mxu0  ;;  %v2306_v56 = vpop.f32.mrb[9].mxu1 }
 0x110   :  { %v1583_v52 = vpack.c.bf16 %v1838_v60, %v1837_v58  ;;  %v535_v5 = vpop.f32.mrb[15].mxu0  ;;  %v1149_v50 = vmul.f32 %v1838_v60, %v1838_v60  ;;  %v2308_v62 = vpop.f32.mrb[10].mxu1 }
 0x111   :  { %v1209_v12 = vadd.f32 %v1208_v26, %v1146_v24  ;;  %v1578_v28 = vpack.c.bf16 %v535_v5, %v532_v20  ;;  %v1077_v29 = vadd.f32 %v1076_v23, %v535_v5  ;;  %v1147_v30 = vmul.f32 %v535_v5, %v535_v5  ;;  %v2312_v1 = vpop.f32.mrb[11].mxu1 }
 0x112   :  { %1742 = vst [vmem:[%s2537_s4 + $0x38] sm:$0xff] %v1583_v52   ;;  %v1653_v0 = vpack.c.bf16 %v2308_v62, %v2304_v55  ;;  %v1648_v13 = vpack.c.bf16 %v2312_v1, %v2306_v56 }
 0x113   :  { %1741 = vst [vmem:[%s2537_s4 + $0x30] sm:$0xff] %v1578_v28   ;;  %v1078_v32 = vadd.f32 %v1837_v58, %v1077_v29  ;;  %v1210_v10 = vadd.f32 %v1209_v12, %v1147_v30 }
 0x114   :  { %1756 = vst [vmem:[%s2537_s4 + $0xa8] sm:$0xff] %v1653_v0   ;;  %1755 = vst [vmem:[%s2537_s4 + $0xa0] sm:$0xff] %v1648_v13  }
 0x115   :  { %v1211_v35 = vadd.f32 %v1210_v10, %v1148_v31  ;;  %v1841_v53 = vpop.f32.mrb[16].mxu0  ;;  %v1079_v2 = vadd.f32 %v1838_v60, %v1078_v32 }
 0x116   :  { %v548_v16 = vpop.f32.mrb[17].mxu0  ;;  %v1152_v49 = vmul.f32 %v1841_v53, %v1841_v53 }
 0x117   :  { %v1080_v38 = vadd.f32 %v1079_v2, %v548_v16  ;;  %v1150_v39 = vmul.f32 %v548_v16, %v548_v16  ;;  %v1212_v40 = vadd.f32 %v1211_v35, %v1149_v50  ;;  %v1842_v41 = vpop.f32.mrb[18].mxu0 }
 0x118   :  { %v1593_v43 = vpack.c.bf16 %v1842_v41, %v1841_v53  ;;  %v551_v44 = vpop.f32.mrb[19].mxu0  ;;  %v1153_v25 = vmul.f32 %v1842_v41, %v1842_v41  ;;  %v2328_v26 = vpop.f32.mrb[12].mxu1 }
 0x119   :  { %v1213_v45 = vadd.f32 %v1212_v40, %v1150_v39  ;;  %v1588_v46 = vpack.c.bf16 %v551_v44, %v548_v16  ;;  %v1081_v47 = vadd.f32 %v1080_v38, %v551_v44  ;;  %v1151_v48 = vmul.f32 %v551_v44, %v551_v44  ;;  %v2330_v60 = vpop.f32.mrb[13].mxu1 }
 0x11a   :  { %1744 = vst [vmem:[%s2537_s4 + $0x48] sm:$0xff] %v1593_v43   ;;  %v2332_v28 = vpop.f32.mrb[14].mxu1 }
 0x11b   :  { %1743 = vst [vmem:[%s2537_s4 + $0x40] sm:$0xff] %v1588_v46   ;;  %v1082_v51 = vadd.f32 %v1841_v53, %v1081_v47  ;;  %v1214_v54 = vadd.f32 %v1213_v45, %v1151_v48  ;;  %v1663_v30 = vpack.c.bf16 %v2332_v28, %v2328_v26  ;;  %v2336_v31 = vpop.f32.mrb[15].mxu1 }
 0x11c   :  { %v1658_v53 = vpack.c.bf16 %v2336_v31, %v2330_v60 }
 0x11d   :  { %v1215_v57 = vadd.f32 %v1214_v54, %v1152_v49  ;;  %v1845_v59 = vpop.f32.mrb[20].mxu0  ;;  %v1083_v61 = vadd.f32 %v1842_v41, %v1082_v51  ;;  %1758 = vst [vmem:[%s2537_s4 + $0xb8] sm:$0xff] %v1663_v30  }
 0x11e   :  { %v564_v63 = vpop.f32.mrb[21].mxu0  ;;  %v1156_v21 = vmul.f32 %v1845_v59, %v1845_v59  ;;  %1757 = vst [vmem:[%s2537_s4 + $0xb0] sm:$0xff] %v1658_v53   ;;  %v1167_v53 = vmul.f32 %v2264_v22, %v2264_v22 }
 0x11f   :  { %v1084_v4 = vadd.f32 %v1083_v61, %v564_v63  ;;  %v1154_v8 = vmul.f32 %v564_v63, %v564_v63  ;;  %v1216_v9 = vadd.f32 %v1215_v57, %v1153_v25  ;;  %v1846_v11 = vpop.f32.mrb[22].mxu0 }
 0x120   :  { %v1603_v14 = vpack.c.bf16 %v1846_v11, %v1845_v59  ;;  %v567_v18 = vpop.f32.mrb[23].mxu0  ;;  %v1157_v27 = vmul.f32 %v1846_v11, %v1846_v11  ;;  %v2352_v44 = vpop.f32.mrb[16].mxu1 }
 0x121   :  { %v1217_v3 = vadd.f32 %v1216_v9, %v1154_v8  ;;  %v1598_v58 = vpack.c.bf16 %v567_v18, %v564_v63  ;;  %v1085_v7 = vadd.f32 %v1084_v4, %v567_v18  ;;  %v1155_v20 = vmul.f32 %v567_v18, %v567_v18  ;;  %v2354_v45 = vpop.f32.mrb[17].mxu1 }
 0x122   :  { %1746 = vst [vmem:[%s2537_s4 + $0x58] sm:$0xff] %v1603_v14   ;;  %v2356_v51 = vpop.f32.mrb[18].mxu1 }
 0x123   :  { %1745 = vst [vmem:[%s2537_s4 + $0x50] sm:$0xff] %v1598_v58   ;;  %v1086_v23 = vadd.f32 %v1845_v59, %v1085_v7  ;;  %v1218_v24 = vadd.f32 %v1217_v3, %v1155_v20  ;;  %v1673_v25 = vpack.c.bf16 %v2356_v51, %v2352_v44  ;;  %v2360_v57 = vpop.f32.mrb[19].mxu1 }
 0x124   :  { %v1668_v4 = vpack.c.bf16 %v2360_v57, %v2354_v45 }
 0x125   :  { %v1219_v52 = vadd.f32 %v1218_v24, %v1156_v21  ;;  %v1849_v5 = vpop.f32.mrb[24].mxu0  ;;  %v1087_v12 = vadd.f32 %v1846_v11, %v1086_v23  ;;  %1760 = vst [vmem:[%s2537_s4 + $0xc8] sm:$0xff] %v1673_v25  }
 0x126   :  { %v580_v29 = vpop.f32.mrb[25].mxu0  ;;  %v1160_v41 = vmul.f32 %v1849_v5, %v1849_v5  ;;  %1759 = vst [vmem:[%s2537_s4 + $0xc0] sm:$0xff] %v1668_v4  }
 0x127   :  { %v1088_v32 = vadd.f32 %v1087_v12, %v580_v29  ;;  %v1158_v10 = vmul.f32 %v580_v29, %v580_v29  ;;  %v1220_v50 = vadd.f32 %v1219_v52, %v1157_v27  ;;  %v1850_v35 = vpop.f32.mrb[26].mxu0  ;;  %v1166_v52 = vmul.f32 %v2258_v17, %v2258_v17 }
 0x128   :  { %v1613_v2 = vpack.c.bf16 %v1850_v35, %v1849_v5  ;;  %v583_v16 = vpop.f32.mrb[27].mxu0  ;;  %v1161_v46 = vmul.f32 %v1850_v35, %v1850_v35  ;;  %v2376_v20 = vpop.f32.mrb[20].mxu1 }
 0x129   :  { %v1221_v36 = vadd.f32 %v1220_v50, %v1158_v10  ;;  %v1608_v38 = vpack.c.bf16 %v583_v16, %v580_v29  ;;  %v1089_v39 = vadd.f32 %v1088_v32, %v583_v16  ;;  %v1159_v40 = vmul.f32 %v583_v16, %v583_v16  ;;  %v2378_v21 = vpop.f32.mrb[21].mxu1 }
 0x12a   :  { %1748 = vst [vmem:[%s2537_s4 + $0x68] sm:$0xff] %v1613_v2  }
 0x12b   :  { %1747 = vst [vmem:[%s2537_s4 + $0x60] sm:$0xff] %v1608_v38   ;;  %v1090_v42 = vadd.f32 %v1849_v5, %v1089_v39  ;;  %v1222_v43 = vadd.f32 %v1221_v36, %v1159_v40  ;;  %v2382_v5 = vpop.f32.mrb[22].mxu1  ;;  %v1169_v39 = vmul.f32 %v2260_v19, %v2260_v19 }
 0x12c   :  { %v1683_v12 = vpack.c.bf16 %v2382_v5, %v2376_v20  ;;  %v2386_v29 = vpop.f32.mrb[23].mxu1 }
 0x12d   :  { %v1223_v47 = vadd.f32 %v1222_v43, %v1160_v41  ;;  %v1853_v48 = vpop.f32.mrb[28].mxu0  ;;  %v1091_v49 = vadd.f32 %v1850_v35, %v1090_v42  ;;  %v1678_v10 = vpack.c.bf16 %v2386_v29, %v2378_v21  ;;  %v1170_v41 = vmul.f32 %v2282_v34, %v2282_v34 }
 0x12e   :  { %v596_v54 = vpop.f32.mrb[29].mxu0  ;;  %v1164_v3 = vmul.f32 %v1853_v48, %v1853_v48  ;;  %1762 = vst [vmem:[%s2537_s4 + $0xd8] sm:$0xff] %v1683_v12   ;;  %v1178_v12 = vmul.f32 %v2330_v60, %v2330_v60 }
 0x12f   :  { %v1092_v59 = vadd.f32 %v1091_v49, %v596_v54  ;;  %v1162_v61 = vmul.f32 %v596_v54, %v596_v54  ;;  %v1224_v63 = vadd.f32 %v1223_v47, %v1161_v46  ;;  %v1854_v0 = vpop.f32.mrb[30].mxu0  ;;  %1761 = vst [vmem:[%s2537_s4 + $0xd0] sm:$0xff] %v1678_v10  }
 0x130   :  { %v1623_v8 = vpack.c.bf16 %v1854_v0, %v1853_v48  ;;  %v599_v9 = vpop.f32.mrb[31].mxu0  ;;  %v1165_v23 = vmul.f32 %v1854_v0, %v1854_v0  ;;  %v2403_v36 = vpop.f32.mrb[24].mxu1 }
 0x131   :  { %v1225_v11 = vadd.f32 %v1224_v63, %v1162_v61  ;;  %v1618_v13 = vpack.c.bf16 %v599_v9, %v596_v54  ;;  %v1093_v14 = vadd.f32 %v1092_v59, %v599_v9  ;;  %v1163_v18 = vmul.f32 %v599_v9, %v599_v9  ;;  %v2405_v38 = vpop.f32.mrb[25].mxu1 }
 0x132   :  { %1750 = vst [vmem:[%s2537_s4 + $0x78] sm:$0xff] %v1623_v8   ;;  %v2412_v42 = vpop.f32.mrb[26].mxu1  ;;  %v1171_v54 = vmul.f32 %v2288_v37, %v2288_v37  ;;  %v1174_v8 = vmul.f32 %v2306_v56, %v2306_v56 }
 0x133   :  { %1749 = vst [vmem:[%s2537_s4 + $0x70] sm:$0xff] %v1618_v13   ;;  %v1094_v58 = vadd.f32 %v1853_v48, %v1093_v14  ;;  %v1226_v7 = vadd.f32 %v1225_v11, %v1163_v18  ;;  %v1693_v43 = vpack.c.bf16 %v2412_v42, %v2403_v36 }
 0x135   :  { %v1227_v24 = vadd.f32 %v1226_v7, %v1164_v3  ;;  %v1095_v27 = vadd.f32 %v1854_v0, %v1094_v58  ;;  %1764 = vst [vmem:[%s2537_s4 + $0xe8] sm:$0xff] %v1693_v43   ;;  %v1173_v0 = vmul.f32 %v2284_v6, %v2284_v6  ;;  %v1175_v58 = vmul.f32 %v2312_v1, %v2312_v1 }
 0x137   :  { %v1096_v30 = vadd.f32 %v1095_v27, %v2258_v17  ;;  %v1228_v32 = vadd.f32 %v1227_v24, %v1165_v23  ;;  %v1168_v17 = vmul.f32 %v2256_v15, %v2256_v15  ;;  %v1177_v24 = vmul.f32 %v2308_v62, %v2308_v62 }
 0x139   :  { %v1229_v50 = vadd.f32 %v1228_v32, %v1166_v52  ;;  %v1097_v35 = vadd.f32 %v1096_v30, %v2264_v22 }
 0x13b   :  { %v1098_v2 = vadd.f32 %v2256_v15, %v1097_v35  ;;  %v1230_v16 = vadd.f32 %v1229_v50, %v1167_v53  ;;  %v2416_v15 = vpop.f32.mrb[27].mxu1  ;;  %v1179_v50 = vmul.f32 %v2336_v31, %v2336_v31 }
 0x13c   :  { %v1688_v48 = vpack.c.bf16 %v2416_v15, %v2405_v38  ;;  %v2433_v61 = vpop.f32.mrb[28].mxu1 }
 0x13d   :  { %v1231_v40 = vadd.f32 %v1230_v16, %v1168_v17  ;;  %v1099_v22 = vadd.f32 %v2260_v19, %v1098_v2  ;;  %v2435_v63 = vpop.f32.mrb[29].mxu1 }
 0x13e   :  { %1763 = vst [vmem:[%s2537_s4 + $0xe0] sm:$0xff] %v1688_v48   ;;  %v2442_v9 = vpop.f32.mrb[30].mxu1 }
 0x13f   :  { %v1100_v46 = vadd.f32 %v1099_v22, %v2282_v34  ;;  %v1232_v47 = vadd.f32 %v1231_v40, %v1169_v39  ;;  %v1172_v34 = vmul.f32 %v2280_v33, %v2280_v33  ;;  %v1703_v11 = vpack.c.bf16 %v2442_v9, %v2433_v61 }
 0x140   :  { %v1183_v22 = vmul.f32 %v2360_v57, %v2360_v57 }
 0x141   :  { %v1233_v19 = vadd.f32 %v1232_v47, %v1170_v41  ;;  %v1101_v49 = vadd.f32 %v1100_v46, %v2288_v37  ;;  %1766 = vst [vmem:[%s2537_s4 + $0xf8] sm:$0xff] %v1703_v11   ;;  %v1191_v11 = vmul.f32 %v2416_v15, %v2416_v15 }
 0x143   :  { %v1102_v25 = vadd.f32 %v2280_v33, %v1101_v49  ;;  %v1234_v59 = vadd.f32 %v1233_v19, %v1171_v54  ;;  %v2446_v33 = vpop.f32.mrb[31].mxu1  ;;  %v1187_v54 = vmul.f32 %v2386_v29, %v2386_v29 }
 0x144   :  { %v1698_v18 = vpack.c.bf16 %v2446_v33, %v2435_v63 }
 0x145   :  { %v1235_v4 = vadd.f32 %v1234_v59, %v1172_v34  ;;  %v1103_v37 = vadd.f32 %v2284_v6, %v1102_v25 }
 0x146   :  { %1765 = vst [vmem:[%s2537_s4 + $0xf0] sm:$0xff] %v1698_v18  }
 0x147   :  { %v1104_v13 = vadd.f32 %v1103_v37, %v2306_v56  ;;  %v1236_v14 = vadd.f32 %v1235_v4, %v1173_v0  ;;  %v1176_v56 = vmul.f32 %v2304_v55, %v2304_v55 }
 0x149   :  { %v1237_v6 = vadd.f32 %v1236_v14, %v1174_v8  ;;  %v1105_v3 = vadd.f32 %v1104_v13, %v2312_v1 }
 0x14b   :  { %v1106_v7 = vadd.f32 %v2304_v55, %v1105_v3  ;;  %v1238_v23 = vadd.f32 %v1237_v6, %v1175_v58  ;;  %v1180_v55 = vmul.f32 %v2328_v26, %v2328_v26 }
 0x14d   :  { %v1239_v27 = vadd.f32 %v1238_v23, %v1176_v56  ;;  %v1107_v52 = vadd.f32 %v2308_v62, %v1106_v7  ;;  %v1181_v62 = vmul.f32 %v2332_v28, %v2332_v28  ;;  %v1195_v7 = vmul.f32 %v2446_v33, %v2446_v33 }
 0x14f   :  { %v1108_v1 = vadd.f32 %v1107_v52, %v2330_v60  ;;  %v1240_v30 = vadd.f32 %v1239_v27, %v1177_v24  ;;  %v1182_v60 = vmul.f32 %v2354_v45, %v2354_v45 }
 0x151   :  { %v1241_v32 = vadd.f32 %v1240_v30, %v1178_v12  ;;  %v1109_v10 = vadd.f32 %v1108_v1, %v2336_v31 }
 0x153   :  { %v1110_v35 = vadd.f32 %v2328_v26, %v1109_v10  ;;  %v1242_v53 = vadd.f32 %v1241_v32, %v1179_v50  ;;  %v1184_v26 = vmul.f32 %v2352_v44, %v2352_v44 }
 0x155   :  { %v1243_v17 = vadd.f32 %v1242_v53, %v1180_v55  ;;  %v1111_v2 = vadd.f32 %v2332_v28, %v1110_v35  ;;  %v1185_v28 = vmul.f32 %v2356_v51, %v2356_v51 }
 0x157   :  { %v1112_v16 = vadd.f32 %v1111_v2, %v2354_v45  ;;  %v1244_v39 = vadd.f32 %v1243_v17, %v1181_v62  ;;  %v1186_v45 = vmul.f32 %v2378_v21, %v2378_v21 }
 0x159   :  { %v1245_v40 = vadd.f32 %v1244_v39, %v1182_v60  ;;  %v1113_v31 = vadd.f32 %v1112_v16, %v2360_v57 }
 0x15b   :  { %v1114_v41 = vadd.f32 %v2352_v44, %v1113_v31  ;;  %v1246_v43 = vadd.f32 %v1245_v40, %v1183_v22  ;;  %v1188_v44 = vmul.f32 %v2376_v20, %v2376_v20 }
 0x15d   :  { %v1247_v46 = vadd.f32 %v1246_v43, %v1184_v26  ;;  %v1115_v47 = vadd.f32 %v2356_v51, %v1114_v41  ;;  %v1189_v51 = vmul.f32 %v2382_v5, %v2382_v5 }
 0x15f   :  { %v1116_v48 = vadd.f32 %v1115_v47, %v2378_v21  ;;  %v1248_v19 = vadd.f32 %v1247_v46, %v1185_v28  ;;  %v1190_v21 = vmul.f32 %v2405_v38, %v2405_v38 }
 0x161   :  { %v1249_v49 = vadd.f32 %v1248_v19, %v1186_v45  ;;  %v1117_v57 = vadd.f32 %v1116_v48, %v2386_v29 }
 0x163   :  { %v1118_v34 = vadd.f32 %v2376_v20, %v1117_v57  ;;  %v1250_v25 = vadd.f32 %v1249_v49, %v1187_v54  ;;  %v1192_v20 = vmul.f32 %v2403_v36, %v2403_v36 }
 0x165   :  { %v1251_v59 = vadd.f32 %v1250_v25, %v1188_v44  ;;  %v1119_v0 = vadd.f32 %v2382_v5, %v1118_v34  ;;  %v1193_v5 = vmul.f32 %v2412_v42, %v2412_v42 }
 0x167   :  { %v1120_v4 = vadd.f32 %v1119_v0, %v2405_v38  ;;  %v1252_v37 = vadd.f32 %v1251_v59, %v1189_v51  ;;  %v1194_v38 = vmul.f32 %v2435_v63, %v2435_v63 }
 0x169   :  { %v1253_v8 = vadd.f32 %v1252_v37, %v1190_v21  ;;  %v1121_v29 = vadd.f32 %v1120_v4, %v2416_v15 }
 0x16b   :  { %v1122_v13 = vadd.f32 %v2403_v36, %v1121_v29  ;;  %v1254_v14 = vadd.f32 %v1253_v8, %v1191_v11  ;;  %v1196_v36 = vmul.f32 %v2433_v61, %v2433_v61 }
 0x16d   :  { %v1255_v18 = vadd.f32 %v1254_v14, %v1192_v20  ;;  %v1123_v6 = vadd.f32 %v2412_v42, %v1122_v13  ;;  %v1197_v42 = vmul.f32 %v2442_v9, %v2442_v9 }
 0x16f   :  { %v1124_v3 = vadd.f32 %v1123_v6, %v2435_v63  ;;  %v1256_v58 = vadd.f32 %v1255_v18, %v1193_v5 }
 0x171   :  { %v1257_v56 = vadd.f32 %v1256_v58, %v1194_v38  ;;  %v1125_v15 = vadd.f32 %v1124_v3, %v2446_v33 }
 0x173   :  { %v1126_v23 = vadd.f32 %v2433_v61, %v1125_v15  ;;  %v1258_v24 = vadd.f32 %v1257_v56, %v1195_v7  ;;  %v1064_v61 = vld [vmem:[%s2536_s5] sm:$0x3] }
 0x175   :  { %v1127_v27 = vadd.f32 %v2442_v9, %v1126_v23  ;;  %v1259_v52 = vadd.f32 %v1258_v24, %v1196_v36 }
 0x177   :  { %v1128_v63 = vrot.slane %v1127_v27, 4  ;;  %v1260_v12 = vadd.f32 %v1259_v52, %v1197_v42 }
 0x179   :  { %v1129_v1 = vadd.f32 %v1128_v63, %v1127_v27  ;;  %v1261_v30 = vrot.slane %v1260_v12, 4 }
 0x17b   :  { %v1130_v32 = vrot.slane %v1129_v1, 2  ;;  %v1262_v10 = vadd.f32 %v1261_v30, %v1260_v12 }
 0x17d   :  { %v1131_v50 = vadd.f32 %v1130_v32, %v1129_v1  ;;  %v1263_v33 = vrot.slane %v1262_v10, 2 }
 0x17f   :  { %v1132_v55 = vrot.slane %v1131_v50, 1  ;;  %v1264_v35 = vadd.f32 %v1263_v33, %v1262_v10 }
 0x181   :  { %v1265_v53 = vrot.slane %v1264_v35, 1  ;;  %v1133_v62 = vadd.f32 %v1132_v55, %v1131_v50 }
 0x183   :  { %v1266_v17 = vadd.f32 %v1265_v53, %v1264_v35 }
 0x185   :  { %v1268_v9 = vsel %vm1267_vm0, %v1133_v62, %v1266_v17 }
 0x186   :  { %v1269_v2 = vadd.f32 %v1268_v9, %v1064_v61 }
 0x188   :  { %1270 = vst [vmem:[%s2536_s5] sm:$0x3] %v1269_v2 }

// kernel: _lambda_.5
= control target key start
LH: loop header
LB: loop body
LE: loop exit
PB: predicated region body
PF: predicated region fallthrough
CT: control target
= control target key end

     0   :  { %s3643_s18 = smov 0   ;;  %s4921_s0 = inlined_call_operand.vmem [shape: bf16[2,16,16,128], index: 0, kind: input, shape index: {}]   ;;  %s4922_s1 = inlined_call_operand.vmem [shape: f32[1,128], index: 1, kind: input, shape index: {}]   ;;  %s4923_s2 = inlined_call_operand.vmem [shape: f32[1,128], index: 2, kind: input, shape index: {}]   ;;  %s4924_s3 = inlined_call_operand.vmem [shape: bf16[1152,128], index: 3, kind: input, shape index: {}]   ;;  %s4925_s4 = inlined_call_operand.vmem [shape: bf16[2,16,16,128], index: 4, kind: output, shape index: {0}]   ;;  %s4926_s5 = inlined_call_operand.vmem [shape: f32[2,128], index: 5, kind: output, shape index: {1}]  }
   0x1 LB: > { %s3649_s19 = sadd.s32 4294967295, %s3609_s18   ;;  %p2662_p0 = scmp.ge.s32.totalorder %s3609_s18, 1  ;;  %s3609_s18 = sphi %s3643_s18, %s16_s18  }
   0x2   : > { %p185_p1 = scmp.lt.s32.totalorder %s3609_s18, 3 }
   0x4   : > { %p186_p2 = pnand %p2662_p0, %p185_p1 }
   0x5   : > { %p213_p3 = scmp.lt.s32.totalorder (!%p186_p2), %s3649_s19, 1  ;;  %p2667_p4 = scmp.ne.s32.totalorder (!%p186_p2), %s3649_s19, 0 }
   0x6   : > { %189 = sbr.rel (%p186_p2) target bundleno = 669 (0x29d), region = 36 }
   0xd   : > { %s214_s20 = scalar_select %p213_p3, %s3649_s19, 1 }
   0xe   : > { %227 = sbr.rel (%p2667_p4) target bundleno = 52 (0x34), region = 40  ;;  %v3611_v0 = vmov (!%p2667_p4), 0.0  }
   0xf   : > { %s2777_s21 = sshll.u32 %s214_s20, 7  ;;  %228 = vst [vmem:[#allocation2] sm:$0xff] (!%p2667_p4), %v3611_v0  ;;  %229 = vst [vmem:[#allocation2 + $0x8] sm:$0xff] (!%p2667_p4), %v3611_v0 }
  0x10   : > { %s3658_s24 = scalar_lea.vmem %s4921_s0, %s2777_s21  ;;  %s3663_s27 = scalar_lea.vmem %s4925_s4, %s2777_s21  ;;  %230 = vst [vmem:[#allocation2 + $0x10] sm:$0xff] (!%p2667_p4), %v3611_v0  ;;  %231 = vst [vmem:[#allocation2 + $0x18] sm:$0xff] (!%p2667_p4), %v3611_v0 }
  0x11   : > { %232 = vst [vmem:[#allocation2 + $0x20] sm:$0xff] (!%p2667_p4), %v3611_v0  ;;  %233 = vst [vmem:[#allocation2 + $0x28] sm:$0xff] (!%p2667_p4), %v3611_v0 }
  0x12   : > { %234 = vst [vmem:[#allocation2 + $0x30] sm:$0xff] (!%p2667_p4), %v3611_v0  ;;  %235 = vst [vmem:[#allocation2 + $0x38] sm:$0xff] (!%p2667_p4), %v3611_v0 }
  0x13   : > { %236 = vst [vmem:[#allocation2 + $0x40] sm:$0xff] (!%p2667_p4), %v3611_v0  ;;  %237 = vst [vmem:[#allocation2 + $0x48] sm:$0xff] (!%p2667_p4), %v3611_v0 }
  0x14   : > { %238 = vst [vmem:[#allocation2 + $0x50] sm:$0xff] (!%p2667_p4), %v3611_v0  ;;  %239 = vst [vmem:[#allocation2 + $0x58] sm:$0xff] (!%p2667_p4), %v3611_v0 }
  0x15   : > { %240 = vst [vmem:[#allocation2 + $0x60] sm:$0xff] %v3611_v0  ;;  %241 = vst [vmem:[#allocation2 + $0x68] sm:$0xff] %v3611_v0 }
  0x16   : > { %242 = vst [vmem:[#allocation2 + $0x70] sm:$0xff] %v3611_v0  ;;  %243 = vst [vmem:[#allocation2 + $0x78] sm:$0xff] %v3611_v0 }
  0x17   : > { %244 = vst [vmem:[#allocation2 + $0x80] sm:$0xff] %v3611_v0  ;;  %245 = vst [vmem:[#allocation2 + $0x88] sm:$0xff] %v3611_v0 }
  0x18   : > { %246 = vst [vmem:[#allocation2 + $0x90] sm:$0xff] %v3611_v0  ;;  %247 = vst [vmem:[#allocation2 + $0x98] sm:$0xff] %v3611_v0 }
  0x19   : > { %248 = vst [vmem:[#allocation2 + $0xa0] sm:$0xff] %v3611_v0  ;;  %249 = vst [vmem:[#allocation2 + $0xa8] sm:$0xff] %v3611_v0 }
  0x1a   : > { %250 = vst [vmem:[#allocation2 + $0xb0] sm:$0xff] %v3611_v0  ;;  %251 = vst [vmem:[#allocation2 + $0xb8] sm:$0xff] %v3611_v0 }
  0x1b   : > { %252 = vst [vmem:[#allocation2 + $0xc0] sm:$0xff] %v3611_v0  ;;  %253 = vst [vmem:[#allocation2 + $0xc8] sm:$0xff] %v3611_v0 }
  0x1c   : > { %254 = vst [vmem:[#allocation2 + $0xd0] sm:$0xff] %v3611_v0  ;;  %255 = vst [vmem:[#allocation2 + $0xd8] sm:$0xff] %v3611_v0 }
  0x1d   : > { %256 = vst [vmem:[#allocation2 + $0xe0] sm:$0xff] %v3611_v0  ;;  %257 = vst [vmem:[#allocation2 + $0xe8] sm:$0xff] %v3611_v0 }
  0x1e   : > { %258 = vst [vmem:[#allocation2 + $0xf0] sm:$0xff] %v3611_v0  ;;  %259 = vst [vmem:[#allocation2 + $0xf8] sm:$0xff] %v3611_v0 }
  0x1f   : > { %260 = vst [vmem:[#allocation2 + $0x100] sm:$0xff] %v3611_v0  ;;  %261 = vst [vmem:[#allocation2 + $0x108] sm:$0xff] %v3611_v0 }
  0x20   : > { %262 = vst [vmem:[#allocation2 + $0x110] sm:$0xff] %v3611_v0  ;;  %263 = vst [vmem:[#allocation2 + $0x118] sm:$0xff] %v3611_v0 }
  0x21   : > { %264 = vst [vmem:[#allocation2 + $0x120] sm:$0xff] %v3611_v0  ;;  %265 = vst [vmem:[#allocation2 + $0x128] sm:$0xff] %v3611_v0 }
  0x22   : > { %266 = vst [vmem:[#allocation2 + $0x130] sm:$0xff] %v3611_v0  ;;  %267 = vst [vmem:[#allocation2 + $0x138] sm:$0xff] %v3611_v0 }
  0x23   : > { %268 = vst [vmem:[#allocation2 + $0x140] sm:$0xff] %v3611_v0  ;;  %269 = vst [vmem:[#allocation2 + $0x148] sm:$0xff] %v3611_v0 }
  0x24   : > { %270 = vst [vmem:[#allocation2 + $0x150] sm:$0xff] %v3611_v0  ;;  %271 = vst [vmem:[#allocation2 + $0x158] sm:$0xff] %v3611_v0 }
  0x25   : > { %272 = vst [vmem:[#allocation2 + $0x160] sm:$0xff] %v3611_v0  ;;  %273 = vst [vmem:[#allocation2 + $0x168] sm:$0xff] %v3611_v0 }
  0x26   : > { %274 = vst [vmem:[#allocation2 + $0x170] sm:$0xff] %v3611_v0  ;;  %275 = vst [vmem:[#allocation2 + $0x178] sm:$0xff] %v3611_v0 }
  0x27   : > { %276 = vst [vmem:[#allocation2 + $0x180] sm:$0xff] %v3611_v0  ;;  %277 = vst [vmem:[#allocation2 + $0x188] sm:$0xff] %v3611_v0 }
  0x28   : > { %278 = vst [vmem:[#allocation2 + $0x190] sm:$0xff] %v3611_v0  ;;  %279 = vst [vmem:[#allocation2 + $0x198] sm:$0xff] %v3611_v0 }
  0x29   : > { %280 = vst [vmem:[#allocation2 + $0x1a0] sm:$0xff] %v3611_v0  ;;  %281 = vst [vmem:[#allocation2 + $0x1a8] sm:$0xff] %v3611_v0 }
  0x2a   : > { %282 = vst [vmem:[#allocation2 + $0x1b0] sm:$0xff] %v3611_v0  ;;  %283 = vst [vmem:[#allocation2 + $0x1b8] sm:$0xff] %v3611_v0 }
  0x2b   : > { %284 = vst [vmem:[#allocation2 + $0x1c0] sm:$0xff] %v3611_v0  ;;  %285 = vst [vmem:[#allocation2 + $0x1c8] sm:$0xff] %v3611_v0 }
  0x2c   : > { %286 = vst [vmem:[#allocation2 + $0x1d0] sm:$0xff] %v3611_v0  ;;  %287 = vst [vmem:[#allocation2 + $0x1d8] sm:$0xff] %v3611_v0 }
  0x2d   : > { %288 = vst [vmem:[#allocation2 + $0x1e0] sm:$0xff] %v3611_v0  ;;  %289 = vst [vmem:[#allocation2 + $0x1e8] sm:$0xff] %v3611_v0 }
  0x2e   : > { %290 = vst [vmem:[#allocation2 + $0x1f0] sm:$0xff] %v3611_v0  ;;  %291 = vst [vmem:[#allocation2 + $0x1f8] sm:$0xff] %v3611_v0 }
  0x2f   : > { %292 = vst [vmem:[#allocation2 + $0x200] sm:$0xff] %v3611_v0  ;;  %293 = vst [vmem:[#allocation2 + $0x208] sm:$0xff] %v3611_v0 }
  0x30   : > { %294 = vst [vmem:[#allocation2 + $0x210] sm:$0xff] %v3611_v0  ;;  %295 = vst [vmem:[#allocation2 + $0x218] sm:$0xff] %v3611_v0 }
  0x31   : > { %296 = vst [vmem:[#allocation2 + $0x220] sm:$0xff] %v3611_v0  ;;  %297 = vst [vmem:[#allocation2 + $0x228] sm:$0xff] %v3611_v0 }
  0x32   : > { %298 = vst [vmem:[#allocation2 + $0x230] sm:$0xff] %v3611_v0  ;;  %299 = vst [vmem:[#allocation2 + $0x238] sm:$0xff] %v3611_v0 }
  0x33   : > { %300 = vst [vmem:[%s4926_s5] sm:$0x3] %v3611_v0 }
  0x34 PF: > { %v3531_v1 = vld [vmem:[%s4924_s3 + $0x40] sm:$0xff]   ;;  %v3533_v3 = vld [vmem:[%s4924_s3 + $0x48] sm:$0xff]   ;;  %v3535_v5 = vld [vmem:[%s4924_s3 + $0x50] sm:$0xff]  }
  0x35   : > { %v3532_v2 = vld [vmem:[%s4924_s3] sm:$0xff]   ;;  %2985 = vmatprep.subr.bf16.mxu0 %v3531_v1  ;;  %3505 = vmatprep.subr.bf16.mxu1 %v3531_v1  ;;  %v3534_v4 = vld [vmem:[%s4924_s3 + $0x8] sm:$0xff]   ;;  %v3536_v6 = vld [vmem:[%s4924_s3 + $0x10] sm:$0xff]  }
  0x36   : > { %2986 = vmatpush3.bf16.msra.mxu0 %v3532_v2  ;;  %3513 = vmatpush3.bf16.msra.mxu1 %v3532_v2  ;;  %v3537_v7 = vld [vmem:[%s4924_s3 + $0x58] sm:$0xff]   ;;  %v3539_v9 = vld [vmem:[%s4924_s3 + $0x60] sm:$0xff]   ;;  %v3541_v11 = vld [vmem:[%s4924_s3 + $0x68] sm:$0xff]  }
  0x37   : > { %2987 = vmatprep.subr.bf16.mxu0 %v3533_v3  ;;  %3506 = vmatprep.subr.bf16.mxu1 %v3533_v3  ;;  %v3538_v8 = vld [vmem:[%s4924_s3 + $0x18] sm:$0xff]   ;;  %v3540_v10 = vld [vmem:[%s4924_s3 + $0x20] sm:$0xff]   ;;  %v556_v12 = vld [vmem:[#allocation2 + $0x8] sm:$0xff] }
  0x38   : > { %v557_v13 = vld [vmem:[#allocation2 + $0x10] sm:$0xff]  ;;  %v2965_v14 = vld [vmem:[%s3658_s24 + $0x58] sm:$0xff]   ;;  %v3781_v18 = vld [vmem:[%s4922_s1] ss:$0 sm:$0xff] }
  0x39   : > { %v588_v15 = vpack.c.bf16 %v557_v13, %v556_v12  ;;  %v2857_v16 = vunpack.c.l.bf16 %v2965_v14  ;;  %v2858_v17 = vunpack.c.h.bf16 %v2965_v14  ;;  %v3786_v19 = vld [vmem:[%s4923_s2] ss:$0 sm:$0xff]  ;;  %v3542_v20 = vld [vmem:[%s4924_s3 + $0x28] sm:$0xff]   ;;  %v3543_v23 = vld [vmem:[%s4924_s3 + $0x70] sm:$0xff]  }
  0x3a   : > { %2988 = vmatpush3.bf16.msra.mxu0 %v3534_v4  ;;  %3514 = vmatpush3.bf16.msra.mxu1 %v3534_v4  ;;  %v3544_v26 = vld [vmem:[%s4924_s3 + $0x30] sm:$0xff]   ;;  %v3545_v27 = vld [vmem:[%s4924_s3 + $0x78] sm:$0xff]   ;;  %v2812_v30 = vld [vmem:[%s3658_s24] sm:$0xff]  }
  0x3b   : > { %2989 = vmatprep.subr.bf16.mxu0 %v3535_v5  ;;  %3507 = vmatprep.subr.bf16.mxu1 %v3535_v5  ;;  %v394_v21 = vmul.f32 %v2857_v16, %v3781_v18  ;;  %v395_v22 = vmul.f32 %v2858_v17, %v3781_v18  ;;  %v2966_v31 = vld [vmem:[%s3658_s24 + $0x60] sm:$0xff]   ;;  %v3546_v32 = vld [vmem:[%s4924_s3 + $0x38] sm:$0xff]   ;;  %v2813_v35 = vunpack.c.l.bf16 %v2812_v30  ;;  %v2814_v36 = vunpack.c.h.bf16 %v2812_v30  ;;  %v509_v38 = vld [vmem:[#allocation2 + $0xf] sm:$0xff] }
  0x3c   : > { %1549 = vmatprep.mubr.bf16.mxu0 %v588_v15  ;;  %v508_v34 = vld [vmem:[#allocation2 + $0x7] sm:$0xff]  ;;  %v2861_v37 = vunpack.c.l.bf16 %v2966_v31  ;;  %v2862_v39 = vunpack.c.h.bf16 %v2966_v31  ;;  %v3553_v16 = vld [vmem:[%s4924_s3 + $0xd0] sm:$0xff]  }
  0x3d   : > { %v433_v24 = vadd.f32 %v3786_v19, %v394_v21  ;;  %v434_v25 = vadd.f32 %v3786_v19, %v395_v22  ;;  %v3547_v40 = vld [vmem:[%s4924_s3 + $0xc0] sm:$0xff]   ;;  %v372_v41 = vmul.f32 %v2813_v35, %v3781_v18  ;;  %v373_v42 = vmul.f32 %v2814_v36, %v3781_v18  ;;  %v2955_v50 = vld [vmem:[%s3658_s24 + $0x8] sm:$0xff]  }
  0x3e   : > { %2990 = vmatpush3.bf16.msra.mxu0 %v3536_v6  ;;  %3515 = vmatpush3.bf16.msra.mxu1 %v3536_v6  ;;  %v396_v43 = vmul.f32 %v2861_v37, %v3781_v18  ;;  %v3550_v44 = vld [vmem:[%s4924_s3 + $0x140] sm:$0xff]   ;;  %v397_v45 = vmul.f32 %v2862_v39, %v3781_v18  ;;  %v540_v46 = vpack.c.bf16 %v509_v38, %v508_v34  ;;  %v2967_v51 = vld [vmem:[%s3658_s24 + $0x68] sm:$0xff]   ;;  %v2817_v54 = vunpack.c.l.bf16 %v2955_v50  ;;  %v3555_v39 = vld [vmem:[%s4924_s3 + $0xd8] sm:$0xff]  }
  0x3f   : > { %2991 = vmatprep.subr.bf16.mxu0 %v3537_v7  ;;  %3508 = vmatprep.subr.bf16.mxu1 %v3537_v7  ;;  %v465_v28 = vmax.f32 %v433_v24, 0.0  ;;  %v466_v29 = vmax.f32 %v434_v25, 0.0  ;;  %v411_v47 = vadd.f32 %v3786_v19, %v372_v41  ;;  %v412_v48 = vadd.f32 %v3786_v19, %v373_v42  ;;  %v3548_v52 = vld [vmem:[%s4924_s3 + $0x80] sm:$0xff]   ;;  %v3549_v5 = vld [vmem:[%s4924_s3 + $0xc8] sm:$0xff]   ;;  %v2968_v24 = vld [vmem:[%s3658_s24 + $0x70] sm:$0xff]  }
  0x40   : > { %v435_v49 = vadd.f32 %v3786_v19, %v396_v43  ;;  %v436_v53 = vadd.f32 %v3786_v19, %v397_v45  ;;  %v2818_v55 = vunpack.c.h.bf16 %v2955_v50  ;;  %v2865_v56 = vunpack.c.l.bf16 %v2967_v51  ;;  %v3552_v57 = vld [vmem:[%s4924_s3 + $0x100] sm:$0xff]   ;;  %v3558_v13 = vld [vmem:[%s4924_s3 + $0x148] sm:$0xff]  }
  0x41   : > { %498 = vst [vmem:[#allocation2 + $0x188] sm:$0xff] %v465_v28  ;;  %499 = vst [vmem:[#allocation2 + $0x190] sm:$0xff] %v466_v29  ;;  %v600_v33 = vpack.c.bf16 %v466_v29, %v465_v28  ;;  %v443_v58 = vmax.f32 %v411_v47, 0.0  ;;  %v444_v59 = vmax.f32 %v412_v48, 0.0  ;;  %v2866_v61 = vunpack.c.h.bf16 %v2967_v51  ;;  %v3560_v15 = vld [vmem:[%s4924_s3 + $0x108] sm:$0xff]   ;;  %v3554_v28 = vld [vmem:[%s4924_s3 + $0x90] sm:$0xff]  }
  0x42   : > { %2992 = vmatpush3.bf16.msra.mxu0 %v3538_v8  ;;  %3516 = vmatpush3.bf16.msra.mxu1 %v3538_v8  ;;  %v467_v60 = vmax.f32 %v435_v49, 0.0  ;;  %v468_v0 = vmax.f32 %v436_v53, 0.0  ;;  %v374_v1 = vmul.f32 %v2817_v54, %v3781_v18  ;;  %v375_v2 = vmul.f32 %v2818_v55, %v3781_v18  ;;  %v3551_v8 = vld [vmem:[%s4924_s3 + $0x88] sm:$0xff]   ;;  %v3556_v47 = vld [vmem:[%s4924_s3 + $0x98] sm:$0xff]   ;;  %v3557_v49 = vld [vmem:[%s4924_s3 + $0xe0] sm:$0xff]  }
  0x43   : > { %2993 = vmatprep.subr.bf16.mxu0 %v3539_v9  ;;  %3509 = vmatprep.subr.bf16.mxu1 %v3539_v9  ;;  %v398_v3 = vmul.f32 %v2865_v56, %v3781_v18  ;;  %476 = vst [vmem:[#allocation2 + $0x28] sm:$0xff] %v443_v58  ;;  %477 = vst [vmem:[#allocation2 + $0x30] sm:$0xff] %v444_v59  ;;  %v3837_v6 = vpack.c.bf16 %v444_v59, %v443_v58  ;;  %v2870_v29 = vunpack.c.h.bf16 %v2968_v24  ;;  %v3568_v53 = vld [vmem:[%s4924_s3 + $0x110] sm:$0xff]   ;;  %v2957_v59 = vld [vmem:[%s3658_s24 + $0x18] sm:$0xff]  }
  0x44   : > { %1645 = vmatprep.mubr.bf16.mxu1 %v600_v33  ;;  %500 = vst [vmem:[#allocation2 + $0x1a8] sm:$0xff] %v467_v60  ;;  %v399_v7 = vmul.f32 %v2866_v61, %v3781_v18  ;;  %501 = vst [vmem:[#allocation2 + $0x1b0] sm:$0xff] %v468_v0  ;;  %v601_v9 = vpack.c.bf16 %v468_v0, %v467_v60  ;;  %v2825_v61 = vunpack.c.l.bf16 %v2957_v59 }
  0x45   : > { %v437_v12 = vadd.f32 %v3786_v19, %v398_v3  ;;  %v401_v41 = vmul.f32 %v2870_v29, %v3781_v18 }
  0x46   : > { %2994 = vmatpush3.bf16.msra.mxu0 %v3540_v10  ;;  %3517 = vmatpush3.bf16.msra.mxu1 %v3540_v10  ;;  %v413_v10 = vadd.f32 %v3786_v19, %v374_v1  ;;  %v438_v14 = vadd.f32 %v3786_v19, %v399_v7  ;;  %v3559_v1 = vld [vmem:[%s4924_s3 + $0xa0] sm:$0xff]   ;;  %v378_v3 = vmul.f32 %v2825_v61, %v3781_v18  ;;  %v3561_v7 = vld [vmem:[%s4924_s3 + $0xe8] sm:$0xff]  }
  0x47   : > { %2995 = vmatprep.subr.bf16.mxu0 %v3541_v11  ;;  %3510 = vmatprep.subr.bf16.mxu1 %v3541_v11  ;;  %v414_v11 = vadd.f32 %v3786_v19, %v375_v2  ;;  %v469_v21 = vmax.f32 %v437_v12, 0.0  ;;  %v440_v48 = vadd.f32 %v3786_v19, %v401_v41  ;;  %v3565_v41 = vld [vmem:[%s4924_s3 + $0xf8] sm:$0xff]   ;;  %v3569_v61 = vld [vmem:[%s4924_s3 + $0x1c0] sm:$0xff]  }
  0x48   : > { %v532_v62 = vld [vmem:[#allocation2 + $0x187] sm:$0xff]  ;;  %v533_v63 = vld [vmem:[#allocation2 + $0x18f] sm:$0xff]  ;;  %v445_v17 = vmax.f32 %v413_v10, 0.0  ;;  %v470_v22 = vmax.f32 %v438_v14, 0.0 }
  0x49   : > { %v552_v4 = vpack.c.bf16 %v533_v63, %v532_v62  ;;  %502 = vst [vmem:[#allocation2 + $0x1c8] sm:$0xff] %v469_v21  ;;  %v2826_v62 = vunpack.c.h.bf16 %v2957_v59  ;;  %v3562_v10 = vld [vmem:[%s4924_s3 + $0xa8] sm:$0xff]  }
  0x4a   : > { %2996 = vmatpush3.bf16.msra.mxu0 %v3542_v20  ;;  %3518 = vmatpush3.bf16.msra.mxu1 %v3542_v20  ;;  %v446_v20 = vmax.f32 %v414_v11, 0.0  ;;  %478 = vst [vmem:[#allocation2 + $0x48] sm:$0xff] %v445_v17  ;;  %503 = vst [vmem:[#allocation2 + $0x1d0] sm:$0xff] %v470_v22  ;;  %v510_v30 = vld [vmem:[#allocation2 + $0x27] sm:$0xff]  ;;  %v511_v31 = vld [vmem:[#allocation2 + $0x2f] sm:$0xff]  ;;  %v417_v11 = vadd.f32 %v3786_v19, %v378_v3 }
  0x4b   : > { %2997 = vmatprep.subr.bf16.mxu0 %v3543_v23  ;;  %3511 = vmatprep.subr.bf16.mxu1 %v3543_v23  ;;  %v2956_v23 = vld [vmem:[%s3658_s24 + $0x10] sm:$0xff]   ;;  %v3867_v37 = vpack.c.bf16 %v511_v31, %v510_v30 }
  0x4c   : > { %479 = vst [vmem:[#allocation2 + $0x50] sm:$0xff] %v446_v20  ;;  %v2821_v25 = vunpack.c.l.bf16 %v2956_v23  ;;  %v3862_v33 = vpack.c.bf16 %v446_v20, %v445_v17  ;;  %v535_v38 = vld [vmem:[#allocation2 + $0x1af] sm:$0xff] }
  0x4d   : > { %v2959_v17 = vld [vmem:[%s3658_s24 + $0x28] sm:$0xff]  }
  0x4e   : > { %2998 = vmatpush3.bf16.msra.mxu0 %v3544_v26  ;;  %3519 = vmatpush3.bf16.msra.mxu1 %v3544_v26  ;;  %v2822_v26 = vunpack.c.h.bf16 %v2956_v23  ;;  %v376_v34 = vmul.f32 %v2821_v25, %v3781_v18  ;;  %v449_v23 = vmax.f32 %v417_v11, 0.0  ;;  %v2833_v25 = vunpack.c.l.bf16 %v2959_v17 }
  0x4f   : > { %2999 = vmatprep.subr.bf16.mxu0 %v3545_v27  ;;  %3512 = vmatprep.subr.bf16.mxu1 %v3545_v27  ;;  %v2869_v27 = vunpack.c.l.bf16 %v2968_v24 }
  0x50   : > { %v377_v35 = vmul.f32 %v2822_v26, %v3781_v18  ;;  %v415_v43 = vadd.f32 %v3786_v19, %v376_v34  ;;  %v536_v56 = vld [vmem:[#allocation2 + $0x1c7] sm:$0xff]  ;;  %v2834_v26 = vunpack.c.h.bf16 %v2959_v17  ;;  %482 = vst [vmem:[#allocation2 + $0x88] sm:$0xff] %v449_v23  ;;  %v382_v34 = vmul.f32 %v2833_v25, %v3781_v18 }
  0x51   : > { %v400_v36 = vmul.f32 %v2869_v27, %v3781_v18  ;;  %v512_v54 = vld [vmem:[#allocation2 + $0x47] sm:$0xff]  ;;  %v537_v58 = vld [vmem:[#allocation2 + $0x1cf] sm:$0xff] }
  0x52   : > { %3000 = vmatpush3.bf16.msra.mxu0 %v3546_v32  ;;  %3520 = vmatpush3.bf16.msra.mxu1 %v3546_v32  ;;  %v534_v32 = vld [vmem:[#allocation2 + $0x1a7] sm:$0xff]  ;;  %v447_v50 = vmax.f32 %v415_v43, 0.0  ;;  %v3894_v63 = vpack.c.bf16 %v537_v58, %v536_v56 }
  0x53   : > { %3097 = vmatprep.subr.bf16.mxu1 %v3547_v40  ;;  %3209 = vmatprep.subr.bf16.mxu0 %v3550_v44  ;;  %v602_v40 = vpack.c.bf16 %v470_v22, %v469_v21  ;;  %v553_v42 = vpack.c.bf16 %v535_v38, %v534_v32  ;;  %v416_v44 = vadd.f32 %v3786_v19, %v377_v35  ;;  %v513_v55 = vld [vmem:[#allocation2 + $0x4f] sm:$0xff] }
  0x54   : > { %v439_v45 = vadd.f32 %v3786_v19, %v400_v36  ;;  %480 = vst [vmem:[#allocation2 + $0x68] sm:$0xff] %v447_v50  ;;  %v3892_v60 = vpack.c.bf16 %v513_v55, %v512_v54  ;;  %v3564_v32 = vld [vmem:[%s4924_s3 + $0xb0] sm:$0xff]   ;;  %v383_v35 = vmul.f32 %v2834_v26, %v3781_v18  ;;  %v2961_v54 = vld [vmem:[%s3658_s24 + $0x38] sm:$0xff]  }
  0x55   : > { %1550 = vmatmul.mubr.bf16.vlgmr.msra.gmra.mrb[0].mxu0 %v540_v46  ;;  %1646 = vmatmul.mubr.bf16.vlgmr.msra.gmra.mrb[0].mxu1 %v552_v4  ;;  %v3566_v46 = vld [vmem:[%s4924_s3 + $0x150] sm:$0xff]   ;;  %v448_v51 = vmax.f32 %v416_v44, 0.0  ;;  %v379_v4 = vmul.f32 %v2826_v62, %v3781_v18  ;;  %v3575_v44 = vld [vmem:[%s4924_s3 + $0x160] sm:$0xff]   ;;  %v2841_v55 = vunpack.c.l.bf16 %v2961_v54  ;;  %v2842_v56 = vunpack.c.h.bf16 %v2961_v54  ;;  %v3585_v54 = vld [vmem:[%s4924_s3 + $0x178] sm:$0xff]  }
  0x56   : > { %3210 = vmatpush3.bf16.msra.mxu0 %v3552_v57  ;;  %3098 = vmatpush3.bf16.msra.mxu1 %v3548_v52  ;;  %v471_v52 = vmax.f32 %v439_v45, 0.0  ;;  %v472_v57 = vmax.f32 %v440_v48, 0.0  ;;  %v3947_v43 = vadd.f32 %v3786_v19, %v383_v35  ;;  %v3567_v45 = vld [vmem:[%s4924_s3 + $0xb8] sm:$0xff]   ;;  %v606_v17 = vld [vmem:[#allocation2 + $0x29] sm:$0xff] }
  0x57   : > { %1557 = vmatprep.mubr.bf16.mxu0 %v3837_v6  ;;  %3099 = vmatprep.subr.bf16.mxu1 %v3549_v5  ;;  %481 = vst [vmem:[#allocation2 + $0x70] sm:$0xff] %v448_v51  ;;  %v3896_v0 = vpack.c.bf16 %v448_v51, %v447_v50  ;;  %v2958_v5 = vld [vmem:[%s3658_s24 + $0x20] sm:$0xff]   ;;  %v418_v12 = vadd.f32 %v3786_v19, %v379_v4  ;;  %v2960_v50 = vld [vmem:[%s3658_s24 + $0x30] sm:$0xff]  }
  0x58   : > { %1653 = vmatprep.mubr.bf16.mxu1 %v601_v9  ;;  %3211 = vmatprep.subr.bf16.mxu0 %v3558_v13  ;;  %504 = vst [vmem:[#allocation2 + $0x1e8] sm:$0xff] %v471_v52  ;;  %505 = vst [vmem:[#allocation2 + $0x1f0] sm:$0xff] %v472_v57  ;;  %v603_v2 = vpack.c.bf16 %v472_v57, %v471_v52  ;;  %v2830_v9 = vunpack.c.h.bf16 %v2958_v5  ;;  %v3571_v13 = vld [vmem:[%s4924_s3 + $0x158] sm:$0xff]   ;;  %v454_v48 = vmax.f32 %v3947_v43, 0.0  ;;  %v2837_v52 = vunpack.c.l.bf16 %v2960_v50  ;;  %v3577_v57 = vld [vmem:[%s4924_s3 + $0x168] sm:$0xff]  }
  0x59   : > { %v450_v24 = vmax.f32 %v418_v12, 0.0  ;;  %v605_v51 = vld [vmem:[#allocation2 + $0x11] sm:$0xff]  ;;  %v516_v58 = vld [vmem:[#allocation2 + $0x87] sm:$0xff]  ;;  %v387_v3 = vmul.f32 %v2842_v56, %v3781_v18 }
  0x5a   : > { %3212 = vmatpush3.bf16.msra.mxu0 %v3560_v15  ;;  %3100 = vmatpush3.bf16.msra.mxu1 %v3551_v8  ;;  %v2829_v8 = vunpack.c.l.bf16 %v2958_v5  ;;  %v381_v15 = vmul.f32 %v2830_v9, %v3781_v18  ;;  %487 = vst [vmem:[#allocation2 + $0xd0] sm:$0xff] %v454_v48  ;;  %v3570_v9 = vld [vmem:[%s4924_s3 + $0x180] sm:$0xff]   ;;  %v2964_v43 = vld [vmem:[%s3658_s24 + $0x50] sm:$0xff]  }
  0x5b   : > { %3101 = vmatprep.subr.bf16.mxu1 %v3553_v16  ;;  %3213 = vmatprep.subr.bf16.mxu0 %v3566_v46  ;;  %v3572_v16 = vld [vmem:[%s4924_s3 + $0x118] sm:$0xff]   ;;  %v514_v20 = vld [vmem:[#allocation2 + $0x67] sm:$0xff]  ;;  %483 = vst [vmem:[#allocation2 + $0x90] sm:$0xff] %v450_v24  ;;  %v3938_v38 = vpack.c.bf16 %v450_v24, %v449_v23  ;;  %v4000_v12 = vadd.f32 %v3786_v19, %v387_v3 }
  0x5c   : > { %v380_v14 = vmul.f32 %v2829_v8, %v3781_v18  ;;  %v420_v30 = vadd.f32 %v3786_v19, %v381_v15  ;;  %v604_v46 = vld [vmem:[#allocation2 + $0x9] sm:$0xff]  ;;  %v3584_v3 = vld [vmem:[%s4924_s3 + $0x198] sm:$0xff]  }
  0x5d   : > { %1558 = vmatmul.mubr.bf16.gmra.mrb[4].mxu0 %v3867_v37  ;;  %1654 = vmatmul.mubr.bf16.gmra.mrb[4].mxu1 %v553_v42  ;;  %v3944_v42 = vadd.f32 %v3786_v19, %v382_v34  ;;  %v636_v4 = vpack.c.bf16 %v605_v51, %v604_v46  ;;  %v3579_v15 = vld [vmem:[%s4924_s3 + $0x128] sm:$0xff]   ;;  %v458_v23 = vmax.f32 %v4000_v12, 0.0  ;;  %v3580_v46 = vld [vmem:[%s4924_s3 + $0x190] sm:$0xff]  }
  0x5e   : > { %1565 = vmatprep.mubr.bf16.mxu0 %v3862_v33  ;;  %3102 = vmatpush3.bf16.msra.mxu1 %v3554_v28  ;;  %v515_v21 = vld [vmem:[#allocation2 + $0x6f] sm:$0xff]  ;;  %v419_v29 = vadd.f32 %v3786_v19, %v380_v14 }
  0x5f   : > { %1661 = vmatprep.mubr.bf16.mxu1 %v602_v40  ;;  %3103 = vmatprep.subr.bf16.mxu1 %v3555_v39  ;;  %v538_v22 = vld [vmem:[#allocation2 + $0x1e7] sm:$0xff]  ;;  %v539_v27 = vld [vmem:[#allocation2 + $0x1ef] sm:$0xff]  ;;  %v3929_v31 = vpack.c.bf16 %v515_v21, %v514_v20  ;;  %v452_v40 = vmax.f32 %v420_v30, 0.0  ;;  %491 = vst [vmem:[#allocation2 + $0x110] sm:$0xff] %v458_v23 }
  0x60   : > { %3214 = vmatpush3.bf16.msra.mxu0 %v3568_v53  ;;  %v3563_v28 = vld [vmem:[%s4924_s3 + $0xf0] sm:$0xff]   ;;  %v3936_v36 = vpack.c.bf16 %v539_v27, %v538_v22  ;;  %v451_v39 = vmax.f32 %v419_v29, 0.0  ;;  %v2838_v53 = vunpack.c.h.bf16 %v2960_v50  ;;  %v3574_v21 = vld [vmem:[%s4924_s3 + $0x188] sm:$0xff]  }
  0x61   : > { %3215 = vmatprep.subr.bf16.mxu0 %v3571_v13  ;;  %485 = vst [vmem:[#allocation2 + $0xb0] sm:$0xff] %v452_v40  ;;  %v607_v20 = vld [vmem:[#allocation2 + $0x31] sm:$0xff]  ;;  %v2963_v34 = vld [vmem:[%s3658_s24 + $0x48] sm:$0xff]  }
  0x62   : > { %3104 = vmatpush3.bf16.msra.mxu1 %v3556_v47  ;;  %484 = vst [vmem:[#allocation2 + $0xa8] sm:$0xff] %v451_v39  ;;  %v453_v47 = vmax.f32 %v3944_v42, 0.0  ;;  %v517_v59 = vld [vmem:[#allocation2 + $0x8f] sm:$0xff]  ;;  %v385_v62 = vmul.f32 %v2838_v53, %v3781_v18  ;;  %v3982_v5 = vpack.c.bf16 %v452_v40, %v451_v39  ;;  %v2849_v40 = vunpack.c.l.bf16 %v2963_v34  ;;  %v3583_v42 = vld [vmem:[%s4924_s3 + $0x1d8] sm:$0xff]  }
  0x63   : > { %3105 = vmatprep.subr.bf16.mxu1 %v3557_v49  ;;  %v3576_v49 = vld [vmem:[%s4924_s3 + $0x120] sm:$0xff]   ;;  %v3581_v29 = vld [vmem:[%s4924_s3 + $0x170] sm:$0xff]   ;;  %v2854_v53 = vunpack.c.h.bf16 %v2964_v43 }
  0x64   : > { %3216 = vmatpush3.bf16.msra.mxu0 %v3572_v16  ;;  %486 = vst [vmem:[#allocation2 + $0xc8] sm:$0xff] %v453_v47  ;;  %v3988_v8 = vadd.f32 %v3786_v19, %v385_v62  ;;  %v2962_v16 = vld [vmem:[%s3658_s24 + $0x40] sm:$0xff]   ;;  %v3578_v30 = vld [vmem:[%s4924_s3 + $0x1d0] sm:$0xff]   ;;  %v390_v51 = vmul.f32 %v2849_v40, %v3781_v18 }
  0x65   : > { %1566 = vmatmul.mubr.bf16.gmra.mrb[8].mxu0 %v3892_v60  ;;  %1662 = vmatmul.mubr.bf16.gmra.mrb[8].mxu1 %v3894_v63  ;;  %v2845_v24 = vunpack.c.l.bf16 %v2962_v16  ;;  %v2846_v25 = vunpack.c.h.bf16 %v2962_v16  ;;  %v3587_v16 = vld [vmem:[%s4924_s3 + $0x1e0] sm:$0xff]   ;;  %v3593_v40 = vld [vmem:[%s4924_s3 + $0x1f0] sm:$0xff]  }
  0x66   : > { %1573 = vmatprep.mubr.bf16.mxu0 %v3896_v0  ;;  %3106 = vmatpush3.bf16.msra.mxu1 %v3559_v1  ;;  %v3978_v1 = vpack.c.bf16 %v517_v59, %v516_v58  ;;  %v456_v14 = vmax.f32 %v3988_v8, 0.0  ;;  %v4070_v56 = vadd.f32 %v3786_v19, %v390_v51  ;;  %v612_v12 = vld [vmem:[#allocation2 + $0x89] sm:$0xff] }
  0x67   : > { %1669 = vmatprep.mubr.bf16.mxu1 %v603_v2  ;;  %3107 = vmatprep.subr.bf16.mxu1 %v3561_v7  ;;  %v386_v2 = vmul.f32 %v2841_v55, %v3781_v18  ;;  %v608_v55 = vld [vmem:[#allocation2 + $0x49] sm:$0xff] }
  0x68   : > { %3217 = vmatprep.subr.bf16.mxu0 %v3575_v44  ;;  %489 = vst [vmem:[#allocation2 + $0xf0] sm:$0xff] %v456_v14  ;;  %v4041_v44 = vpack.c.bf16 %v607_v20, %v606_v17  ;;  %v461_v62 = vmax.f32 %v4070_v56, 0.0  ;;  %v617_v56 = vld [vmem:[#allocation2 + $0xd1] sm:$0xff] }
  0x69   : > { %3218 = vmatpush3.bf16.msra.mxu0 %v3576_v49  ;;  %v3997_v11 = vadd.f32 %v3786_v19, %v386_v2  ;;  %v518_v26 = vld [vmem:[#allocation2 + $0xa7] sm:$0xff]  ;;  %v519_v27 = vld [vmem:[#allocation2 + $0xaf] sm:$0xff] }
  0x6a   : > { %3108 = vmatpush3.bf16.msra.mxu1 %v3562_v10  ;;  %3219 = vmatprep.subr.bf16.mxu0 %v3577_v57  ;;  %v3573_v10 = vld [vmem:[%s4924_s3 + $0x1c8] sm:$0xff]   ;;  %v4036_v35 = vpack.c.bf16 %v519_v27, %v518_v26  ;;  %494 = vst [vmem:[#allocation2 + $0x148] sm:$0xff] %v461_v62  ;;  %v4121_v26 = vld [vmem:[%s4924_s3 + $0x200] sm:$0xff]   ;;  %v611_v27 = vld [vmem:[#allocation2 + $0x71] sm:$0xff] }
  0x6b   : > { %3109 = vmatprep.subr.bf16.mxu1 %v3563_v28  ;;  %v457_v22 = vmax.f32 %v3997_v11, 0.0  ;;  %v388_v28 = vmul.f32 %v2845_v24, %v3781_v18  ;;  %v520_v58 = vld [vmem:[#allocation2 + $0xc7] sm:$0xff]  ;;  %v521_v59 = vld [vmem:[#allocation2 + $0xcf] sm:$0xff] }
  0x6c   : > { %v3588_v24 = vld [vmem:[%s4924_s3 + $0x1a0] sm:$0xff]   ;;  %v3594_v11 = vld [vmem:[%s4924_s3 + $0x1b0] sm:$0xff]  }
  0x6d   : > { %1574 = vmatmul.mubr.bf16.gmra.mrb[12].mxu0 %v3929_v31  ;;  %1670 = vmatmul.mubr.bf16.gmra.mrb[12].mxu1 %v3936_v36  ;;  %490 = vst [vmem:[#allocation2 + $0x108] sm:$0xff] %v457_v22  ;;  %v4039_v39 = vadd.f32 %v3786_v19, %v388_v28  ;;  %v3591_v28 = vld [vmem:[%s4924_s3 + $0x1a8] sm:$0xff]  }
  0x6e   : > { %1581 = vmatprep.mubr.bf16.mxu0 %v3938_v38  ;;  %3110 = vmatpush3.bf16.msra.mxu1 %v3564_v32  ;;  %v3582_v32 = vld [vmem:[%s4924_s3 + $0x130] sm:$0xff]  }
  0x6f   : > { %1710 = vmatprep.mubr.bf16.mxu1 %v3867_v37  ;;  %3111 = vmatprep.subr.bf16.mxu1 %v3565_v41  ;;  %v384_v37 = vmul.f32 %v2837_v52, %v3781_v18  ;;  %v2850_v41 = vunpack.c.h.bf16 %v2963_v34  ;;  %v459_v50 = vmax.f32 %v4039_v39, 0.0 }
  0x70   : > { %3220 = vmatpush3.bf16.msra.mxu0 %v3579_v15 }
  0x71   : > { %v3985_v7 = vadd.f32 %v3786_v19, %v384_v37  ;;  %3221 = vmatprep.subr.bf16.mxu0 %v3581_v29  ;;  %v391_v52 = vmul.f32 %v2850_v41, %v3781_v18  ;;  %492 = vst [vmem:[#allocation2 + $0x128] sm:$0xff] %v459_v50  ;;  %v3596_v41 = vld [vmem:[%s4924_s3 + $0x1f8] sm:$0xff]  }
  0x72   : > { %3112 = vmatpush3.bf16.msra.mxu1 %v3567_v45  ;;  %v4047_v45 = vpack.c.bf16 %v454_v48, %v453_v47  ;;  %v2853_v48 = vunpack.c.l.bf16 %v2964_v43 }
  0x73   : > { %3321 = vmatprep.subr.bf16.mxu1 %v3569_v61  ;;  %v455_v13 = vmax.f32 %v3985_v7, 0.0  ;;  %v4073_v57 = vadd.f32 %v3786_v19, %v391_v52  ;;  %v609_v61 = vld [vmem:[#allocation2 + $0x51] sm:$0xff]  ;;  %v3590_v7 = vld [vmem:[%s4924_s3 + $0x1e8] sm:$0xff]  }
  0x74   : > { %3222 = vmatpush3.bf16.msra.mxu0 %v3582_v32  ;;  %v392_v37 = vmul.f32 %v2853_v48, %v3781_v18  ;;  %v4105_v17 = vpack.c.bf16 %v609_v61, %v608_v55  ;;  %v524_v32 = vld [vmem:[#allocation2 + $0x107] sm:$0xff]  ;;  %v525_v34 = vld [vmem:[#allocation2 + $0x10f] sm:$0xff]  ;;  %v3597_v52 = vld [vmem:[%s4924_s3 + $0x1b8] sm:$0xff]  }
  0x75   : > { %1582 = vmatmul.mubr.bf16.gmra.mrb[16].mxu0 %v3978_v1  ;;  %1711 = vmatmul.mubr.bf16.vlgmr.msra.gmra.mrb[16].mxu1 %v636_v4  ;;  %488 = vst [vmem:[#allocation2 + $0xe8] sm:$0xff] %v455_v13  ;;  %v462_v2 = vmax.f32 %v4073_v57, 0.0  ;;  %v393_v4 = vmul.f32 %v2854_v53, %v3781_v18  ;;  %v4111_v20 = vpack.c.bf16 %v456_v14, %v455_v13  ;;  %v610_v13 = vld [vmem:[#allocation2 + $0x69] sm:$0xff] }
  0x76   : > { %1589 = vmatprep.mubr.bf16.mxu0 %v3982_v5  ;;  %3322 = vmatpush3.bf16.msra.mxu1 %v3570_v9  ;;  %v3586_v9 = vld [vmem:[%s4924_s3 + $0x138] sm:$0xff]  }
  0x77   : > { %1718 = vmatprep.mubr.bf16.mxu1 %v3892_v60  ;;  %3323 = vmatprep.subr.bf16.mxu1 %v3573_v10  ;;  %v389_v60 = vmul.f32 %v2846_v25, %v3781_v18  ;;  %v4091_v10 = vadd.f32 %v3786_v19, %v392_v37  ;;  %495 = vst [vmem:[#allocation2 + $0x150] sm:$0xff] %v462_v2 }
  0x78   : > { %3223 = vmatprep.subr.bf16.mxu0 %v3585_v54  ;;  %v4100_v15 = vadd.f32 %v3786_v19, %v393_v4  ;;  %v526_v53 = vld [vmem:[#allocation2 + $0x127] sm:$0xff]  ;;  %v615_v54 = vld [vmem:[#allocation2 + $0xb1] sm:$0xff]  ;;  %v4191_v37 = vpack.c.bf16 %v462_v2, %v461_v62 }
  0x79   : > { %v4053_v49 = vadd.f32 %v3786_v19, %v389_v60  ;;  %3224 = vmatpush3.bf16.msra.mxu0 %v3586_v9  ;;  %v4146_v60 = vpack.c.bf16 %v458_v23, %v457_v22  ;;  %v613_v22 = vld [vmem:[#allocation2 + $0x91] sm:$0xff]  ;;  %v4158_v23 = vpack.c.bf16 %v525_v34, %v524_v32  ;;  %v616_v9 = vld [vmem:[#allocation2 + $0xc9] sm:$0xff] }
  0x7a   : > { %3324 = vmatpush3.bf16.msra.mxu1 %v3574_v21  ;;  %v463_v21 = vmax.f32 %v4091_v10, 0.0  ;;  %v464_v25 = vmax.f32 %v4100_v15, 0.0  ;;  %3457 = vmatprep.subr.bf16.mxu0 %v4121_v26  ;;  %v4199_v57 = vpack.c.bf16 %v617_v56, %v616_v9  ;;  %v620_v15 = vld [vmem:[#allocation2 + $0x109] sm:$0xff]  ;;  %v635_v56 = vld [vmem:[#allocation2 + $0x1f1] sm:$0xff] }
  0x7b   : > { %3325 = vmatprep.subr.bf16.mxu1 %v3578_v30  ;;  %v460_v47 = vmax.f32 %v4053_v49, 0.0  ;;  %v4140_v30 = vpack.c.bf16 %v611_v27, %v610_v13  ;;  %v3592_v27 = vld [vmem:[%s4924_s3 + $0x208] sm:$0xff]   ;;  %v3595_v32 = vld [vmem:[%s4924_s3 + $0x210] sm:$0xff]  }
  0x7c   : > { %496 = vst [vmem:[#allocation2 + $0x168] sm:$0xff] %v463_v21  ;;  %v522_v8 = vld [vmem:[#allocation2 + $0xe7] sm:$0xff]  ;;  %497 = vst [vmem:[#allocation2 + $0x170] sm:$0xff] %v464_v25  ;;  %v523_v14 = vld [vmem:[#allocation2 + $0xef] sm:$0xff]  ;;  %v4205_v62 = vpack.c.bf16 %v464_v25, %v463_v21 }
  0x7d   : > { %1590 = vmatmul.mubr.bf16.gmra.mrb[20].mxu0 %v4036_v35  ;;  %1719 = vmatmul.mubr.bf16.gmra.mrb[20].mxu1 %v4041_v44  ;;  %493 = vst [vmem:[#allocation2 + $0x130] sm:$0xff] %v460_v47  ;;  %v4138_v29 = vpack.c.bf16 %v523_v14, %v522_v8  ;;  %v4169_v51 = vpack.c.bf16 %v460_v47, %v459_v50  ;;  %v614_v47 = vld [vmem:[#allocation2 + $0xa9] sm:$0xff]  ;;  %v619_v8 = vld [vmem:[#allocation2 + $0xf1] sm:$0xff] }
  0x7e   : > { %1597 = vmatprep.mubr.bf16.mxu0 %v4047_v45  ;;  %1726 = vmatprep.mubr.bf16.mxu1 %v3929_v31  ;;  %v4093_v31 = vpack.c.bf16 %v521_v59, %v520_v58  ;;  %v4185_v61 = vpack.c.bf16 %v615_v54, %v614_v47  ;;  %v529_v4 = vld [vmem:[#allocation2 + $0x14f] sm:$0xff] }
  0x7f   : > { %3326 = vmatpush3.bf16.msra.mxu1 %v3580_v46  ;;  %v4163_v46 = vpack.c.bf16 %v613_v22, %v612_v12  ;;  %v621_v21 = vld [vmem:[#allocation2 + $0x111] sm:$0xff]  ;;  %v3599_v12 = vld [vmem:[%s4924_s3 + $0x220] sm:$0xff]   ;;  %v630_v47 = vld [vmem:[#allocation2 + $0x1a9] sm:$0xff] }
  0x80   : > { %3327 = vmatprep.subr.bf16.mxu1 %v3583_v42  ;;  %v2969_v42 = vld [vmem:[%s3658_s24 + $0x78] sm:$0xff]   ;;  %v4221_v25 = vpack.c.bf16 %v621_v21, %v620_v15  ;;  %v798_v15 = vld [vmem:[#allocation2 + $0x4f] sm:$0xff] }
  0x81   : > { %v2873_v43 = vunpack.c.l.bf16 %v2969_v42  ;;  %v2874_v48 = vunpack.c.h.bf16 %v2969_v42  ;;  %v676_v42 = vld [vmem:[#allocation2 + $0x1a7] sm:$0xff]  ;;  %v631_v54 = vld [vmem:[#allocation2 + $0x1b1] sm:$0xff] }
  0x82   : > { %v847_v21 = vld [vmem:[#allocation2 + $0x68] sm:$0xff] }
  0x83   : > { %3328 = vmatpush3.bf16.msra.mxu1 %v3584_v3  ;;  %v402_v49 = vmul.f32 %v2873_v43, %v3781_v18  ;;  %v403_v50 = vmul.f32 %v2874_v48, %v3781_v18  ;;  %v530_v2 = vld [vmem:[#allocation2 + $0x167] sm:$0xff]  ;;  %v677_v43 = vld [vmem:[#allocation2 + $0x1af] sm:$0xff] }
  0x84   : > { %3329 = vmatprep.subr.bf16.mxu1 %v3587_v16  ;;  %v527_v39 = vld [vmem:[#allocation2 + $0x12f] sm:$0xff] }
  0x85   : > { %1598 = vmatmul.mubr.bf16.gmra.mrb[24].mxu0 %v4093_v31  ;;  %1727 = vmatmul.mubr.bf16.gmra.mrb[24].mxu1 %v4105_v17  ;;  %v441_v55 = vadd.f32 %v3786_v19, %v402_v49  ;;  %v442_v58 = vadd.f32 %v3786_v19, %v403_v50  ;;  %v4183_v59 = vpack.c.bf16 %v527_v39, %v526_v53  ;;  %v528_v19 = vld [vmem:[#allocation2 + $0x147] sm:$0xff]  ;;  %v3601_v48 = vld [vmem:[%s4924_s3 + $0x230] sm:$0xff]  }
  0x86   : > { %1605 = vmatprep.mubr.bf16.mxu0 %v4111_v20  ;;  %1734 = vmatprep.mubr.bf16.mxu1 %v3978_v1  ;;  %v4197_v16 = vpack.c.bf16 %v529_v4, %v528_v19  ;;  %v4262_v39 = vpack.c.bf16 %v677_v43, %v676_v42  ;;  %v629_v49 = vld [vmem:[#allocation2 + $0x191] sm:$0xff] }
  0x87   : > { %3330 = vmatpush3.bf16.msra.mxu1 %v3588_v24  ;;  %v473_v3 = vmax.f32 %v441_v55, 0.0  ;;  %v474_v18 = vmax.f32 %v442_v58, 0.0  ;;  %v531_v24 = vld [vmem:[#allocation2 + $0x16f] sm:$0xff]  ;;  %v4277_v55 = vpack.c.bf16 %v631_v54, %v630_v47 }
  0x88   : > { %3331 = vmatprep.subr.bf16.mxu1 %v3590_v7  ;;  %v618_v7 = vld [vmem:[#allocation2 + $0xe9] sm:$0xff]  ;;  %v4211_v13 = vpack.c.bf16 %v531_v24, %v530_v2 }
  0x89   : > { %506 = vst [vmem:[#allocation2 + $0x208] sm:$0xff] %v473_v3  ;;  %507 = vst [vmem:[#allocation2 + $0x210] sm:$0xff] %v474_v18  ;;  %v4213_v14 = vpack.c.bf16 %v619_v8, %v618_v7  ;;  %v4215_v10 = vpack.c.bf16 %v474_v18, %v473_v3  ;;  %v632_v58 = vld [vmem:[#allocation2 + $0x1c9] sm:$0xff]  ;;  %v633_v3 = vld [vmem:[#allocation2 + $0x1d1] sm:$0xff] }
  0x8a   : > { %v4283_v4 = vpack.c.bf16 %v633_v3, %v632_v58  ;;  %v845_v2 = vld [vmem:[#allocation2 + $0x48] sm:$0xff] }
  0x8b   : > { %3332 = vmatpush3.bf16.msra.mxu1 %v3591_v28  ;;  %v623_v28 = vld [vmem:[#allocation2 + $0x131] sm:$0xff]  ;;  %v797_v8 = vld [vmem:[#allocation2 + $0x47] sm:$0xff] }
  0x8c   : > { %3333 = vmatprep.subr.bf16.mxu1 %v3593_v40  ;;  %v674_v40 = vld [vmem:[#allocation2 + $0x187] sm:$0xff] }
  0x8d   : > { %1606 = vmatmul.mubr.bf16.gmra.mrb[28].mxu0 %v4138_v29  ;;  %1735 = vmatmul.mubr.bf16.gmra.mrb[28].mxu1 %v4140_v30 }
  0x8e   : > { %1613 = vmatprep.mubr.bf16.mxu0 %v4146_v60  ;;  %1742 = vmatprep.mubr.bf16.mxu1 %v4036_v35 }
  0x8f   : > { %3334 = vmatpush3.bf16.msra.mxu1 %v3594_v11  ;;  %v675_v11 = vld [vmem:[#allocation2 + $0x18f] sm:$0xff] }
  0x90   : > { %3335 = vmatprep.subr.bf16.mxu1 %v3596_v41  ;;  %v4248_v41 = vpack.c.bf16 %v675_v11, %v674_v40  ;;  %v682_v18 = vld [vmem:[#allocation2 + $0x207] sm:$0xff]  ;;  %v683_v19 = vld [vmem:[#allocation2 + $0x20f] sm:$0xff] }
  0x91   : > { %v4285_v9 = vpack.c.bf16 %v683_v19, %v682_v18  ;;  %v723_v40 = vld [vmem:[#allocation2 + $0x190] sm:$0xff] }
  0x93   : > { %3336 = vmatpush3.bf16.msra.mxu1 %v3597_v52  ;;  %v627_v52 = vld [vmem:[#allocation2 + $0x171] sm:$0xff] }
  0x95   : > { %1614 = vmatmul.mubr.bf16.gmra.mrb[32].mxu0 %v4158_v23  ;;  %1743 = vmatmul.mubr.bf16.gmra.mrb[32].mxu1 %v4163_v46 }
  0x96   : > { %1621 = vmatprep.mubr.bf16.mxu0 %v4169_v51  ;;  %1750 = vmatprep.mubr.bf16.mxu1 %v4093_v31 }
  0x9d   : > { %1622 = vmatmul.mubr.bf16.gmra.mrb[36].mxu0 %v4183_v59  ;;  %1751 = vmatmul.mubr.bf16.gmra.mrb[36].mxu1 %v4185_v61 }
  0x9e   : > { %1629 = vmatprep.mubr.bf16.mxu0 %v4191_v37  ;;  %1758 = vmatprep.mubr.bf16.mxu1 %v4138_v29 }
  0xa5   : > { %1630 = vmatmul.mubr.bf16.gmra.mrb[40].mxu0 %v4197_v16  ;;  %1759 = vmatmul.mubr.bf16.gmra.mrb[40].mxu1 %v4199_v57 }
  0xa6   : > { %1637 = vmatprep.mubr.bf16.mxu0 %v4205_v62  ;;  %1766 = vmatprep.mubr.bf16.mxu1 %v4158_v23 }
  0xad   : > { %1638 = vmatmul.mubr.bf16.gmra.mrb[44].mxu0 %v4211_v13  ;;  %1767 = vmatmul.mubr.bf16.gmra.mrb[44].mxu1 %v4213_v14 }
  0xae   : > { %1871 = vmatprep.mubr.bf16.mxu0 %v4041_v44  ;;  %1774 = vmatprep.mubr.bf16.mxu1 %v4183_v59  ;;  %v622_v44 = vld [vmem:[#allocation2 + $0x129] sm:$0xff] }
  0xaf   : > { %v4234_v34 = vpack.c.bf16 %v623_v28, %v622_v44  ;;  %v829_v44 = vpack.c.bf16 %v798_v15, %v797_v8 }
  0xb5   : > { %1872 = vmatmul.mubr.bf16.vlgmr.msra.gmra.mrb[48].mxu0 %v3837_v6  ;;  %1775 = vmatmul.mubr.bf16.gmra.mrb[48].mxu1 %v4221_v25  ;;  %v3598_v6 = vld [vmem:[%s4924_s3 + $0x218] sm:$0xff]  }
  0xb6   : > { %3458 = vmatpush3.bf16.msra.mxu0 %v4121_v26  ;;  %1782 = vmatprep.mubr.bf16.mxu1 %v4197_v16  ;;  %v625_v26 = vld [vmem:[#allocation2 + $0x151] sm:$0xff] }
  0xb7   : > { %1879 = vmatprep.mubr.bf16.mxu0 %v4105_v17  ;;  %3459 = vmatprep.subr.bf16.mxu0 %v3592_v27  ;;  %v624_v17 = vld [vmem:[#allocation2 + $0x149] sm:$0xff] }
  0xb8   : > { %v4246_v22 = vpack.c.bf16 %v625_v26, %v624_v17  ;;  %v722_v26 = vld [vmem:[#allocation2 + $0x188] sm:$0xff] }
  0xb9   : > { %v4305_v11 = vpack.c.bf16 %v723_v40, %v722_v26 }
  0xba   : > { %3460 = vmatpush3.bf16.msra.mxu0 %v3592_v27  ;;  %v848_v27 = vld [vmem:[#allocation2 + $0x70] sm:$0xff] }
  0xbb   : > { %3461 = vmatprep.subr.bf16.mxu0 %v3595_v32  ;;  %v878_v28 = vpack.c.bf16 %v848_v27, %v847_v21 }
  0xbd   : > { %1880 = vmatmul.mubr.bf16.gmra.mrb[52].mxu0 %v3862_v33  ;;  %1783 = vmatmul.mubr.bf16.gmra.mrb[52].mxu1 %v4234_v34  ;;  %v3600_v33 = vld [vmem:[%s4924_s3 + $0x228] sm:$0xff]  }
  0xbe   : > { %1887 = vmatprep.mubr.bf16.mxu0 %v4140_v30  ;;  %1790 = vmatprep.mubr.bf16.mxu1 %v4211_v13  ;;  %v626_v30 = vld [vmem:[#allocation2 + $0x169] sm:$0xff] }
  0xbf   : > { %3462 = vmatpush3.bf16.msra.mxu0 %v3595_v32  ;;  %v4260_v53 = vpack.c.bf16 %v627_v52, %v626_v30  ;;  %v799_v32 = vld [vmem:[#allocation2 + $0x67] sm:$0xff] }
  0xc0   : > { %3463 = vmatprep.subr.bf16.mxu0 %v3598_v6  ;;  %v778_v52 = vld [vmem:[#allocation2 + $0x209] sm:$0xff] }
  0xc3   : > { %3464 = vmatpush3.bf16.msra.mxu0 %v3598_v6  ;;  %v800_v6 = vld [vmem:[#allocation2 + $0x6f] sm:$0xff] }
  0xc4   : > { %3465 = vmatprep.subr.bf16.mxu0 %v3599_v12  ;;  %v830_v17 = vpack.c.bf16 %v800_v6, %v799_v32 }
  0xc5   : > { %1888 = vmatmul.mubr.bf16.gmra.mrb[56].mxu0 %v3896_v0  ;;  %1791 = vmatmul.mubr.bf16.gmra.mrb[56].mxu1 %v4246_v22  ;;  %v3602_v0 = vld [vmem:[%s4924_s3 + $0x238] sm:$0xff]  }
  0xc6   : > { %1895 = vmatprep.mubr.bf16.mxu0 %v4163_v46  ;;  %1798 = vmatprep.mubr.bf16.mxu1 %v4248_v41  ;;  %v628_v46 = vld [vmem:[#allocation2 + $0x189] sm:$0xff] }
  0xc7   : > { %3466 = vmatpush3.bf16.msra.mxu0 %v3599_v12  ;;  %v4271_v50 = vpack.c.bf16 %v629_v49, %v628_v46  ;;  %v724_v12 = vld [vmem:[#allocation2 + $0x1a8] sm:$0xff] }
  0xc8   : > { %3467 = vmatprep.subr.bf16.mxu0 %v3600_v33 }
  0xcb   : > { %3468 = vmatpush3.bf16.msra.mxu0 %v3600_v33 }
  0xcc   : > { %3469 = vmatprep.subr.bf16.mxu0 %v3601_v48 }
  0xcd   : > { %1896 = vmatmul.mubr.bf16.gmra.mrb[60].mxu0 %v3938_v38  ;;  %1799 = vmatmul.mubr.bf16.gmra.mrb[60].mxu1 %v4260_v53 }
  0xce   : > { %1903 = vmatprep.mubr.bf16.mxu0 %v4185_v61  ;;  %1806 = vmatprep.mubr.bf16.mxu1 %v4262_v39 }
  0xcf   : > { %3470 = vmatpush3.bf16.msra.mxu0 %v3601_v48  ;;  %v894_v48 = vld [vmem:[#allocation2 + $0x51] sm:$0xff] }
  0xd0   : > { %3471 = vmatprep.subr.bf16.mxu0 %v3602_v0 }
  0xd3   : > { %3472 = vmatpush3.bf16.msra.mxu0 %v3602_v0 }
  0xd5   : > { %1904 = vmatmul.mubr.bf16.gmra.mrb[64].mxu0 %v3982_v5  ;;  %1807 = vmatmul.mubr.bf16.gmra.mrb[64].mxu1 %v4271_v50 }
  0xd6   : > { %1911 = vmatprep.mubr.bf16.mxu0 %v4199_v57  ;;  %1814 = vmatprep.mubr.bf16.mxu1 %v3894_v63  ;;  %v634_v63 = vld [vmem:[#allocation2 + $0x1e9] sm:$0xff] }
  0xd7   : > { %v4291_v24 = vpack.c.bf16 %v635_v56, %v634_v63  ;;  %v896_v56 = vld [vmem:[#allocation2 + $0x71] sm:$0xff] }
  0xdd   : > { %1912 = vmatmul.mubr.bf16.gmra.mrb[68].mxu0 %v4047_v45  ;;  %1815 = vmatmul.mubr.bf16.gmra.mrb[68].mxu1 %v4277_v55 }
  0xde   : > { %1919 = vmatprep.mubr.bf16.mxu0 %v4213_v14  ;;  %1822 = vmatprep.mubr.bf16.mxu1 %v3936_v36  ;;  %v846_v36 = vld [vmem:[#allocation2 + $0x50] sm:$0xff] }
  0xdf   : > { %v877_v7 = vpack.c.bf16 %v846_v36, %v845_v2  ;;  %v897_v2 = vld [vmem:[#allocation2 + $0x89] sm:$0xff]  ;;  %v898_v36 = vld [vmem:[#allocation2 + $0x91] sm:$0xff] }
  0xe0   : > { %v927_v32 = vpack.c.bf16 %v898_v36, %v897_v2 }
  0xe5   : > { %1920 = vmatmul.mubr.bf16.gmra.mrb[72].mxu0 %v4111_v20  ;;  %1823 = vmatmul.mubr.bf16.gmra.mrb[72].mxu1 %v4283_v4 }
  0xe6   : > { %1927 = vmatprep.mubr.bf16.mxu0 %v4221_v25  ;;  %1830 = vmatprep.mubr.bf16.mxu1 %v4285_v9 }
  0xed   : > { %1928 = vmatmul.mubr.bf16.gmra.mrb[76].mxu0 %v4146_v60  ;;  %1831 = vmatmul.mubr.bf16.gmra.mrb[76].mxu1 %v4291_v24 }
  0xee   : > { %1935 = vmatprep.mubr.bf16.mxu0 %v4234_v34  ;;  %2032 = vmatprep.mubr.bf16.mxu1 %v877_v7 }
  0xf5   : > { %1936 = vmatmul.mubr.bf16.gmra.mrb[80].mxu0 %v4169_v51  ;;  %2033 = vmatmul.mubr.bf16.vlgmr.msra.gmra.mrb[80].mxu1 %v829_v44 }
  0xf6   : > { %1943 = vmatprep.mubr.bf16.mxu0 %v4246_v22  ;;  %2040 = vmatprep.mubr.bf16.mxu1 %v878_v28 }
  0xfd   : > { %1944 = vmatmul.mubr.bf16.gmra.mrb[84].mxu0 %v4191_v37  ;;  %2041 = vmatmul.mubr.bf16.gmra.mrb[84].mxu1 %v830_v17 }
  0xfe   : > { %1951 = vmatprep.mubr.bf16.mxu0 %v4260_v53  ;;  %2048 = vmatprep.mubr.bf16.mxu1 %v3938_v38  ;;  %v725_v38 = vld [vmem:[#allocation2 + $0x1b0] sm:$0xff] }
  0xff   : > { %v4311_v33 = vpack.c.bf16 %v725_v38, %v724_v12 }
 0x105   : > { %1952 = vmatmul.mubr.bf16.gmra.mrb[88].mxu0 %v4205_v62  ;;  %2049 = vmatmul.mubr.bf16.gmra.mrb[88].mxu1 %v3978_v1  ;;  %v726_v1 = vld [vmem:[#allocation2 + $0x1c8] sm:$0xff] }
 0x106   : > { %1959 = vmatprep.mubr.bf16.mxu0 %v4271_v50  ;;  %2056 = vmatprep.mubr.bf16.mxu1 %v3982_v5  ;;  %v727_v5 = vld [vmem:[#allocation2 + $0x1d0] sm:$0xff] }
 0x107   : > { %v4317_v30 = vpack.c.bf16 %v727_v5, %v726_v1 }
 0x10d   : > { %1960 = vmatmul.mubr.bf16.gmra.mrb[92].mxu0 %v4305_v11  ;;  %2057 = vmatmul.mubr.bf16.gmra.mrb[92].mxu1 %v4036_v35  ;;  %v728_v35 = vld [vmem:[#allocation2 + $0x1e8] sm:$0xff] }
 0x10e   : > { %1967 = vmatprep.mubr.bf16.mxu0 %v4277_v55  ;;  %2064 = vmatprep.mubr.bf16.mxu1 %v4047_v45  ;;  %v729_v45 = vld [vmem:[#allocation2 + $0x1f0] sm:$0xff] }
 0x10f   : > { %v4323_v42 = vpack.c.bf16 %v729_v45, %v728_v35 }
 0x115   : > { %1968 = vmatmul.mubr.bf16.gmra.mrb[96].mxu0 %v4311_v33  ;;  %2065 = vmatmul.mubr.bf16.gmra.mrb[96].mxu1 %v4093_v31  ;;  %v779_v31 = vld [vmem:[#allocation2 + $0x211] sm:$0xff] }
 0x116   : > { %1975 = vmatprep.mubr.bf16.mxu0 %v4283_v4  ;;  %2072 = vmatprep.mubr.bf16.mxu1 %v4111_v20  ;;  %v4325_v43 = vpack.c.bf16 %v779_v31, %v778_v52 }
 0x11d   : > { %1976 = vmatmul.mubr.bf16.gmra.mrb[100].mxu0 %v4317_v30  ;;  %2073 = vmatmul.mubr.bf16.gmra.mrb[100].mxu1 %v4138_v29  ;;  %v893_v29 = vld [vmem:[#allocation2 + $0x49] sm:$0xff] }
 0x11e   : > { %1983 = vmatprep.mubr.bf16.mxu0 %v4291_v24  ;;  %2080 = vmatprep.mubr.bf16.mxu1 %v4146_v60  ;;  %v925_v18 = vpack.c.bf16 %v894_v48, %v893_v29 }
 0x125   : > { %1984 = vmatmul.mubr.bf16.gmra.mrb[104].mxu0 %v4323_v42  ;;  %2081 = vmatmul.mubr.bf16.gmra.mrb[104].mxu1 %v4158_v23 }
 0x126   : > { %1991 = vmatprep.mubr.bf16.mxu0 %v4325_v43  ;;  %2088 = vmatprep.mubr.bf16.mxu1 %v4169_v51  ;;  %v895_v51 = vld [vmem:[#allocation2 + $0x69] sm:$0xff] }
 0x127   : > { %v926_v21 = vpack.c.bf16 %v896_v56, %v895_v51 }
 0x128   : > { %v3001_v20 = vpop.f32.mrb[0].mxu0  ;;  %v3073_v0 = vpop.f32.mrb[0].mxu1 }
 0x129   : > { %v3002_v46 = vpop.f32.mrb[1].mxu0  ;;  %v3074_v60 = vpop.f32.mrb[1].mxu1 }
 0x12a   : > { %v4331_v49 = vadd.f32 %v3002_v46, %v3001_v20  ;;  %v3004_v47 = vpop.f32.mrb[2].mxu0  ;;  %v4333_v54 = vadd.f32 %v3074_v60, %v3073_v0  ;;  %v3076_v58 = vpop.f32.mrb[2].mxu1 }
 0x12b   : > { %v3005_v3 = vpop.f32.mrb[3].mxu0  ;;  %v3077_v19 = vpop.f32.mrb[3].mxu1 }
 0x12c   : > { %v4335_v23 = vadd.f32 %v3005_v3, %v3004_v47  ;;  %v4337_v63 = vadd.f32 %v3077_v19, %v3076_v58 }
 0x12d   : > { %1992 = vmatmul.mubr.bf16.gmra.mrb[108].mxu0 %v4215_v10  ;;  %2089 = vmatmul.mubr.bf16.gmra.mrb[108].mxu1 %v4183_v59 }
 0x12e   : > { %3473 = vmatprep.mubr.bf16.mxu0 %v925_v18  ;;  %2096 = vmatprep.mubr.bf16.mxu1 %v4191_v37 }
 0x130   : > { %v3007_v7 = vpop.f32.mrb[4].mxu0  ;;  %v3079_v8 = vpop.f32.mrb[4].mxu1 }
 0x131   : > { %v3008_v15 = vpop.f32.mrb[5].mxu0  ;;  %v3080_v27 = vpop.f32.mrb[5].mxu1 }
 0x132   : > { %v4342_v44 = vadd.f32 %v3008_v15, %v3007_v7  ;;  %v3010_v28 = vpop.f32.mrb[6].mxu0  ;;  %v4344_v6 = vadd.f32 %v3080_v27, %v3079_v8  ;;  %v3082_v17 = vpop.f32.mrb[6].mxu1 }
 0x133   : > { %v3011_v59 = vpop.f32.mrb[7].mxu0  ;;  %v3083_v26 = vpop.f32.mrb[7].mxu1 }
 0x134   : > { %v4346_v40 = vadd.f32 %v3011_v59, %v3010_v28  ;;  %v4348_v12 = vadd.f32 %v3083_v26, %v3082_v17 }
 0x135   : > { %3474 = vmatmul.mubr.bf16.vlgmr.msra.gmra.mrb[112].mxu0 %v926_v21  ;;  %2097 = vmatmul.mubr.bf16.gmra.mrb[112].mxu1 %v4197_v16 }
 0x136   : > { %3477 = vmatprep.mubr.bf16.mxu0 %v927_v32  ;;  %2104 = vmatprep.mubr.bf16.mxu1 %v4205_v62  ;;  %v822_v32 = vld [vmem:[#allocation2 + $0x1cf] sm:$0xff] }
 0x138   : > { %v3013_v37 = vpop.f32.mrb[8].mxu0  ;;  %v3085_v38 = vpop.f32.mrb[8].mxu1 }
 0x139   : > { %v3014_v1 = vpop.f32.mrb[9].mxu0  ;;  %v3086_v5 = vpop.f32.mrb[9].mxu1 }
 0x13a   : > { %v4352_v35 = vadd.f32 %v3014_v1, %v3013_v37  ;;  %v3016_v45 = vpop.f32.mrb[10].mxu0  ;;  %v4354_v52 = vadd.f32 %v3086_v5, %v3085_v38  ;;  %v3088_v31 = vpop.f32.mrb[10].mxu1 }
 0x13b   : > { %v3017_v20 = vpop.f32.mrb[11].mxu0  ;;  %v3089_v29 = vpop.f32.mrb[11].mxu1 }
 0x13c   : > { %v4356_v48 = vadd.f32 %v3017_v20, %v3016_v45  ;;  %v4358_v0 = vadd.f32 %v3089_v29, %v3088_v31  ;;  %v823_v20 = vld [vmem:[#allocation2 + $0x1e7] sm:$0xff]  ;;  %v824_v29 = vld [vmem:[#allocation2 + $0x1ef] sm:$0xff] }
 0x13d   : > { %3478 = vmatmul.mubr.bf16.gmra.mrb[116].mxu0 %v4185_v61  ;;  %2105 = vmatmul.mubr.bf16.gmra.mrb[116].mxu1 %v4211_v13 }
 0x13e   : > { %3481 = vmatprep.mubr.bf16.mxu0 %v4199_v57  ;;  %2112 = vmatprep.mubr.bf16.mxu1 %v4305_v11 }
 0x140   : > { %v3019_v16 = vpop.f32.mrb[12].mxu0  ;;  %v3091_v62 = vpop.f32.mrb[12].mxu1 }
 0x141   : > { %v3020_v46 = vpop.f32.mrb[13].mxu0  ;;  %v3092_v60 = vpop.f32.mrb[13].mxu1 }
 0x142   : > { %v4364_v47 = vadd.f32 %v3020_v46, %v3019_v16  ;;  %v3022_v58 = vpop.f32.mrb[14].mxu0  ;;  %v4366_v3 = vadd.f32 %v3092_v60, %v3091_v62  ;;  %v3094_v18 = vpop.f32.mrb[14].mxu1 }
 0x143   : > { %v3023_v19 = vpop.f32.mrb[15].mxu0  ;;  %v3095_v51 = vpop.f32.mrb[15].mxu1 }
 0x144   : > { %v4368_v56 = vadd.f32 %v3023_v19, %v3022_v58  ;;  %v4370_v61 = vadd.f32 %v3095_v51, %v3094_v18  ;;  %v842_v18 = vpack.c.bf16 %v824_v29, %v823_v20 }
 0x145   : > { %3482 = vmatmul.mubr.bf16.gmra.mrb[120].mxu0 %v4213_v14  ;;  %2113 = vmatmul.mubr.bf16.gmra.mrb[120].mxu1 %v4248_v41 }
 0x146   : > { %3485 = vmatprep.mubr.bf16.mxu0 %v4221_v25  ;;  %2120 = vmatprep.mubr.bf16.mxu1 %v4311_v33  ;;  %v821_v33 = vld [vmem:[#allocation2 + $0x1c7] sm:$0xff] }
 0x147   : > { %v841_v1 = vpack.c.bf16 %v822_v32, %v821_v33 }
 0x148   : > { %v3025_v57 = vpop.f32.mrb[16].mxu0  ;;  %v3113_v13 = vpop.f32.mrb[16].mxu1 }
 0x149   : > { %v3026_v11 = vpop.f32.mrb[17].mxu0  ;;  %v3114_v2 = vpop.f32.mrb[17].mxu1 }
 0x14a   : > { %v4376_v36 = vadd.f32 %v3026_v11, %v3025_v57  ;;  %v3028_v7 = vpop.f32.mrb[18].mxu0  ;;  %v3115_v8 = vadd.f32 %v3114_v2, %v3113_v13  ;;  %v3116_v15 = vpop.f32.mrb[18].mxu1  ;;  %v875_v2 = vld [vmem:[#allocation2 + $0x228] sm:$0xff] }
 0x14b   : > { %v3029_v21 = vpop.f32.mrb[19].mxu0  ;;  %v3117_v27 = vpop.f32.mrb[19].mxu1 }
 0x14c   : > { %v4378_v28 = vadd.f32 %v3029_v21, %v3028_v7  ;;  %v4381_v14 = vadd.f32 %v3115_v8, %v4331_v49  ;;  %v3118_v41 = vadd.f32 %v3117_v27, %v3116_v15  ;;  %v876_v7 = vld [vmem:[#allocation2 + $0x230] sm:$0xff] }
 0x14d   : > { %3486 = vmatmul.mubr.bf16.gmra.mrb[124].mxu0 %v4234_v34  ;;  %2121 = vmatmul.mubr.bf16.gmra.mrb[124].mxu1 %v4262_v39  ;;  %v892_v32 = vpack.c.bf16 %v876_v7, %v875_v2 }
 0x14e   : > { %3489 = vmatprep.mubr.bf16.mxu0 %v4246_v22  ;;  %v4387_v25 = vadd.f32 %v3118_v41, %v4335_v23  ;;  %2128 = vmatprep.mubr.bf16.mxu1 %v4317_v30 }
 0x150   : > { %v3031_v17 = vpop.f32.mrb[20].mxu0  ;;  %v3119_v59 = vpop.f32.mrb[20].mxu1 }
 0x151   : > { %v3032_v26 = vpop.f32.mrb[21].mxu0  ;;  %v3120_v37 = vpop.f32.mrb[21].mxu1 }
 0x152   : > { %v4390_v49 = vadd.f32 %v3032_v26, %v3031_v17  ;;  %v3034_v38 = vpop.f32.mrb[22].mxu0  ;;  %v3121_v34 = vadd.f32 %v3120_v37, %v3119_v59  ;;  %v3122_v5 = vpop.f32.mrb[22].mxu1  ;;  %v923_v59 = vld [vmem:[#allocation2 + $0x229] sm:$0xff]  ;;  %v924_v26 = vld [vmem:[#allocation2 + $0x231] sm:$0xff] }
 0x153   : > { %v3035_v39 = vpop.f32.mrb[23].mxu0  ;;  %v3123_v45 = vpop.f32.mrb[23].mxu1 }
 0x154   : > { %v4392_v22 = vadd.f32 %v3035_v39, %v3034_v38  ;;  %v4395_v23 = vadd.f32 %v3121_v34, %v4342_v44  ;;  %v3124_v30 = vadd.f32 %v3123_v45, %v3122_v5  ;;  %v827_v38 = vld [vmem:[#allocation2 + $0x227] sm:$0xff] }
 0x155   : > { %3490 = vmatmul.mubr.bf16.gmra.mrb[128].mxu0 %v4260_v53  ;;  %2129 = vmatmul.mubr.bf16.gmra.mrb[128].mxu1 %v841_v1  ;;  %v828_v1 = vld [vmem:[#allocation2 + $0x22f] sm:$0xff] }
 0x156   : > { %3493 = vmatprep.mubr.bf16.mxu0 %v4271_v50  ;;  %v4400_v31 = vadd.f32 %v3124_v30, %v4346_v40  ;;  %2136 = vmatprep.mubr.bf16.mxu1 %v4323_v42  ;;  %v844_v20 = vpack.c.bf16 %v828_v1, %v827_v38 }
 0x158   : > { %v3037_v16 = vpop.f32.mrb[24].mxu0  ;;  %v3125_v62 = vpop.f32.mrb[24].mxu1 }
 0x159   : > { %v3038_v46 = vpop.f32.mrb[25].mxu0  ;;  %v3126_v60 = vpop.f32.mrb[25].mxu1 }
 0x15a   : > { %v4403_v58 = vadd.f32 %v3038_v46, %v3037_v16  ;;  %v3040_v44 = vpop.f32.mrb[26].mxu0  ;;  %v3127_v19 = vadd.f32 %v3126_v60, %v3125_v62  ;;  %v3128_v53 = vpop.f32.mrb[26].mxu1 }
 0x15b   : > { %v3041_v51 = vpop.f32.mrb[27].mxu0  ;;  %v3129_v57 = vpop.f32.mrb[27].mxu1 }
 0x15c   : > { %v4405_v50 = vadd.f32 %v3041_v51, %v3040_v44  ;;  %v4408_v40 = vadd.f32 %v3127_v19, %v4352_v35  ;;  %v3130_v42 = vadd.f32 %v3129_v57, %v3128_v53 }
 0x15d   : > { %3494 = vmatmul.mubr.bf16.gmra.mrb[132].mxu0 %v4277_v55  ;;  %2137 = vmatmul.mubr.bf16.gmra.mrb[132].mxu1 %v842_v18 }
 0x15e   : > { %3497 = vmatprep.mubr.bf16.mxu0 %v4283_v4  ;;  %v4413_v13 = vadd.f32 %v3130_v42, %v4356_v48  ;;  %2144 = vmatprep.mubr.bf16.mxu1 %v4215_v10 }
 0x160   : > { %v3043_v11 = vpop.f32.mrb[28].mxu0  ;;  %v3131_v8 = vpop.f32.mrb[28].mxu1 }
 0x161   : > { %v3044_v15 = vpop.f32.mrb[29].mxu0  ;;  %v3132_v21 = vpop.f32.mrb[29].mxu1 }
 0x162   : > { %v4416_v27 = vadd.f32 %v3044_v15, %v3043_v11  ;;  %v3046_v35 = vpop.f32.mrb[30].mxu0  ;;  %v3133_v41 = vadd.f32 %v3132_v21, %v3131_v8  ;;  %v3134_v33 = vpop.f32.mrb[30].mxu1 }
 0x163   : > { %v3047_v55 = vpop.f32.mrb[31].mxu0  ;;  %v3135_v17 = vpop.f32.mrb[31].mxu1 }
 0x164   : > { %v4418_v4 = vadd.f32 %v3047_v55, %v3046_v35  ;;  %v4421_v48 = vadd.f32 %v3133_v41, %v4364_v47  ;;  %v3136_v10 = vadd.f32 %v3135_v17, %v3134_v33  ;;  %v940_v47 = vpack.c.bf16 %v924_v26, %v923_v59 }
 0x165   : > { %3498 = vmatmul.mubr.bf16.gmra.mrb[136].mxu0 %v4291_v24  ;;  %2145 = vmatmul.mubr.bf16.gmra.mrb[136].mxu1 %v4285_v9 }
 0x166   : > { %3501 = vmatprep.mubr.bf16.mxu0 %v4325_v43  ;;  %v4427_v37 = vadd.f32 %v3136_v10, %v4368_v56  ;;  %2152 = vmatprep.mubr.bf16.mxu1 %v892_v32 }
 0x168   : > { %v3049_v34 = vpop.f32.mrb[32].mxu0  ;;  %v3137_v5 = vpop.f32.mrb[32].mxu1 }
 0x169   : > { %v3050_v39 = vpop.f32.mrb[33].mxu0  ;;  %v3138_v45 = vpop.f32.mrb[33].mxu1 }
 0x16a   : > { %v4429_v30 = vadd.f32 %v3050_v39, %v3049_v34  ;;  %v3052_v24 = vpop.f32.mrb[34].mxu0  ;;  %v3139_v9 = vadd.f32 %v3138_v45, %v3137_v5  ;;  %v3140_v29 = vpop.f32.mrb[34].mxu1 }
 0x16b   : > { %v3053_v43 = vpop.f32.mrb[35].mxu0  ;;  %v3141_v16 = vpop.f32.mrb[35].mxu1 }
 0x16c   : > { %v4431_v62 = vadd.f32 %v3053_v43, %v3052_v24  ;;  %v4434_v56 = vadd.f32 %v3139_v9, %v4376_v36  ;;  %v3142_v46 = vadd.f32 %v3141_v16, %v3140_v29 }
 0x16d   : > { %3502 = vmatmul.mubr.bf16.gmra.mrb[140].mxu0 %v940_v47  ;;  %2153 = vmatmul.mubr.bf16.gmra.mrb[140].mxu1 %v844_v20 }
 0x16e   : > { %v4437_v60 = vadd.f32 %v3142_v46, %v4378_v28 }
 0x170   : > { %v3055_v44 = vpop.f32.mrb[36].mxu0  ;;  %v3143_v18 = vpop.f32.mrb[36].mxu1 }
 0x171   : > { %v3056_v19 = vpop.f32.mrb[37].mxu0  ;;  %v3144_v53 = vpop.f32.mrb[37].mxu1 }
 0x172   : > { %v4439_v51 = vadd.f32 %v3056_v19, %v3055_v44  ;;  %v3058_v57 = vpop.f32.mrb[38].mxu0  ;;  %v3145_v42 = vadd.f32 %v3144_v53, %v3143_v18  ;;  %v3146_v11 = vpop.f32.mrb[38].mxu1 }
 0x173   : > { %v3059_v2 = vpop.f32.mrb[39].mxu0  ;;  %v3147_v7 = vpop.f32.mrb[39].mxu1 }
 0x174   : > { %v4441_v8 = vadd.f32 %v3059_v2, %v3058_v57  ;;  %v4444_v36 = vadd.f32 %v3145_v42, %v4390_v49  ;;  %v3148_v15 = vadd.f32 %v3147_v7, %v3146_v11 }
 0x176   : > { %v4447_v28 = vadd.f32 %v3148_v15, %v4392_v22 }
 0x178   : > { %v3061_v21 = vpop.f32.mrb[40].mxu0  ;;  %v3149_v35 = vpop.f32.mrb[40].mxu1 }
 0x179   : > { %v3062_v41 = vpop.f32.mrb[41].mxu0  ;;  %v3150_v33 = vpop.f32.mrb[41].mxu1 }
 0x17a   : > { %v4449_v55 = vadd.f32 %v3062_v41, %v3061_v21  ;;  %v3064_v32 = vpop.f32.mrb[42].mxu0  ;;  %v3151_v17 = vadd.f32 %v3150_v33, %v3149_v35  ;;  %v3152_v10 = vpop.f32.mrb[42].mxu1 }
 0x17b   : > { %v3065_v59 = vpop.f32.mrb[43].mxu0  ;;  %v3153_v26 = vpop.f32.mrb[43].mxu1 }
 0x17c   : > { %v4451_v38 = vadd.f32 %v3065_v59, %v3064_v32  ;;  %v4454_v49 = vadd.f32 %v3151_v17, %v4403_v58  ;;  %v3154_v1 = vadd.f32 %v3153_v26, %v3152_v10 }
 0x17e   : > { %v4457_v22 = vadd.f32 %v3154_v1, %v4405_v50 }
 0x180   : > { %v3067_v34 = vpop.f32.mrb[44].mxu0  ;;  %v3155_v5 = vpop.f32.mrb[44].mxu1 }
 0x181   : > { %v3068_v39 = vpop.f32.mrb[45].mxu0  ;;  %v3156_v47 = vpop.f32.mrb[45].mxu1 }
 0x182   : > { %v4459_v45 = vadd.f32 %v3068_v39, %v3067_v34  ;;  %v3070_v24 = vpop.f32.mrb[46].mxu0  ;;  %v3157_v20 = vadd.f32 %v3156_v47, %v3155_v5  ;;  %v3158_v9 = vpop.f32.mrb[46].mxu1 }
 0x183   : > { %v3071_v29 = vpop.f32.mrb[47].mxu0  ;;  %v3159_v43 = vpop.f32.mrb[47].mxu1 }
 0x184   : > { %v4461_v16 = vadd.f32 %v3071_v29, %v3070_v24  ;;  %v4464_v58 = vadd.f32 %v3157_v20, %v4416_v27  ;;  %v3160_v46 = vadd.f32 %v3159_v43, %v3158_v9 }
 0x186   : > { %v4467_v50 = vadd.f32 %v3160_v46, %v4418_v4 }
 0x188   : > { %v3225_v44 = vpop.f32.mrb[48].mxu0  ;;  %v3161_v18 = vpop.f32.mrb[48].mxu1 }
 0x189   : > { %v3226_v19 = vpop.f32.mrb[49].mxu0  ;;  %v3162_v53 = vpop.f32.mrb[49].mxu1 }
 0x18a   : > { %v3227_v57 = vadd.f32 %v3226_v19, %v3225_v44  ;;  %v3228_v42 = vpop.f32.mrb[50].mxu0  ;;  %v3163_v11 = vadd.f32 %v3162_v53, %v3161_v18  ;;  %v3164_v2 = vpop.f32.mrb[50].mxu1 }
 0x18b   : > { %v3229_v7 = vpop.f32.mrb[51].mxu0  ;;  %v3165_v21 = vpop.f32.mrb[51].mxu1 }
 0x18c   : > { %v4470_v15 = vadd.f32 %v3227_v57, %v4381_v14  ;;  %v3230_v35 = vadd.f32 %v3229_v7, %v3228_v42  ;;  %v4473_v27 = vadd.f32 %v3163_v11, %v4429_v30  ;;  %v3166_v41 = vadd.f32 %v3165_v21, %v3164_v2 }
 0x18e   : > { %v4476_v4 = vadd.f32 %v3230_v35, %v4387_v25  ;;  %v4479_v33 = vadd.f32 %v3166_v41, %v4431_v62 }
 0x190   : > { %v3231_v32 = vpop.f32.mrb[52].mxu0  ;;  %v3167_v17 = vpop.f32.mrb[52].mxu1 }
 0x191   : > { %v3232_v10 = vpop.f32.mrb[53].mxu0  ;;  %v3168_v59 = vpop.f32.mrb[53].mxu1 }
 0x192   : > { %v3233_v26 = vadd.f32 %v3232_v10, %v3231_v32  ;;  %v3234_v1 = vpop.f32.mrb[54].mxu0  ;;  %v3169_v14 = vadd.f32 %v3168_v59, %v3167_v17  ;;  %v3170_v34 = vpop.f32.mrb[54].mxu1 }
 0x193   : > { %v3235_v5 = vpop.f32.mrb[55].mxu0  ;;  %v3171_v30 = vpop.f32.mrb[55].mxu1 }
 0x194   : > { %v4482_v39 = vadd.f32 %v3233_v26, %v4395_v23  ;;  %v3236_v47 = vadd.f32 %v3235_v5, %v3234_v1  ;;  %v4485_v25 = vadd.f32 %v3169_v14, %v4439_v51  ;;  %v3172_v24 = vadd.f32 %v3171_v30, %v3170_v34 }
 0x196   : > { %v4488_v62 = vadd.f32 %v3236_v47, %v4400_v31  ;;  %v4491_v20 = vadd.f32 %v3172_v24, %v4441_v8 }
 0x198   : > { %v3237_v9 = vpop.f32.mrb[56].mxu0  ;;  %v3173_v29 = vpop.f32.mrb[56].mxu1 }
 0x199   : > { %v3238_v43 = vpop.f32.mrb[57].mxu0  ;;  %v3174_v46 = vpop.f32.mrb[57].mxu1 }
 0x19a   : > { %v3239_v44 = vadd.f32 %v3238_v43, %v3237_v9  ;;  %v3240_v18 = vpop.f32.mrb[58].mxu0  ;;  %v3175_v23 = vadd.f32 %v3174_v46, %v3173_v29  ;;  %v3176_v19 = vpop.f32.mrb[58].mxu1 }
 0x19b   : > { %v3241_v53 = vpop.f32.mrb[59].mxu0  ;;  %v3177_v51 = vpop.f32.mrb[59].mxu1 }
 0x19c   : > { %v4494_v57 = vadd.f32 %v3239_v44, %v4408_v40  ;;  %v3242_v42 = vadd.f32 %v3241_v53, %v3240_v18  ;;  %v4497_v31 = vadd.f32 %v3175_v23, %v4449_v55  ;;  %v3178_v11 = vadd.f32 %v3177_v51, %v3176_v19 }
 0x19e   : > { %v4500_v8 = vadd.f32 %v3242_v42, %v4413_v13  ;;  %v4503_v2 = vadd.f32 %v3178_v11, %v4451_v38 }
 0x1a0   : > { %v3243_v7 = vpop.f32.mrb[60].mxu0  ;;  %v3179_v21 = vpop.f32.mrb[60].mxu1 }
 0x1a1   : > { %v3244_v35 = vpop.f32.mrb[61].mxu0  ;;  %v3180_v41 = vpop.f32.mrb[61].mxu1 }
 0x1a2   : > { %v3245_v32 = vadd.f32 %v3244_v35, %v3243_v7  ;;  %v3246_v17 = vpop.f32.mrb[62].mxu0  ;;  %v3181_v40 = vadd.f32 %v3180_v41, %v3179_v21  ;;  %v3182_v10 = vpop.f32.mrb[62].mxu1 }
 0x1a3   : > { %v3247_v59 = vpop.f32.mrb[63].mxu0  ;;  %v3183_v55 = vpop.f32.mrb[63].mxu1 }
 0x1a4   : > { %v4506_v26 = vadd.f32 %v3245_v32, %v4421_v48  ;;  %v3248_v1 = vadd.f32 %v3247_v59, %v3246_v17  ;;  %v4509_v13 = vadd.f32 %v3181_v40, %v4459_v45  ;;  %v3184_v14 = vadd.f32 %v3183_v55, %v3182_v10 }
 0x1a6   : > { %v4512_v38 = vadd.f32 %v3248_v1, %v4427_v37  ;;  %v4515_v34 = vadd.f32 %v3184_v14, %v4461_v16 }
 0x1a8   : > { %v3249_v5 = vpop.f32.mrb[64].mxu0  ;;  %v3185_v30 = vpop.f32.mrb[64].mxu1 }
 0x1a9   : > { %v3250_v47 = vpop.f32.mrb[65].mxu0  ;;  %v3186_v24 = vpop.f32.mrb[65].mxu1 }
 0x1aa   : > { %v3251_v9 = vadd.f32 %v3250_v47, %v3249_v5  ;;  %v3252_v29 = vpop.f32.mrb[66].mxu0  ;;  %v3187_v48 = vadd.f32 %v3186_v24, %v3185_v30  ;;  %v3188_v43 = vpop.f32.mrb[66].mxu1 }
 0x1ab   : > { %v3253_v46 = vpop.f32.mrb[67].mxu0  ;;  %v3189_v45 = vpop.f32.mrb[67].mxu1 }
 0x1ac   : > { %v4518_v44 = vadd.f32 %v3251_v9, %v4434_v56  ;;  %v3254_v18 = vadd.f32 %v3253_v46, %v3252_v29  ;;  %v4521_v37 = vadd.f32 %v3187_v48, %v4333_v54  ;;  %v3190_v23 = vadd.f32 %v3189_v45, %v3188_v43 }
 0x1ae   : > { %v4524_v16 = vadd.f32 %v3254_v18, %v4437_v60  ;;  %v4527_v19 = vadd.f32 %v3190_v23, %v4337_v63 }
 0x1b0   : > { %v3255_v53 = vpop.f32.mrb[68].mxu0  ;;  %v3191_v51 = vpop.f32.mrb[68].mxu1 }
 0x1b1   : > { %v3256_v42 = vpop.f32.mrb[69].mxu0  ;;  %v3192_v11 = vpop.f32.mrb[69].mxu1 }
 0x1b2   : > { %v3257_v7 = vadd.f32 %v3256_v42, %v3255_v53  ;;  %v3258_v21 = vpop.f32.mrb[70].mxu0  ;;  %v3193_v56 = vadd.f32 %v3192_v11, %v3191_v51  ;;  %v3194_v35 = vpop.f32.mrb[70].mxu1 }
 0x1b3   : > { %v3259_v41 = vpop.f32.mrb[71].mxu0  ;;  %v3195_v54 = vpop.f32.mrb[71].mxu1 }
 0x1b4   : > { %v4530_v32 = vadd.f32 %v3257_v7, %v4444_v36  ;;  %v3260_v17 = vadd.f32 %v3259_v41, %v3258_v21  ;;  %v4533_v60 = vadd.f32 %v3193_v56, %v4344_v6  ;;  %v3196_v40 = vadd.f32 %v3195_v54, %v3194_v35 }
 0x1b6   : > { %v4536_v63 = vadd.f32 %v3260_v17, %v4447_v28  ;;  %v4539_v10 = vadd.f32 %v3196_v40, %v4348_v12 }
 0x1b8   : > { %v3261_v59 = vpop.f32.mrb[72].mxu0  ;;  %v3197_v55 = vpop.f32.mrb[72].mxu1 }
 0x1b9   : > { %v3262_v1 = vpop.f32.mrb[73].mxu0  ;;  %v3198_v14 = vpop.f32.mrb[73].mxu1 }
 0x1ba   : > { %v3263_v5 = vadd.f32 %v3262_v1, %v3261_v59  ;;  %v3264_v30 = vpop.f32.mrb[74].mxu0  ;;  %v3199_v36 = vadd.f32 %v3198_v14, %v3197_v55  ;;  %v3200_v47 = vpop.f32.mrb[74].mxu1 }
 0x1bb   : > { %v3265_v24 = vpop.f32.mrb[75].mxu0  ;;  %v3201_v6 = vpop.f32.mrb[75].mxu1 }
 0x1bc   : > { %v4542_v9 = vadd.f32 %v3263_v5, %v4454_v49  ;;  %v3266_v29 = vadd.f32 %v3265_v24, %v3264_v30  ;;  %v4545_v28 = vadd.f32 %v3199_v36, %v4354_v52  ;;  %v3202_v48 = vadd.f32 %v3201_v6, %v3200_v47 }
 0x1be   : > { %v4548_v12 = vadd.f32 %v3266_v29, %v4457_v22  ;;  %v4551_v43 = vadd.f32 %v3202_v48, %v4358_v0 }
 0x1c0   : > { %v3267_v46 = vpop.f32.mrb[76].mxu0  ;;  %v3203_v45 = vpop.f32.mrb[76].mxu1 }
 0x1c1   : > { %v3268_v18 = vpop.f32.mrb[77].mxu0  ;;  %v3204_v23 = vpop.f32.mrb[77].mxu1 }
 0x1c2   : > { %v3269_v53 = vadd.f32 %v3268_v18, %v3267_v46  ;;  %v3270_v51 = vpop.f32.mrb[78].mxu0  ;;  %v3205_v49 = vadd.f32 %v3204_v23, %v3203_v45  ;;  %v3206_v42 = vpop.f32.mrb[78].mxu1 }
 0x1c3   : > { %v3271_v11 = vpop.f32.mrb[79].mxu0  ;;  %v3207_v52 = vpop.f32.mrb[79].mxu1 }
 0x1c4   : > { %v4554_v7 = vadd.f32 %v3269_v53, %v4464_v58  ;;  %v3272_v21 = vadd.f32 %v3271_v11, %v3270_v51  ;;  %v4557_v22 = vadd.f32 %v3205_v49, %v4366_v3  ;;  %v3208_v56 = vadd.f32 %v3207_v52, %v3206_v42 }
 0x1c6   : > { %v4560_v0 = vadd.f32 %v3272_v21, %v4467_v50  ;;  %v4563_v35 = vadd.f32 %v3208_v56, %v4370_v61 }
 0x1c8   : > { %v3273_v41 = vpop.f32.mrb[80].mxu0  ;;  %v3337_v54 = vpop.f32.mrb[80].mxu1 }
 0x1c9   : > { %v3274_v17 = vpop.f32.mrb[81].mxu0  ;;  %v3338_v59 = vpop.f32.mrb[81].mxu1 }
 0x1ca   : > { %v3275_v40 = vadd.f32 %v3274_v17, %v3273_v41  ;;  %v3276_v55 = vpop.f32.mrb[82].mxu0  ;;  %v3339_v58 = vadd.f32 %v3338_v59, %v3337_v54  ;;  %v3340_v1 = vpop.f32.mrb[82].mxu1 }
 0x1cb   : > { %v3277_v14 = vpop.f32.mrb[83].mxu0  ;;  %v3341_v30 = vpop.f32.mrb[83].mxu1 }
 0x1cc   : > { %v4566_v5 = vadd.f32 %v3275_v40, %v4473_v27  ;;  %v3278_v3 = vadd.f32 %v3277_v14, %v3276_v55  ;;  %v3342_v36 = vadd.f32 %v3341_v30, %v3340_v1  ;;  %v4569_v50 = vadd.f32 %v3339_v58, %v4470_v15 }
 0x1ce   : > { %v4572_v61 = vadd.f32 %v3278_v3, %v4479_v33  ;;  %v4575_v47 = vadd.f32 %v3342_v36, %v4476_v4 }
 0x1d0   : > { %v3279_v24 = vpop.f32.mrb[84].mxu0  ;;  %v3343_v6 = vpop.f32.mrb[84].mxu1 }
 0x1d1   : > { %v3280_v29 = vpop.f32.mrb[85].mxu0  ;;  %v3344_v46 = vpop.f32.mrb[85].mxu1 }
 0x1d2   : > { %v3281_v48 = vadd.f32 %v3280_v29, %v3279_v24  ;;  %v3282_v45 = vpop.f32.mrb[86].mxu0  ;;  %v3345_v27 = vadd.f32 %v3344_v46, %v3343_v6  ;;  %v3346_v18 = vpop.f32.mrb[86].mxu1 }
 0x1d3   : > { %v3283_v23 = vpop.f32.mrb[87].mxu0  ;;  %v3347_v51 = vpop.f32.mrb[87].mxu1 }
 0x1d4   : > { %v4578_v53 = vadd.f32 %v3281_v48, %v4485_v25  ;;  %v3284_v15 = vadd.f32 %v3283_v23, %v3282_v45  ;;  %v3348_v49 = vadd.f32 %v3347_v51, %v3346_v18  ;;  %v4581_v33 = vadd.f32 %v3345_v27, %v4482_v39 }
 0x1d6   : > { %v4584_v4 = vadd.f32 %v3284_v15, %v4491_v20  ;;  %v4587_v42 = vadd.f32 %v3348_v49, %v4488_v62 }
 0x1d8   : > { %v3285_v11 = vpop.f32.mrb[88].mxu0  ;;  %v3349_v52 = vpop.f32.mrb[88].mxu1 }
 0x1d9   : > { %v3286_v21 = vpop.f32.mrb[89].mxu0  ;;  %v3350_v41 = vpop.f32.mrb[89].mxu1 }
 0x1da   : > { %v3287_v56 = vadd.f32 %v3286_v21, %v3285_v11  ;;  %v3288_v54 = vpop.f32.mrb[90].mxu0  ;;  %v3351_v25 = vadd.f32 %v3350_v41, %v3349_v52  ;;  %v3352_v17 = vpop.f32.mrb[90].mxu1 }
 0x1db   : > { %v3289_v40 = vpop.f32.mrb[91].mxu0  ;;  %v3353_v55 = vpop.f32.mrb[91].mxu1 }
 0x1dc   : > { %v4590_v59 = vadd.f32 %v3287_v56, %v4497_v31  ;;  %v3290_v39 = vadd.f32 %v3289_v40, %v3288_v54  ;;  %v3354_v58 = vadd.f32 %v3353_v55, %v3352_v17  ;;  %v4593_v20 = vadd.f32 %v3351_v25, %v4494_v57 }
 0x1de   : > { %v4596_v62 = vadd.f32 %v3290_v39, %v4503_v2  ;;  %v4599_v1 = vadd.f32 %v3354_v58, %v4500_v8 }
 0x1e0   : > { %v3291_v14 = vpop.f32.mrb[92].mxu0  ;;  %v3355_v3 = vpop.f32.mrb[92].mxu1 }
 0x1e1   : > { %v3292_v30 = vpop.f32.mrb[93].mxu0  ;;  %v3356_v24 = vpop.f32.mrb[93].mxu1 }
 0x1e2   : > { %v3293_v36 = vadd.f32 %v3292_v30, %v3291_v14  ;;  %v3294_v6 = vpop.f32.mrb[94].mxu0  ;;  %v3357_v31 = vadd.f32 %v3356_v24, %v3355_v3  ;;  %v3358_v29 = vpop.f32.mrb[94].mxu1 }
 0x1e3   : > { %v3295_v48 = vpop.f32.mrb[95].mxu0  ;;  %v3359_v45 = vpop.f32.mrb[95].mxu1 }
 0x1e4   : > { %v4602_v46 = vadd.f32 %v3293_v36, %v4509_v13  ;;  %v3296_v57 = vadd.f32 %v3295_v48, %v3294_v6  ;;  %v3360_v27 = vadd.f32 %v3359_v45, %v3358_v29  ;;  %v4605_v2 = vadd.f32 %v3357_v31, %v4506_v26 }
 0x1e6   : > { %v4608_v8 = vadd.f32 %v3296_v57, %v4515_v34  ;;  %v4611_v18 = vadd.f32 %v3360_v27, %v4512_v38 }
 0x1e8   : > { %v3297_v23 = vpop.f32.mrb[96].mxu0  ;;  %v3361_v15 = vpop.f32.mrb[96].mxu1 }
 0x1e9   : > { %v3298_v51 = vpop.f32.mrb[97].mxu0  ;;  %v3362_v11 = vpop.f32.mrb[97].mxu1 }
 0x1ea   : > { %v3299_v49 = vadd.f32 %v3298_v51, %v3297_v23  ;;  %v3300_v52 = vpop.f32.mrb[98].mxu0  ;;  %v3363_v13 = vadd.f32 %v3362_v11, %v3361_v15  ;;  %v3364_v21 = vpop.f32.mrb[98].mxu1 }
 0x1eb   : > { %v3301_v56 = vpop.f32.mrb[99].mxu0  ;;  %v3365_v54 = vpop.f32.mrb[99].mxu1 }
 0x1ec   : > { %v4614_v41 = vadd.f32 %v3299_v49, %v4521_v37  ;;  %v3302_v26 = vadd.f32 %v3301_v56, %v3300_v52  ;;  %v3366_v25 = vadd.f32 %v3365_v54, %v3364_v21  ;;  %v4617_v34 = vadd.f32 %v3363_v13, %v4518_v44 }
 0x1ee   : > { %v4620_v38 = vadd.f32 %v3302_v26, %v4527_v19  ;;  %v4623_v17 = vadd.f32 %v3366_v25, %v4524_v16 }
 0x1f0   : > { %v3303_v40 = vpop.f32.mrb[100].mxu0  ;;  %v3367_v39 = vpop.f32.mrb[100].mxu1 }
 0x1f1   : > { %v3304_v55 = vpop.f32.mrb[101].mxu0  ;;  %v3368_v14 = vpop.f32.mrb[101].mxu1 }
 0x1f2   : > { %v3305_v58 = vadd.f32 %v3304_v55, %v3303_v40  ;;  %v3306_v3 = vpop.f32.mrb[102].mxu0  ;;  %v3369_v37 = vadd.f32 %v3368_v14, %v3367_v39  ;;  %v3370_v30 = vpop.f32.mrb[102].mxu1 }
 0x1f3   : > { %v3307_v36 = vpop.f32.mrb[103].mxu0  ;;  %v3371_v6 = vpop.f32.mrb[103].mxu1 }
 0x1f4   : > { %v4626_v24 = vadd.f32 %v3305_v58, %v4533_v60  ;;  %v3308_v44 = vadd.f32 %v3307_v36, %v3306_v3  ;;  %v3372_v31 = vadd.f32 %v3371_v6, %v3370_v30  ;;  %v4629_v19 = vadd.f32 %v3369_v37, %v4530_v32 }
 0x1f6   : > { %v4632_v16 = vadd.f32 %v3308_v44, %v4539_v10  ;;  %v4635_v29 = vadd.f32 %v3372_v31, %v4536_v63 }
 0x1f8   : > { %v3309_v48 = vpop.f32.mrb[104].mxu0  ;;  %v3373_v57 = vpop.f32.mrb[104].mxu1 }
 0x1f9   : > { %v3310_v45 = vpop.f32.mrb[105].mxu0  ;;  %v3374_v23 = vpop.f32.mrb[105].mxu1 }
 0x1fa   : > { %v3311_v27 = vadd.f32 %v3310_v45, %v3309_v48  ;;  %v3312_v15 = vpop.f32.mrb[106].mxu0  ;;  %v3375_v60 = vadd.f32 %v3374_v23, %v3373_v57  ;;  %v3376_v51 = vpop.f32.mrb[106].mxu1 }
 0x1fb   : > { %v3313_v49 = vpop.f32.mrb[107].mxu0  ;;  %v3377_v52 = vpop.f32.mrb[107].mxu1 }
 0x1fc   : > { %v4638_v11 = vadd.f32 %v3311_v27, %v4545_v28  ;;  %v3314_v32 = vadd.f32 %v3313_v49, %v3312_v15  ;;  %v3378_v13 = vadd.f32 %v3377_v52, %v3376_v51  ;;  %v4641_v10 = vadd.f32 %v3375_v60, %v4542_v9 }
 0x1fe   : > { %v4644_v63 = vadd.f32 %v3314_v32, %v4551_v43  ;;  %v4647_v21 = vadd.f32 %v3378_v13, %v4548_v12 }
 0x200   : > { %v3315_v56 = vpop.f32.mrb[108].mxu0  ;;  %v3379_v26 = vpop.f32.mrb[108].mxu1 }
 0x201   : > { %v3316_v54 = vpop.f32.mrb[109].mxu0  ;;  %v3380_v40 = vpop.f32.mrb[109].mxu1 }
 0x202   : > { %v3317_v25 = vadd.f32 %v3316_v54, %v3315_v56  ;;  %v3318_v39 = vpop.f32.mrb[110].mxu0  ;;  %v3381_v28 = vadd.f32 %v3380_v40, %v3379_v26  ;;  %v3382_v55 = vpop.f32.mrb[110].mxu1 }
 0x203   : > { %v3319_v58 = vpop.f32.mrb[111].mxu0  ;;  %v3383_v3 = vpop.f32.mrb[111].mxu1 }
 0x204   : > { %v4650_v14 = vadd.f32 %v3317_v25, %v4557_v22  ;;  %v3320_v9 = vadd.f32 %v3319_v58, %v3318_v39  ;;  %v3384_v37 = vadd.f32 %v3383_v3, %v3382_v55  ;;  %v4653_v43 = vadd.f32 %v3381_v28, %v4554_v7 }
 0x206   : > { %v4656_v12 = vadd.f32 %v3320_v9, %v4563_v35  ;;  %v4659_v30 = vadd.f32 %v3384_v37, %v4560_v0 }
 0x208   : > { %v3475_v36 = vpop.f32.mrb[112].mxu0  ;;  %v3385_v44 = vpop.f32.mrb[112].mxu1 }
 0x209   : > { %v4662_v6 = vadd.f32 %v3475_v36, %v4581_v33  ;;  %v2195_v22 = vpop.f32.mrb[113].mxu0  ;;  %v3386_v31 = vpop.f32.mrb[113].mxu1 }
 0x20a   : > { %v4665_v48 = vadd.f32 %v2195_v22, %v4569_v50  ;;  %v3476_v7 = vpop.f32.mrb[114].mxu0  ;;  %v3387_v57 = vadd.f32 %v3386_v31, %v3385_v44  ;;  %v3388_v45 = vpop.f32.mrb[114].mxu1 }
 0x20b   : > { %v4668_v35 = vadd.f32 %v3476_v7, %v4587_v42  ;;  %v2198_v0 = vpop.f32.mrb[115].mxu0  ;;  %v3389_v27 = vpop.f32.mrb[115].mxu1 }
 0x20c   : > { %v4671_v23 = vadd.f32 %v2198_v0, %v4575_v47  ;;  %v3390_v15 = vadd.f32 %v3389_v27, %v3388_v45  ;;  %v4676_v60 = vadd.f32 %v3387_v57, %v4566_v5 }
 0x20d   : > { %v2883_v33 = vpack.c.bf16 %v4668_v35, %v4662_v6 }
 0x20e   : > { %v2878_v50 = vpack.c.bf16 %v4671_v23, %v4665_v48  ;;  %v4682_v51 = vadd.f32 %v3390_v15, %v4572_v61 }
 0x20f   : > { %2970 = vst [vmem:[%s3663_s27 + $0x8] sm:$0xff] %v2883_v33  }
 0x210   : > { %2879 = vst [vmem:[%s3663_s27] sm:$0xff] %v2878_v50   ;;  %v3479_v42 = vpop.f32.mrb[116].mxu0  ;;  %v3391_v49 = vpop.f32.mrb[116].mxu1 }
 0x211   : > { %v4686_v47 = vadd.f32 %v3479_v42, %v4605_v2  ;;  %v2211_v32 = vpop.f32.mrb[117].mxu0  ;;  %v3392_v52 = vpop.f32.mrb[117].mxu1 }
 0x212   : > { %v4689_v5 = vadd.f32 %v2211_v32, %v4593_v20  ;;  %v3480_v13 = vpop.f32.mrb[118].mxu0  ;;  %v3393_v56 = vadd.f32 %v3392_v52, %v3391_v49  ;;  %v3394_v26 = vpop.f32.mrb[118].mxu1 }
 0x213   : > { %v4692_v54 = vadd.f32 %v3480_v13, %v4611_v18  ;;  %v2214_v61 = vpop.f32.mrb[119].mxu0  ;;  %v3395_v25 = vpop.f32.mrb[119].mxu1 }
 0x214   : > { %v4695_v40 = vadd.f32 %v2214_v61, %v4599_v1  ;;  %v3396_v39 = vadd.f32 %v3395_v25, %v3394_v26  ;;  %v2107_v28 = vadd.f32 %v3393_v56, %v4578_v53 }
 0x215   : > { %v2893_v2 = vpack.c.bf16 %v4692_v54, %v4686_v47 }
 0x216   : > { %v2888_v20 = vpack.c.bf16 %v4695_v40, %v4689_v5  ;;  %v2110_v55 = vadd.f32 %v3396_v39, %v4584_v4 }
 0x217   : > { %2972 = vst [vmem:[%s3663_s27 + $0x18] sm:$0xff] %v2893_v2  }
 0x218   : > { %2971 = vst [vmem:[%s3663_s27 + $0x10] sm:$0xff] %v2888_v20   ;;  %v3483_v18 = vpop.f32.mrb[120].mxu0  ;;  %v3397_v58 = vpop.f32.mrb[120].mxu1 }
 0x219   : > { %v4706_v9 = vadd.f32 %v3483_v18, %v4629_v19  ;;  %v2227_v1 = vpop.f32.mrb[121].mxu0  ;;  %v3398_v3 = vpop.f32.mrb[121].mxu1 }
 0x21a   : > { %v4709_v37 = vadd.f32 %v2227_v1, %v4617_v34  ;;  %v3484_v53 = vpop.f32.mrb[122].mxu0  ;;  %v3399_v36 = vadd.f32 %v3398_v3, %v3397_v58  ;;  %v3400_v44 = vpop.f32.mrb[122].mxu1 }
 0x21b   : > { %v4712_v22 = vadd.f32 %v3484_v53, %v4635_v29  ;;  %v2230_v4 = vpop.f32.mrb[123].mxu0  ;;  %v3401_v31 = vpop.f32.mrb[123].mxu1 }
 0x21c   : > { %v4715_v7 = vadd.f32 %v2230_v4, %v4623_v17  ;;  %v3402_v57 = vadd.f32 %v3401_v31, %v3400_v44  ;;  %v2115_v45 = vadd.f32 %v3399_v36, %v4590_v59 }
 0x21d   : > { %v2903_v19 = vpack.c.bf16 %v4712_v22, %v4706_v9 }
 0x21e   : > { %v2898_v34 = vpack.c.bf16 %v4715_v7, %v4709_v37  ;;  %v2118_v0 = vadd.f32 %v3402_v57, %v4596_v62 }
 0x21f   : > { %2974 = vst [vmem:[%s3663_s27 + $0x28] sm:$0xff] %v2903_v19  }
 0x220   : > { %2973 = vst [vmem:[%s3663_s27 + $0x20] sm:$0xff] %v2898_v34   ;;  %v3487_v29 = vpop.f32.mrb[124].mxu0  ;;  %v3403_v27 = vpop.f32.mrb[124].mxu1 }
 0x221   : > { %v4726_v33 = vadd.f32 %v3487_v29, %v4653_v43  ;;  %v2243_v17 = vpop.f32.mrb[125].mxu0  ;;  %v3404_v15 = vpop.f32.mrb[125].mxu1 }
 0x222   : > { %v4729_v50 = vadd.f32 %v2243_v17, %v4641_v10  ;;  %v3488_v59 = vpop.f32.mrb[126].mxu0  ;;  %v3405_v42 = vadd.f32 %v3404_v15, %v3403_v27  ;;  %v3406_v49 = vpop.f32.mrb[126].mxu1 }
 0x223   : > { %v4732_v32 = vadd.f32 %v3488_v59, %v4659_v30  ;;  %v2246_v62 = vpop.f32.mrb[127].mxu0  ;;  %v3407_v52 = vpop.f32.mrb[127].mxu1 }
 0x224   : > { %v4735_v13 = vadd.f32 %v2246_v62, %v4647_v21  ;;  %v3408_v56 = vadd.f32 %v3407_v52, %v3406_v49  ;;  %v2123_v26 = vadd.f32 %v3405_v42, %v4602_v46 }
 0x225   : > { %v2913_v43 = vpack.c.bf16 %v4732_v32, %v4726_v33 }
 0x226   : > { %v2908_v10 = vpack.c.bf16 %v4735_v13, %v4729_v50  ;;  %v2126_v61 = vadd.f32 %v3408_v56, %v4608_v8 }
 0x227   : > { %2976 = vst [vmem:[%s3663_s27 + $0x38] sm:$0xff] %v2913_v43  }
 0x228   : > { %2975 = vst [vmem:[%s3663_s27 + $0x30] sm:$0xff] %v2908_v10   ;;  %v3491_v30 = vpop.f32.mrb[128].mxu0  ;;  %v3409_v25 = vpop.f32.mrb[128].mxu1 }
 0x229   : > { %v4745_v2 = vadd.f32 %v3491_v30, %v2107_v28  ;;  %v2259_v21 = vpop.f32.mrb[129].mxu0  ;;  %v3410_v39 = vpop.f32.mrb[129].mxu1 }
 0x22a   : > { %v4748_v20 = vadd.f32 %v2259_v21, %v4676_v60  ;;  %v3492_v18 = vpop.f32.mrb[130].mxu0  ;;  %v3411_v46 = vadd.f32 %v3410_v39, %v3409_v25  ;;  %v3412_v58 = vpop.f32.mrb[130].mxu1 }
 0x22b   : > { %v4750_v1 = vadd.f32 %v3492_v18, %v2110_v55  ;;  %v2262_v3 = vpop.f32.mrb[131].mxu0  ;;  %v3413_v53 = vpop.f32.mrb[131].mxu1 }
 0x22c   : > { %v4753_v8 = vadd.f32 %v2262_v3, %v4682_v51  ;;  %v3414_v36 = vadd.f32 %v3413_v53, %v3412_v58  ;;  %v2131_v44 = vadd.f32 %v3411_v46, %v4614_v41 }
 0x22d   : > { %v2923_v28 = vpack.c.bf16 %v4750_v1, %v4745_v2 }
 0x22e   : > { %v2918_v60 = vpack.c.bf16 %v4753_v8, %v4748_v20  ;;  %v2134_v4 = vadd.f32 %v3414_v36, %v4620_v38 }
 0x22f   : > { %2978 = vst [vmem:[%s3663_s27 + $0x48] sm:$0xff] %v2923_v28  }
 0x230   : > { %2977 = vst [vmem:[%s3663_s27 + $0x40] sm:$0xff] %v2918_v60   ;;  %v3495_v55 = vpop.f32.mrb[132].mxu0  ;;  %v3415_v31 = vpop.f32.mrb[132].mxu1 }
 0x231   : > { %v4763_v19 = vadd.f32 %v3495_v55, %v2123_v26  ;;  %v2275_v51 = vpop.f32.mrb[133].mxu0  ;;  %v3416_v57 = vpop.f32.mrb[133].mxu1 }
 0x232   : > { %v4765_v34 = vadd.f32 %v2275_v51, %v2115_v45  ;;  %v3496_v29 = vpop.f32.mrb[134].mxu0  ;;  %v3417_v27 = vadd.f32 %v3416_v57, %v3415_v31  ;;  %v3418_v41 = vpop.f32.mrb[134].mxu1 }
 0x233   : > { %v4767_v17 = vadd.f32 %v3496_v29, %v2126_v61  ;;  %v2278_v15 = vpop.f32.mrb[135].mxu0  ;;  %v3419_v59 = vpop.f32.mrb[135].mxu1 }
 0x234   : > { %v4769_v42 = vadd.f32 %v2278_v15, %v2118_v0  ;;  %v3420_v49 = vadd.f32 %v3419_v59, %v3418_v41  ;;  %v2139_v62 = vadd.f32 %v3417_v27, %v4626_v24 }
 0x235   : > { %v2933_v38 = vpack.c.bf16 %v4767_v17, %v4763_v19 }
 0x236   : > { %v2928_v52 = vpack.c.bf16 %v4769_v42, %v4765_v34  ;;  %v2142_v45 = vadd.f32 %v3420_v49, %v4632_v16 }
 0x237   : > { %2980 = vst [vmem:[%s3663_s27 + $0x58] sm:$0xff] %v2933_v38  }
 0x238   : > { %2979 = vst [vmem:[%s3663_s27 + $0x50] sm:$0xff] %v2928_v52   ;;  %v3499_v43 = vpop.f32.mrb[136].mxu0  ;;  %v3421_v56 = vpop.f32.mrb[136].mxu1  ;;  %v3612_v52 = vmov (!%p2667_p4), 0.0  }
 0x239   : > { %v4779_v26 = vadd.f32 %v3499_v43, %v2139_v62  ;;  %v2291_v0 = vpop.f32.mrb[137].mxu0  ;;  %v3422_v10 = vpop.f32.mrb[137].mxu1  ;;  %2485 = vst [vmem:[%s4926_s5] sm:$0x3] (!%p2667_p4), %v3612_v52 }
 0x23a   : > { %v4781_v61 = vadd.f32 %v2291_v0, %v2131_v44  ;;  %v3500_v30 = vpop.f32.mrb[138].mxu0  ;;  %v3423_v25 = vadd.f32 %v3422_v10, %v3421_v56  ;;  %v3424_v24 = vpop.f32.mrb[138].mxu1 }
 0x23b   : > { %v4783_v21 = vadd.f32 %v3500_v30, %v2142_v45  ;;  %v2294_v39 = vpop.f32.mrb[139].mxu0  ;;  %v3425_v18 = vpop.f32.mrb[139].mxu1 }
 0x23c   : > { %v4785_v46 = vadd.f32 %v2294_v39, %v2134_v4  ;;  %v3426_v58 = vadd.f32 %v3425_v18, %v3424_v24  ;;  %v2147_v3 = vadd.f32 %v3423_v25, %v4638_v11 }
 0x23d   : > { %v2943_v16 = vpack.c.bf16 %v4783_v21, %v4779_v26 }
 0x23e   : > { %v2938_v53 = vpack.c.bf16 %v4785_v46, %v4781_v61  ;;  %v2150_v28 = vadd.f32 %v3426_v58, %v4644_v63 }
 0x23f   : > { %2982 = vst [vmem:[%s3663_s27 + $0x68] sm:$0xff] %v2943_v16  }
 0x240   : > { %2981 = vst [vmem:[%s3663_s27 + $0x60] sm:$0xff] %v2938_v53   ;;  %v3503_v36 = vpop.f32.mrb[140].mxu0  ;;  %v3427_v44 = vpop.f32.mrb[140].mxu1 }
 0x241   : > { %v2307_v60 = vpop.f32.mrb[141].mxu0  ;;  %v3428_v55 = vpop.f32.mrb[141].mxu1 }
 0x242   : > { %v4795_v4 = vadd.f32 %v2307_v60, %v2147_v3  ;;  %v3504_v31 = vpop.f32.mrb[142].mxu0  ;;  %v3429_v51 = vadd.f32 %v3428_v55, %v3427_v44  ;;  %v3430_v57 = vpop.f32.mrb[142].mxu1 }
 0x243   : > { %v2310_v29 = vpop.f32.mrb[143].mxu0  ;;  %v3431_v11 = vpop.f32.mrb[143].mxu1 }
 0x244   : > { %v4797_v27 = vadd.f32 %v2310_v29, %v2150_v28  ;;  %v2155_v41 = vadd.f32 %v3429_v51, %v4650_v14  ;;  %v3432_v15 = vadd.f32 %v3431_v11, %v3430_v57 }
 0x246   : > { %v2948_v63 = vpack.c.bf16 %v4797_v27, %v4795_v4  ;;  %v4802_v59 = vadd.f32 %v3503_v36, %v2155_v41  ;;  %v2158_v38 = vadd.f32 %v3432_v15, %v4656_v12  ;;  %2484 = sbr.rel (%p2667_p4) target bundleno = 589 (0x24d), region = 44 }
 0x248   : > { %2983 = vst [vmem:[%s3663_s27 + $0x70] sm:$0xff] %v2948_v63   ;;  %v4806_v49 = vadd.f32 %v3504_v31, %v2158_v38 }
 0x24a   : > { %v2953_v62 = vpack.c.bf16 %v4806_v49, %v4802_v59 }
 0x24c   : > { %2984 = vst [vmem:[%s3663_s27 + $0x78] sm:$0xff] %v2953_v62  }
 0x24d PF: > { %v2487_v14 = vadd.f32 %v4671_v23, %v4665_v48  ;;  %v2524_v43 = vmul.f32 %v4665_v48, %v4665_v48  ;;  %v2525_v56 = vmul.f32 %v4671_v23, %v4671_v23  ;;  %v2526_v10 = vmul.f32 %v4662_v6, %v4662_v6 }
 0x24e   : > { %v2527_v25 = vmul.f32 %v4668_v35, %v4668_v35  ;;  %v2528_v18 = vmul.f32 %v4689_v5, %v4689_v5  ;;  %v2529_v23 = vmul.f32 %v4695_v40, %v4695_v40  ;;  %v2530_v3 = vmul.f32 %v4686_v47, %v4686_v47 }
 0x24f   : > { %v2488_v12 = vadd.f32 %v2487_v14, %v4662_v6  ;;  %v2556_v24 = vadd.f32 %v2525_v56, %v2524_v43  ;;  %v2531_v28 = vmul.f32 %v4692_v54, %v4692_v54  ;;  %v2532_v44 = vmul.f32 %v4709_v37, %v4709_v37 }
 0x250   : > { %v2533_v55 = vmul.f32 %v4715_v7, %v4715_v7  ;;  %v2534_v51 = vmul.f32 %v4706_v9, %v4706_v9  ;;  %v2535_v29 = vmul.f32 %v4712_v22, %v4712_v22  ;;  %v2536_v41 = vmul.f32 %v4729_v50, %v4729_v50 }
 0x251   : > { %v2489_v45 = vadd.f32 %v2488_v12, %v4668_v35  ;;  %v2557_v48 = vadd.f32 %v2556_v24, %v2526_v10  ;;  %v2537_v63 = vmul.f32 %v4735_v13, %v4735_v13  ;;  %v2538_v62 = vmul.f32 %v4726_v33, %v4726_v33 }
 0x252   : > { %v2539_v14 = vmul.f32 %v4732_v32, %v4732_v32  ;;  %v2541_v56 = vmul.f32 %v4753_v8, %v4753_v8  ;;  %v2542_v10 = vmul.f32 %v4745_v2, %v4745_v2  ;;  %vm2593_vm0 = vcmask 1040384  }
 0x253   : > { %v2490_v0 = vadd.f32 %v2489_v45, %v4689_v5  ;;  %v2558_v58 = vadd.f32 %v2557_v48, %v2527_v25  ;;  %v2540_v45 = vmul.f32 %v4748_v20, %v4748_v20  ;;  %v2543_v25 = vmul.f32 %v4750_v1, %v4750_v1 }
 0x254   : > { %v2545_v48 = vmul.f32 %v4769_v42, %v4769_v42 }
 0x255   : > { %v2491_v30 = vadd.f32 %v2490_v0, %v4695_v40  ;;  %v2559_v53 = vadd.f32 %v2558_v58, %v2528_v18 }
 0x257   : > { %v2492_v39 = vadd.f32 %v2491_v30, %v4686_v47  ;;  %v2560_v36 = vadd.f32 %v2559_v53, %v2529_v23  ;;  %v2546_v23 = vmul.f32 %v4763_v19, %v4763_v19  ;;  %v2548_v53 = vmul.f32 %v4781_v61, %v4781_v61 }
 0x259   : > { %v2493_v16 = vadd.f32 %v2492_v39, %v4692_v54  ;;  %v2561_v60 = vadd.f32 %v2560_v36, %v2530_v3  ;;  %v2544_v39 = vmul.f32 %v4765_v34, %v4765_v34 }
 0x25b   : > { %v2494_v6 = vadd.f32 %v2493_v16, %v4709_v37  ;;  %v2562_v31 = vadd.f32 %v2561_v60, %v2531_v28  ;;  %v2549_v28 = vmul.f32 %v4785_v46, %v4785_v46  ;;  %v2551_v60 = vmul.f32 %v4783_v21, %v4783_v21 }
 0x25d   : > { %v2495_v35 = vadd.f32 %v2494_v6, %v4715_v7  ;;  %v2563_v57 = vadd.f32 %v2562_v31, %v2532_v44  ;;  %v2547_v6 = vmul.f32 %v4767_v17, %v4767_v17 }
 0x25f   : > { %v2496_v5 = vadd.f32 %v2495_v35, %v4706_v9  ;;  %v2564_v11 = vadd.f32 %v2563_v57, %v2533_v55  ;;  %v2552_v55 = vmul.f32 %v4795_v4, %v4795_v4  ;;  %v2554_v57 = vmul.f32 %v4802_v59, %v4802_v59 }
 0x261   : > { %v2497_v40 = vadd.f32 %v2496_v5, %v4712_v22  ;;  %v2565_v15 = vadd.f32 %v2564_v11, %v2534_v51  ;;  %v2550_v5 = vmul.f32 %v4779_v26, %v4779_v26 }
 0x263   : > { %v2498_v47 = vadd.f32 %v2497_v40, %v4729_v50  ;;  %v2566_v38 = vadd.f32 %v2565_v15, %v2535_v29 }
 0x265   : > { %v2499_v54 = vadd.f32 %v2498_v47, %v4735_v13  ;;  %v2567_v52 = vadd.f32 %v2566_v38, %v2536_v41  ;;  %v2553_v47 = vmul.f32 %v4797_v27, %v4797_v27 }
 0x267   : > { %v2500_v37 = vadd.f32 %v2499_v54, %v4726_v33  ;;  %v2568_v12 = vadd.f32 %v2567_v52, %v2537_v63 }
 0x269   : > { %v2501_v7 = vadd.f32 %v2500_v37, %v4732_v32  ;;  %v2569_v43 = vadd.f32 %v2568_v12, %v2538_v62 }
 0x26b   : > { %v2502_v9 = vadd.f32 %v2501_v7, %v4748_v20  ;;  %v2570_v0 = vadd.f32 %v2569_v43, %v2539_v14 }
 0x26d   : > { %v2503_v22 = vadd.f32 %v2502_v9, %v4753_v8  ;;  %v2571_v30 = vadd.f32 %v2570_v0, %v2540_v45 }
 0x26f   : > { %v2504_v50 = vadd.f32 %v2503_v22, %v4745_v2  ;;  %v2572_v24 = vadd.f32 %v2571_v30, %v2541_v56 }
 0x271   : > { %v2505_v13 = vadd.f32 %v2504_v50, %v4750_v1  ;;  %v2573_v18 = vadd.f32 %v2572_v24, %v2542_v10 }
 0x273   : > { %v2506_v33 = vadd.f32 %v2505_v13, %v4765_v34  ;;  %v2574_v16 = vadd.f32 %v2573_v18, %v2543_v25 }
 0x275   : > { %v2507_v32 = vadd.f32 %v2506_v33, %v4769_v42  ;;  %v2575_v58 = vadd.f32 %v2574_v16, %v2544_v39 }
 0x277   : > { %v2508_v20 = vadd.f32 %v2507_v32, %v4763_v19  ;;  %v2576_v3 = vadd.f32 %v2575_v58, %v2545_v48 }
 0x279   : > { %v2509_v8 = vadd.f32 %v2508_v20, %v4767_v17  ;;  %v2577_v35 = vadd.f32 %v2576_v3, %v2546_v23 }
 0x27b   : > { %v2510_v2 = vadd.f32 %v2509_v8, %v4781_v61  ;;  %v2578_v36 = vadd.f32 %v2577_v35, %v2547_v6 }
 0x27d   : > { %v2511_v1 = vadd.f32 %v2510_v2, %v4785_v46  ;;  %v2579_v44 = vadd.f32 %v2578_v36, %v2548_v53 }
 0x27f   : > { %v2512_v34 = vadd.f32 %v2511_v1, %v4779_v26  ;;  %v2580_v40 = vadd.f32 %v2579_v44, %v2549_v28 }
 0x281   : > { %v2513_v42 = vadd.f32 %v2512_v34, %v4783_v21  ;;  %v2581_v31 = vadd.f32 %v2580_v40, %v2550_v5  ;;  %v2555_v21 = vmul.f32 %v4806_v49, %v4806_v49 }
 0x283   : > { %v2514_v19 = vadd.f32 %v2513_v42, %v4795_v4  ;;  %v2582_v51 = vadd.f32 %v2581_v31, %v2551_v60 }
 0x285   : > { %v2515_v17 = vadd.f32 %v2514_v19, %v4797_v27  ;;  %v2583_v54 = vadd.f32 %v2582_v51, %v2552_v55 }
 0x287   : > { %v2516_v61 = vadd.f32 %v2515_v17, %v4802_v59  ;;  %v2584_v11 = vadd.f32 %v2583_v54, %v2553_v47  ;;  %v2486_v59 = vld [vmem:[%s4926_s5] sm:$0x3] }
 0x289   : > { %v2517_v46 = vadd.f32 %v2516_v61, %v4806_v49  ;;  %v2585_v41 = vadd.f32 %v2584_v11, %v2554_v57 }
 0x28b   : > { %v2518_v26 = vrot.slane %v2517_v46, 4  ;;  %v2586_v4 = vadd.f32 %v2585_v41, %v2555_v21 }
 0x28d   : > { %v2519_v29 = vadd.f32 %v2518_v26, %v2517_v46  ;;  %v2587_v7 = vrot.slane %v2586_v4, 4 }
 0x28f   : > { %v2520_v37 = vrot.slane %v2519_v29, 2  ;;  %v2588_v63 = vadd.f32 %v2587_v7, %v2586_v4 }
 0x291   : > { %v2521_v15 = vadd.f32 %v2520_v37, %v2519_v29  ;;  %v2589_v9 = vrot.slane %v2588_v63, 2 }
 0x293   : > { %v2522_v38 = vrot.slane %v2521_v15, 1  ;;  %v2590_v27 = vadd.f32 %v2589_v9, %v2588_v63 }
 0x295   : > { %v2523_v62 = vadd.f32 %v2522_v38, %v2521_v15  ;;  %v2591_v52 = vrot.slane %v2590_v27, 1 }
 0x297   : > { %v2592_v22 = vadd.f32 %v2591_v52, %v2590_v27 }
 0x299   : > { %v2594_v14 = vsel %vm2593_vm0, %v2523_v62, %v2592_v22 }
 0x29a   : > { %v2595_v49 = vadd.f32 %v2594_v14, %v2486_v59 }
 0x29c   : > { %2596 = vst [vmem:[%s4926_s5] sm:$0x3] %v2595_v49 }
 0x29d PF: > { %s16_s18 = sadd.s32 1, %s3609_s18  }
 0x29e   : > { %p13_p5 = scmp.ge.s32.totalorder %s16_s18, 4  }
 0x2a0   :  { %15 = sbr.rel (!%p13_p5) target bundleno = 1 (0x1), region = 84 }

</bundles_post_ra>
